<compile_context>
chip_gen: v6e
topology: v6e:2x2x1
jax: 0.10.0
libtpu: 0.0.40
codegen_flags: <defaults>
</compile_context>

<pallas_src>
import numpy as np

import jax
import jax.numpy as jnp
from jax.experimental import pallas as pl
from jax.experimental.pallas import tpu as pltpu


# ------------------------- host-side constant builders -------------------------

def _pool_select_mats(H, W):
    """(4, H/2*W/2, H*W) 0/1 matrices selecting the 4 candidates of each 2x2 window."""
    Ho, Wo = H // 2, W // 2
    P = np.zeros((4, Ho * Wo, H * W), np.float32)
    for a in range(2):
        for b in range(2):
            for io in range(Ho):
                for jo in range(Wo):
                    P[a * 2 + b, io * Wo + jo, (2 * io + a) * W + (2 * jo + b)] = 1.0
    return jnp.asarray(P)


def _colsum_mat(H, W):
    """(H*W, W) 0/1 matrix: (flat softmax row) @ M = per-column sums."""
    M = np.zeros((H * W, W), np.float32)
    for i in range(H):
        for j in range(W):
            M[i * W + j, j] = 1.0
    return jnp.asarray(M)


def _round_up(x, m):
    return ((x + m - 1) // m) * m


# ------------------------------- fused forward -------------------------------

def planner_forward(img, params):
    """img: (B, 3, H, W) NCHW float32 -> (B, 2, W//4) aim points."""
    B, Cin, H, W = img.shape
    assert H == W and H % 4 == 0, "spatial_argmax (as written) needs a square map"
    H1, W1 = H // 2, W // 2
    H2, W2 = H1 // 2, W1 // 2
    N0, N1, N2 = H * W, H1 * W1, H2 * W2
    C1 = params["w1"].shape[-1]
    C2 = params["w2"].shape[-1]
    pad0 = _round_up(W + 1, 8)    # zero rows around the flattened image
    pad1 = _round_up(W1 + 1, 8)   # zero rows around the flattened pooled map

    # Layout-only prep (tiny, once per call): NCHW -> row-flattened NHWC + zero pad.
    x = jnp.transpose(img, (0, 2, 3, 1)).reshape(B, N0, Cin)
    x = jnp.pad(x, ((0, 0), (pad0, pad0), (0, 0)))

    w1 = params["w1"].reshape(9, Cin, C1)
    b1 = params["b1"].reshape(1, C1)
    w2 = params["w2"].reshape(9, C1, C2)
    b2 = params["b2"].reshape(1, C2)
    w3 = params["w3"].reshape(C2, 1).T          # (1, C2)
    b3 = params["b3"].reshape(1, 1)
    p1 = _pool_select_mats(H, W)                # (4, N1, N0)
    p2 = _pool_select_mats(H1, W1)              # (4, N2, N1)
    cs = _colsum_mat(H2, W2)                    # (N2, W2)
    # spatial_argmax factors (reference broadcasting): row 0 = linspace(-1,1,H')
    # applied along W'; row 1 = linspace(-1,1,1) == -1.
    fac = jnp.stack(
        [jnp.linspace(-1.0, 1.0, H2),
         jnp.broadcast_to(jnp.linspace(-1.0, 1.0, 1), (W2,))],
        axis=0).astype(jnp.float32)             # (2, W2)

    def kernel(x_ref, w1_ref, b1_ref, w2_ref, b2_ref, p1_ref, p2_ref,
               w3_ref, b3_ref, cs_ref, fac_ref, o_ref, buf_ref):
        f32 = jnp.float32

        def conv3x3_relu(read, Wc, Nc, w_ref, b_ref):
            # 3x3 "same" conv on a row-flattened (Nc, Cin) map with zero padding.
            # Fused im2col: 9 shifted slices -> MXU matmuls -> masked accumulate.
            j = jax.lax.broadcasted_iota(jnp.int32, (Nc, 1), 0) % Wc
            acc = jnp.zeros((Nc, w_ref.shape[-1]), f32)
            for k in range(9):
                oy, ox = k // 3 - 1, k % 3 - 1
                g = jnp.dot(read(oy * Wc + ox), w_ref[k],
                            preferred_element_type=f32)
                if ox == -1:                       # left-edge reads wrap a row
                    g = jnp.where(j >= 1, g, 0.0)
                elif ox == 1:                      # right-edge reads wrap a row
                    g = jnp.where(j <= Wc - 2, g, 0.0)
                acc = acc + g
            return jnp.maximum(acc + b_ref[...], 0.0)

        def maxpool2x2(f, p_ref):
            # Exact 2x2 max pool: elementwise max of 4 row-selection matmuls.
            c0 = jnp.dot(p_ref[0], f, preferred_element_type=f32)
            c1 = jnp.dot(p_ref[1], f, preferred_element_type=f32)
            c2 = jnp.dot(p_ref[2], f, preferred_element_type=f32)
            c3 = jnp.dot(p_ref[3], f, preferred_element_type=f32)
            return jnp.maximum(jnp.maximum(c0, c1), jnp.maximum(c2, c3))

        # ---- conv1 (3->C1) + ReLU + pool: shifted windows of the padded image ----
        f1 = conv3x3_relu(lambda s: x_ref[0, pad0 + s:pad0 + s + N0, :],
                          W, N0, w1_ref, b1_ref)            # (N0, C1)
        f1 = maxpool2x2(f1, p1_ref)                         # (N1, C1)

        # stage the pooled map in zero-padded VMEM scratch so conv2 can slice it
        buf_ref[...] = jnp.zeros(buf_ref.shape, buf_ref.dtype)
        buf_ref[pad1:pad1 + N1, :] = f1

        # ---- conv2 (C1->C2) + ReLU + pool ----
        f2 = conv3x3_relu(lambda s: buf_ref[pad1 + s:pad1 + s + N1, :],
                          W1, N1, w2_ref, b2_ref)           # (N1, C2)
        f2 = maxpool2x2(f2, p2_ref)                         # (N2, C2)

        # ---- head: 1x1 conv (C2->1) + softmax over H'*W' + spatial_argmax ----
        logits = jax.lax.dot_general(
            w3_ref[...], f2, (((1,), (1,)), ((), ())),
            preferred_element_type=f32) + b3_ref[...]       # (1, N2)
        m = jnp.max(logits, axis=1, keepdims=True)
        e = jnp.exp(logits - m)
        den = jnp.sum(e, axis=1, keepdims=True)
        wgt = e * pl.reciprocal(den, approx=True)           # softmax weights (1, N2)
        colsum = jnp.dot(wgt, cs_ref[...], preferred_element_type=f32)  # (1, W2)
        o_ref[...] = (fac_ref[...] * colsum)[None].astype(o_ref.dtype)

    return pl.pallas_call(
        kernel,
        out_shape=jax.ShapeDtypeStruct((B, 2, W2), jnp.float32),
        grid=(B,),
        in_specs=[
            pl.BlockSpec((1, N0 + 2 * pad0, Cin), lambda b: (b, 0, 0)),
            pl.BlockSpec((9, Cin, C1), lambda b: (0, 0, 0)),
            pl.BlockSpec((1, C1), lambda b: (0, 0)),
            pl.BlockSpec((9, C1, C2), lambda b: (0, 0, 0)),
            pl.BlockSpec((1, C2), lambda b: (0, 0)),
            pl.BlockSpec((4, N1, N0), lambda b: (0, 0, 0)),
            pl.BlockSpec((4, N2, N1), lambda b: (0, 0, 0)),
            pl.BlockSpec((1, C2), lambda b: (0, 0)),
            pl.BlockSpec((1, 1), lambda b: (0, 0)),
            pl.BlockSpec((N2, W2), lambda b: (0, 0)),
            pl.BlockSpec((2, W2), lambda b: (0, 0)),
        ],
        out_specs=pl.BlockSpec((1, 2, W2), lambda b: (b, 0, 0)),
        scratch_shapes=[pltpu.VMEM((N1 + 2 * pad1, C1), jnp.float32)],
        compiler_params=pltpu.CompilerParams(
            dimension_semantics=("parallel",)),
    )(x, w1, b1, w2, b2, p1, p2, w3, b3, cs, fac)


# ----------------------- pure-JAX reference (sanity check) -----------------------

def _ref_forward(img, params):
    x = jnp.transpose(img, (0, 2, 3, 1))

    def conv3x3_relu(x, w, b):
        B, H, W, Cin = x.shape
        xp = jnp.pad(x, ((0, 0), (1, 1), (1, 1), (0, 0)))
        y = b
        for dy in range(3):
            for dx in range(3):
                y = y + jnp.einsum("bhwc,co->bhwo", xp[:, dy:dy + H, dx:dx + W, :],
                                   w[dy, dx], precision="highest")
        return jnp.maximum(y, 0.0)

    def pool(x):
        B, H, W, C = x.shape
        return jnp.max(x.reshape(B, H // 2, 2, W // 2, 2, C), axis=(2, 4))

    x = pool(conv3x3_relu(x, params["w1"], params["b1"]))
    x = pool(conv3x3_relu(x, params["w2"], params["b2"]))
    logits = jnp.einsum("bhwc,co->bhwo", x, params["w3"][0, 0],
                        precision="highest")[..., 0] + params["b3"][0]
    B, H, W = logits.shape
    wgt = jax.nn.softmax(logits.reshape(B, -1), axis=-1).reshape(B, H, W)
    colsum = wgt.sum(axis=1)
    return jnp.stack([colsum * jnp.linspace(-1.0, 1.0, H),
                      colsum * jnp.linspace(-1.0, 1.0, 1)], axis=1)


# ----------------------------- deterministic params -----------------------------

def init_params(key):
    k1, k2, k3, k4, k5, k6 = jax.random.split(key, 6)
    return {
        "w1": 0.10 * jax.random.normal(k1, (3, 3, 3, 32), jnp.float32),   # HWIO
        "b1": 0.10 * jax.random.normal(k2, (32,), jnp.float32),
        "w2": 0.05 * jax.random.normal(k3, (3, 3, 32, 64), jnp.float32),  # HWIO
        "b2": 0.10 * jax.random.normal(k4, (64,), jnp.float32),
        "w3": 0.10 * jax.random.normal(k5, (1, 1, 64, 1), jnp.float32),   # HWIO
        "b3": 0.10 * jax.random.normal(k6, (1,), jnp.float32),
    }


if __name__ == "__main__":
    key = jax.random.PRNGKey(0)
    pkey, xkey = jax.random.split(key)
    params = init_params(pkey)
    img = jax.random.normal(xkey, (2, 3, 16, 16), jnp.float32)   # NCHW, like the module

    fwd = jax.jit(planner_forward)
    aim = jax.block_until_ready(fwd(img, params))

    ref = _ref_forward(img, params)
    assert aim.shape == (2, 2, 4), aim.shape
    assert bool(jnp.all(jnp.isfinite(aim)))
    assert bool(jnp.allclose(aim, ref, rtol=1e-3, atol=1e-3)), \
        float(jnp.max(jnp.abs(aim - ref)))
    print("KERNEL_OK")
</pallas_src>

<mosaic_0001>
module attributes {stable_mosaic.version = 11 : i64} {
  func.func @kernel(%arg0: i32, %arg1: memref<1x304x3xf32, #tpu.memory_space<vmem>>, %arg2: memref<9x3x32xf32, #tpu.memory_space<vmem>>, %arg3: memref<1x32xf32, #tpu.memory_space<vmem>>, %arg4: memref<9x32x64xf32, #tpu.memory_space<vmem>>, %arg5: memref<1x64xf32, #tpu.memory_space<vmem>>, %arg6: memref<4x64x256xf32, #tpu.memory_space<vmem>>, %arg7: memref<4x16x64xf32, #tpu.memory_space<vmem>>, %arg8: memref<1x64xf32, #tpu.memory_space<vmem>>, %arg9: memref<1x1xf32, #tpu.memory_space<vmem>>, %arg10: memref<16x4xf32, #tpu.memory_space<vmem>>, %arg11: memref<2x4xf32, #tpu.memory_space<vmem>>, %arg12: memref<1x2x4xf32, #tpu.memory_space<vmem>>, %arg13: memref<96x32xf32, #tpu.memory_space<vmem>>) attributes {dimension_semantics = [#tpu.dimension_semantics<parallel>], iteration_bounds = array<i64: 2>, scalar_prefetch = 0 : i64, scratch_operands = 1 : i64, tpu.core_type = #tpu.core_type<tc>, window_params = [{transform_indices = @transform_0, window_bounds = array<i64: 1, 304, 3>}, {pipeline_mode = #tpu.pipeline_mode<synchronous>, transform_indices = @transform_1, window_bounds = array<i64: 9, 3, 32>}, {pipeline_mode = #tpu.pipeline_mode<synchronous>, transform_indices = @transform_2, window_bounds = array<i64: 1, 32>}, {pipeline_mode = #tpu.pipeline_mode<synchronous>, transform_indices = @transform_3, window_bounds = array<i64: 9, 32, 64>}, {pipeline_mode = #tpu.pipeline_mode<synchronous>, transform_indices = @transform_4, window_bounds = array<i64: 1, 64>}, {pipeline_mode = #tpu.pipeline_mode<synchronous>, transform_indices = @transform_5, window_bounds = array<i64: 4, 64, 256>}, {pipeline_mode = #tpu.pipeline_mode<synchronous>, transform_indices = @transform_6, window_bounds = array<i64: 4, 16, 64>}, {pipeline_mode = #tpu.pipeline_mode<synchronous>, transform_indices = @transform_7, window_bounds = array<i64: 1, 64>}, {pipeline_mode = #tpu.pipeline_mode<synchronous>, transform_indices = @transform_8, window_bounds = array<i64: 1, 1>}, {pipeline_mode = #tpu.pipeline_mode<synchronous>, transform_indices = @transform_9, window_bounds = array<i64: 16, 4>}, {pipeline_mode = #tpu.pipeline_mode<synchronous>, transform_indices = @transform_10, window_bounds = array<i64: 2, 4>}, {transform_indices = @transform_11, window_bounds = array<i64: 1, 2, 4>}]} {
    %0 = tpu.iota {dimensions = array<i32: 0>} : vector<256x1xi32>
    %c16_i32 = arith.constant 16 : i32
    %c0_i32 = arith.constant 0 : i32
    %1 = arith.cmpi eq, %c16_i32, %c0_i32 : i32
    %c1_i32 = arith.constant 1 : i32
    %2 = arith.select %1, %c1_i32, %c16_i32 : i32
    %3 = vector.broadcast %2 : i32 to vector<256x1xi32>
    %4 = arith.remsi %0, %3 : vector<256x1xi32>
    %c0_i32_0 = arith.constant 0 : i32
    %5 = vector.broadcast %c0_i32_0 : i32 to vector<256x1xi32>
    %6 = arith.cmpi ne, %4, %5 : vector<256x1xi32>
    %c0_i32_1 = arith.constant 0 : i32
    %7 = vector.broadcast %c0_i32_1 : i32 to vector<256x1xi32>
    %8 = arith.cmpi slt, %4, %7 : vector<256x1xi32>
    %c0_i32_2 = arith.constant 0 : i32
    %9 = arith.cmpi slt, %2, %c0_i32_2 : i32
    %10 = vector.broadcast %9 : i1 to vector<256x1xi1>
    %11 = vector.broadcast %10 : vector<256x1xi1> to vector<256x1xi1>
    %12 = arith.xori %8, %11 : vector<256x1xi1>
    %13 = arith.andi %12, %6 : vector<256x1xi1>
    %14 = vector.broadcast %2 : i32 to vector<256x1xi32>
    %15 = arith.addi %4, %14 : vector<256x1xi32>
    %16 = arith.select %13, %15, %4 : vector<256x1xi1>, vector<256x1xi32>
    %cst = arith.constant 0.000000e+00 : f32
    %17 = vector.broadcast %cst : f32 to vector<256x32xf32>
    %c0 = arith.constant 0 : index
    %c7 = arith.constant 7 : index
    %c0_3 = arith.constant 0 : index
    %18 = vector.load %arg1[%c0, %c7, %c0_3] : memref<1x304x3xf32, #tpu.memory_space<vmem>>, vector<1x256x3xf32>
    %19 = vector.shape_cast %18 : vector<1x256x3xf32> to vector<256x3xf32>
    %c0_4 = arith.constant 0 : index
    %c0_5 = arith.constant 0 : index
    %c0_6 = arith.constant 0 : index
    %20 = vector.load %arg2[%c0_4, %c0_5, %c0_6] : memref<9x3x32xf32, #tpu.memory_space<vmem>>, vector<1x3x32xf32>
    %21 = vector.shape_cast %20 : vector<1x3x32xf32> to vector<3x32xf32>
    %cst_7 = arith.constant dense<0.000000e+00> : vector<256x32xf32>
    %22 = tpu.matmul %19, %21, %cst_7 {dimension_numbers = #tpu.dot_dimension_numbers<[1], [0], [0], [1], [0, 0, 1, 1], [], []>} : vector<256x3xf32>, vector<3x32xf32>, vector<256x32xf32> -> vector<256x32xf32>
    %c1_i32_8 = arith.constant 1 : i32
    %23 = vector.broadcast %c1_i32_8 : i32 to vector<256x1xi32>
    %24 = arith.cmpi sge, %16, %23 : vector<256x1xi32>
    %cst_9 = arith.constant 0.000000e+00 : f32
    %25 = vector.shape_cast %24 : vector<256x1xi1> to vector<256x1xi1>
    %26 = vector.broadcast %25 : vector<256x1xi1> to vector<256x32xi1>
    %27 = vector.broadcast %cst_9 : f32 to vector<256x32xf32>
    %28 = arith.select %26, %22, %27 : vector<256x32xi1>, vector<256x32xf32>
    %29 = arith.addf %17, %28 : vector<256x32xf32>
    %c0_10 = arith.constant 0 : index
    %c8 = arith.constant 8 : index
    %c0_11 = arith.constant 0 : index
    %30 = vector.load %arg1[%c0_10, %c8, %c0_11] : memref<1x304x3xf32, #tpu.memory_space<vmem>>, vector<1x256x3xf32>
    %31 = vector.shape_cast %30 : vector<1x256x3xf32> to vector<256x3xf32>
    %c1 = arith.constant 1 : index
    %c0_12 = arith.constant 0 : index
    %c0_13 = arith.constant 0 : index
    %32 = vector.load %arg2[%c1, %c0_12, %c0_13] : memref<9x3x32xf32, #tpu.memory_space<vmem>>, vector<1x3x32xf32>
    %33 = vector.shape_cast %32 : vector<1x3x32xf32> to vector<3x32xf32>
    %cst_14 = arith.constant dense<0.000000e+00> : vector<256x32xf32>
    %34 = tpu.matmul %31, %33, %cst_14 {dimension_numbers = #tpu.dot_dimension_numbers<[1], [0], [0], [1], [0, 0, 1, 1], [], []>} : vector<256x3xf32>, vector<3x32xf32>, vector<256x32xf32> -> vector<256x32xf32>
    %35 = arith.addf %29, %34 : vector<256x32xf32>
    %c0_15 = arith.constant 0 : index
    %c9 = arith.constant 9 : index
    %c0_16 = arith.constant 0 : index
    %36 = vector.load %arg1[%c0_15, %c9, %c0_16] : memref<1x304x3xf32, #tpu.memory_space<vmem>>, vector<1x256x3xf32>
    %37 = vector.shape_cast %36 : vector<1x256x3xf32> to vector<256x3xf32>
    %c2 = arith.constant 2 : index
    %c0_17 = arith.constant 0 : index
    %c0_18 = arith.constant 0 : index
    %38 = vector.load %arg2[%c2, %c0_17, %c0_18] : memref<9x3x32xf32, #tpu.memory_space<vmem>>, vector<1x3x32xf32>
    %39 = vector.shape_cast %38 : vector<1x3x32xf32> to vector<3x32xf32>
    %cst_19 = arith.constant dense<0.000000e+00> : vector<256x32xf32>
    %40 = tpu.matmul %37, %39, %cst_19 {dimension_numbers = #tpu.dot_dimension_numbers<[1], [0], [0], [1], [0, 0, 1, 1], [], []>} : vector<256x3xf32>, vector<3x32xf32>, vector<256x32xf32> -> vector<256x32xf32>
    %c14_i32 = arith.constant 14 : i32
    %41 = vector.broadcast %c14_i32 : i32 to vector<256x1xi32>
    %42 = arith.cmpi sle, %16, %41 : vector<256x1xi32>
    %cst_20 = arith.constant 0.000000e+00 : f32
    %43 = vector.shape_cast %42 : vector<256x1xi1> to vector<256x1xi1>
    %44 = vector.broadcast %43 : vector<256x1xi1> to vector<256x32xi1>
    %45 = vector.broadcast %cst_20 : f32 to vector<256x32xf32>
    %46 = arith.select %44, %40, %45 : vector<256x32xi1>, vector<256x32xf32>
    %47 = arith.addf %35, %46 : vector<256x32xf32>
    %c0_21 = arith.constant 0 : index
    %c23 = arith.constant 23 : index
    %c0_22 = arith.constant 0 : index
    %48 = vector.load %arg1[%c0_21, %c23, %c0_22] : memref<1x304x3xf32, #tpu.memory_space<vmem>>, vector<1x256x3xf32>
    %49 = vector.shape_cast %48 : vector<1x256x3xf32> to vector<256x3xf32>
    %c3 = arith.constant 3 : index
    %c0_23 = arith.constant 0 : index
    %c0_24 = arith.constant 0 : index
    %50 = vector.load %arg2[%c3, %c0_23, %c0_24] : memref<9x3x32xf32, #tpu.memory_space<vmem>>, vector<1x3x32xf32>
    %51 = vector.shape_cast %50 : vector<1x3x32xf32> to vector<3x32xf32>
    %cst_25 = arith.constant dense<0.000000e+00> : vector<256x32xf32>
    %52 = tpu.matmul %49, %51, %cst_25 {dimension_numbers = #tpu.dot_dimension_numbers<[1], [0], [0], [1], [0, 0, 1, 1], [], []>} : vector<256x3xf32>, vector<3x32xf32>, vector<256x32xf32> -> vector<256x32xf32>
    %c1_i32_26 = arith.constant 1 : i32
    %53 = vector.broadcast %c1_i32_26 : i32 to vector<256x1xi32>
    %54 = arith.cmpi sge, %16, %53 : vector<256x1xi32>
    %cst_27 = arith.constant 0.000000e+00 : f32
    %55 = vector.shape_cast %54 : vector<256x1xi1> to vector<256x1xi1>
    %56 = vector.broadcast %55 : vector<256x1xi1> to vector<256x32xi1>
    %57 = vector.broadcast %cst_27 : f32 to vector<256x32xf32>
    %58 = arith.select %56, %52, %57 : vector<256x32xi1>, vector<256x32xf32>
    %59 = arith.addf %47, %58 : vector<256x32xf32>
    %c0_28 = arith.constant 0 : index
    %c24 = arith.constant 24 : index
    %c0_29 = arith.constant 0 : index
    %60 = vector.load %arg1[%c0_28, %c24, %c0_29] : memref<1x304x3xf32, #tpu.memory_space<vmem>>, vector<1x256x3xf32>
    %61 = vector.shape_cast %60 : vector<1x256x3xf32> to vector<256x3xf32>
    %c4 = arith.constant 4 : index
    %c0_30 = arith.constant 0 : index
    %c0_31 = arith.constant 0 : index
    %62 = vector.load %arg2[%c4, %c0_30, %c0_31] : memref<9x3x32xf32, #tpu.memory_space<vmem>>, vector<1x3x32xf32>
    %63 = vector.shape_cast %62 : vector<1x3x32xf32> to vector<3x32xf32>
    %cst_32 = arith.constant dense<0.000000e+00> : vector<256x32xf32>
    %64 = tpu.matmul %61, %63, %cst_32 {dimension_numbers = #tpu.dot_dimension_numbers<[1], [0], [0], [1], [0, 0, 1, 1], [], []>} : vector<256x3xf32>, vector<3x32xf32>, vector<256x32xf32> -> vector<256x32xf32>
    %65 = arith.addf %59, %64 : vector<256x32xf32>
    %c0_33 = arith.constant 0 : index
    %c25 = arith.constant 25 : index
    %c0_34 = arith.constant 0 : index
    %66 = vector.load %arg1[%c0_33, %c25, %c0_34] : memref<1x304x3xf32, #tpu.memory_space<vmem>>, vector<1x256x3xf32>
    %67 = vector.shape_cast %66 : vector<1x256x3xf32> to vector<256x3xf32>
    %c5 = arith.constant 5 : index
    %c0_35 = arith.constant 0 : index
    %c0_36 = arith.constant 0 : index
    %68 = vector.load %arg2[%c5, %c0_35, %c0_36] : memref<9x3x32xf32, #tpu.memory_space<vmem>>, vector<1x3x32xf32>
    %69 = vector.shape_cast %68 : vector<1x3x32xf32> to vector<3x32xf32>
    %cst_37 = arith.constant dense<0.000000e+00> : vector<256x32xf32>
    %70 = tpu.matmul %67, %69, %cst_37 {dimension_numbers = #tpu.dot_dimension_numbers<[1], [0], [0], [1], [0, 0, 1, 1], [], []>} : vector<256x3xf32>, vector<3x32xf32>, vector<256x32xf32> -> vector<256x32xf32>
    %c14_i32_38 = arith.constant 14 : i32
    %71 = vector.broadcast %c14_i32_38 : i32 to vector<256x1xi32>
    %72 = arith.cmpi sle, %16, %71 : vector<256x1xi32>
    %cst_39 = arith.constant 0.000000e+00 : f32
    %73 = vector.shape_cast %72 : vector<256x1xi1> to vector<256x1xi1>
    %74 = vector.broadcast %73 : vector<256x1xi1> to vector<256x32xi1>
    %75 = vector.broadcast %cst_39 : f32 to vector<256x32xf32>
    %76 = arith.select %74, %70, %75 : vector<256x32xi1>, vector<256x32xf32>
    %77 = arith.addf %65, %76 : vector<256x32xf32>
    %c0_40 = arith.constant 0 : index
    %c39 = arith.constant 39 : index
    %c0_41 = arith.constant 0 : index
    %78 = vector.load %arg1[%c0_40, %c39, %c0_41] : memref<1x304x3xf32, #tpu.memory_space<vmem>>, vector<1x256x3xf32>
    %79 = vector.shape_cast %78 : vector<1x256x3xf32> to vector<256x3xf32>
    %c6 = arith.constant 6 : index
    %c0_42 = arith.constant 0 : index
    %c0_43 = arith.constant 0 : index
    %80 = vector.load %arg2[%c6, %c0_42, %c0_43] : memref<9x3x32xf32, #tpu.memory_space<vmem>>, vector<1x3x32xf32>
    %81 = vector.shape_cast %80 : vector<1x3x32xf32> to vector<3x32xf32>
    %cst_44 = arith.constant dense<0.000000e+00> : vector<256x32xf32>
    %82 = tpu.matmul %79, %81, %cst_44 {dimension_numbers = #tpu.dot_dimension_numbers<[1], [0], [0], [1], [0, 0, 1, 1], [], []>} : vector<256x3xf32>, vector<3x32xf32>, vector<256x32xf32> -> vector<256x32xf32>
    %c1_i32_45 = arith.constant 1 : i32
    %83 = vector.broadcast %c1_i32_45 : i32 to vector<256x1xi32>
    %84 = arith.cmpi sge, %16, %83 : vector<256x1xi32>
    %cst_46 = arith.constant 0.000000e+00 : f32
    %85 = vector.shape_cast %84 : vector<256x1xi1> to vector<256x1xi1>
    %86 = vector.broadcast %85 : vector<256x1xi1> to vector<256x32xi1>
    %87 = vector.broadcast %cst_46 : f32 to vector<256x32xf32>
    %88 = arith.select %86, %82, %87 : vector<256x32xi1>, vector<256x32xf32>
    %89 = arith.addf %77, %88 : vector<256x32xf32>
    %c0_47 = arith.constant 0 : index
    %c40 = arith.constant 40 : index
    %c0_48 = arith.constant 0 : index
    %90 = vector.load %arg1[%c0_47, %c40, %c0_48] : memref<1x304x3xf32, #tpu.memory_space<vmem>>, vector<1x256x3xf32>
    %91 = vector.shape_cast %90 : vector<1x256x3xf32> to vector<256x3xf32>
    %c7_49 = arith.constant 7 : index
    %c0_50 = arith.constant 0 : index
    %c0_51 = arith.constant 0 : index
    %92 = vector.load %arg2[%c7_49, %c0_50, %c0_51] : memref<9x3x32xf32, #tpu.memory_space<vmem>>, vector<1x3x32xf32>
    %93 = vector.shape_cast %92 : vector<1x3x32xf32> to vector<3x32xf32>
    %cst_52 = arith.constant dense<0.000000e+00> : vector<256x32xf32>
    %94 = tpu.matmul %91, %93, %cst_52 {dimension_numbers = #tpu.dot_dimension_numbers<[1], [0], [0], [1], [0, 0, 1, 1], [], []>} : vector<256x3xf32>, vector<3x32xf32>, vector<256x32xf32> -> vector<256x32xf32>
    %95 = arith.addf %89, %94 : vector<256x32xf32>
    %c0_53 = arith.constant 0 : index
    %c41 = arith.constant 41 : index
    %c0_54 = arith.constant 0 : index
    %96 = vector.load %arg1[%c0_53, %c41, %c0_54] : memref<1x304x3xf32, #tpu.memory_space<vmem>>, vector<1x256x3xf32>
    %97 = vector.shape_cast %96 : vector<1x256x3xf32> to vector<256x3xf32>
    %c8_55 = arith.constant 8 : index
    %c0_56 = arith.constant 0 : index
    %c0_57 = arith.constant 0 : index
    %98 = vector.load %arg2[%c8_55, %c0_56, %c0_57] : memref<9x3x32xf32, #tpu.memory_space<vmem>>, vector<1x3x32xf32>
    %99 = vector.shape_cast %98 : vector<1x3x32xf32> to vector<3x32xf32>
    %cst_58 = arith.constant dense<0.000000e+00> : vector<256x32xf32>
    %100 = tpu.matmul %97, %99, %cst_58 {dimension_numbers = #tpu.dot_dimension_numbers<[1], [0], [0], [1], [0, 0, 1, 1], [], []>} : vector<256x3xf32>, vector<3x32xf32>, vector<256x32xf32> -> vector<256x32xf32>
    %c14_i32_59 = arith.constant 14 : i32
    %101 = vector.broadcast %c14_i32_59 : i32 to vector<256x1xi32>
    %102 = arith.cmpi sle, %16, %101 : vector<256x1xi32>
    %cst_60 = arith.constant 0.000000e+00 : f32
    %103 = vector.shape_cast %102 : vector<256x1xi1> to vector<256x1xi1>
    %104 = vector.broadcast %103 : vector<256x1xi1> to vector<256x32xi1>
    %105 = vector.broadcast %cst_60 : f32 to vector<256x32xf32>
    %106 = arith.select %104, %100, %105 : vector<256x32xi1>, vector<256x32xf32>
    %107 = arith.addf %95, %106 : vector<256x32xf32>
    %c0_61 = arith.constant 0 : index
    %c0_62 = arith.constant 0 : index
    %108 = vector.load %arg3[%c0_61, %c0_62] : memref<1x32xf32, #tpu.memory_space<vmem>>, vector<1x32xf32>
    %109 = vector.broadcast %108 : vector<1x32xf32> to vector<256x32xf32>
    %110 = arith.addf %107, %109 : vector<256x32xf32>
    %cst_63 = arith.constant 0.000000e+00 : f32
    %111 = vector.broadcast %cst_63 : f32 to vector<256x32xf32>
    %112 = arith.maximumf %110, %111 : vector<256x32xf32>
    %c0_64 = arith.constant 0 : index
    %c0_65 = arith.constant 0 : index
    %c0_66 = arith.constant 0 : index
    %113 = vector.load %arg6[%c0_64, %c0_65, %c0_66] : memref<4x64x256xf32, #tpu.memory_space<vmem>>, vector<1x64x256xf32>
    %114 = vector.shape_cast %113 : vector<1x64x256xf32> to vector<64x256xf32>
    %cst_67 = arith.constant dense<0.000000e+00> : vector<64x32xf32>
    %115 = tpu.matmul %114, %112, %cst_67 {dimension_numbers = #tpu.dot_dimension_numbers<[1], [0], [0], [1], [0, 0, 1, 1], [], []>} : vector<64x256xf32>, vector<256x32xf32>, vector<64x32xf32> -> vector<64x32xf32>
    %c1_68 = arith.constant 1 : index
    %c0_69 = arith.constant 0 : index
    %c0_70 = arith.constant 0 : index
    %116 = vector.load %arg6[%c1_68, %c0_69, %c0_70] : memref<4x64x256xf32, #tpu.memory_space<vmem>>, vector<1x64x256xf32>
    %117 = vector.shape_cast %116 : vector<1x64x256xf32> to vector<64x256xf32>
    %cst_71 = arith.constant dense<0.000000e+00> : vector<64x32xf32>
    %118 = tpu.matmul %117, %112, %cst_71 {dimension_numbers = #tpu.dot_dimension_numbers<[1], [0], [0], [1], [0, 0, 1, 1], [], []>} : vector<64x256xf32>, vector<256x32xf32>, vector<64x32xf32> -> vector<64x32xf32>
    %c2_72 = arith.constant 2 : index
    %c0_73 = arith.constant 0 : index
    %c0_74 = arith.constant 0 : index
    %119 = vector.load %arg6[%c2_72, %c0_73, %c0_74] : memref<4x64x256xf32, #tpu.memory_space<vmem>>, vector<1x64x256xf32>
    %120 = vector.shape_cast %119 : vector<1x64x256xf32> to vector<64x256xf32>
    %cst_75 = arith.constant dense<0.000000e+00> : vector<64x32xf32>
    %121 = tpu.matmul %120, %112, %cst_75 {dimension_numbers = #tpu.dot_dimension_numbers<[1], [0], [0], [1], [0, 0, 1, 1], [], []>} : vector<64x256xf32>, vector<256x32xf32>, vector<64x32xf32> -> vector<64x32xf32>
    %c3_76 = arith.constant 3 : index
    %c0_77 = arith.constant 0 : index
    %c0_78 = arith.constant 0 : index
    %122 = vector.load %arg6[%c3_76, %c0_77, %c0_78] : memref<4x64x256xf32, #tpu.memory_space<vmem>>, vector<1x64x256xf32>
    %123 = vector.shape_cast %122 : vector<1x64x256xf32> to vector<64x256xf32>
    %cst_79 = arith.constant dense<0.000000e+00> : vector<64x32xf32>
    %124 = tpu.matmul %123, %112, %cst_79 {dimension_numbers = #tpu.dot_dimension_numbers<[1], [0], [0], [1], [0, 0, 1, 1], [], []>} : vector<64x256xf32>, vector<256x32xf32>, vector<64x32xf32> -> vector<64x32xf32>
    %125 = arith.maximumf %115, %118 : vector<64x32xf32>
    %126 = arith.maximumf %121, %124 : vector<64x32xf32>
    %127 = arith.maximumf %125, %126 : vector<64x32xf32>
    %cst_80 = arith.constant 0.000000e+00 : f32
    %128 = vector.broadcast %cst_80 : f32 to vector<96x32xf32>
    %c0_81 = arith.constant 0 : index
    %c0_82 = arith.constant 0 : index
    %129 = vector.load %arg13[%c0_81, %c0_82] : memref<96x32xf32, #tpu.memory_space<vmem>>, vector<96x32xf32>
    tpu.vector_store %arg13[%c0_81, %c0_82], %128 {strides = array<i32>} : memref<96x32xf32, #tpu.memory_space<vmem>>, vector<96x32xf32>,
    %c16 = arith.constant 16 : index
    %c0_83 = arith.constant 0 : index
    %130 = vector.load %arg13[%c16, %c0_83] : memref<96x32xf32, #tpu.memory_space<vmem>>, vector<64x32xf32>
    tpu.vector_store %arg13[%c16, %c0_83], %127 {strides = array<i32>} : memref<96x32xf32, #tpu.memory_space<vmem>>, vector<64x32xf32>,
    %131 = tpu.iota {dimensions = array<i32: 0>} : vector<64x1xi32>
    %c8_i32 = arith.constant 8 : i32
    %c0_i32_84 = arith.constant 0 : i32
    %132 = arith.cmpi eq, %c8_i32, %c0_i32_84 : i32
    %c1_i32_85 = arith.constant 1 : i32
    %133 = arith.select %132, %c1_i32_85, %c8_i32 : i32
    %134 = vector.broadcast %133 : i32 to vector<64x1xi32>
    %135 = arith.remsi %131, %134 : vector<64x1xi32>
    %c0_i32_86 = arith.constant 0 : i32
    %136 = vector.broadcast %c0_i32_86 : i32 to vector<64x1xi32>
    %137 = arith.cmpi ne, %135, %136 : vector<64x1xi32>
    %c0_i32_87 = arith.constant 0 : i32
    %138 = vector.broadcast %c0_i32_87 : i32 to vector<64x1xi32>
    %139 = arith.cmpi slt, %135, %138 : vector<64x1xi32>
    %c0_i32_88 = arith.constant 0 : i32
    %140 = arith.cmpi slt, %133, %c0_i32_88 : i32
    %141 = vector.broadcast %140 : i1 to vector<64x1xi1>
    %142 = vector.broadcast %141 : vector<64x1xi1> to vector<64x1xi1>
    %143 = arith.xori %139, %142 : vector<64x1xi1>
    %144 = arith.andi %143, %137 : vector<64x1xi1>
    %145 = vector.broadcast %133 : i32 to vector<64x1xi32>
    %146 = arith.addi %135, %145 : vector<64x1xi32>
    %147 = arith.select %144, %146, %135 : vector<64x1xi1>, vector<64x1xi32>
    %cst_89 = arith.constant 0.000000e+00 : f32
    %148 = vector.broadcast %cst_89 : f32 to vector<64x64xf32>
    %c7_90 = arith.constant 7 : index
    %c0_91 = arith.constant 0 : index
    %149 = vector.load %arg13[%c7_90, %c0_91] : memref<96x32xf32, #tpu.memory_space<vmem>>, vector<64x32xf32>
    %c0_92 = arith.constant 0 : index
    %c0_93 = arith.constant 0 : index
    %c0_94 = arith.constant 0 : index
    %150 = vector.load %arg4[%c0_92, %c0_93, %c0_94] : memref<9x32x64xf32, #tpu.memory_space<vmem>>, vector<1x32x64xf32>
    %151 = vector.shape_cast %150 : vector<1x32x64xf32> to vector<32x64xf32>
    %cst_95 = arith.constant dense<0.000000e+00> : vector<64x64xf32>
    %152 = tpu.matmul %149, %151, %cst_95 {dimension_numbers = #tpu.dot_dimension_numbers<[1], [0], [0], [1], [0, 0, 1, 1], [], []>} : vector<64x32xf32>, vector<32x64xf32>, vector<64x64xf32> -> vector<64x64xf32>
    %c1_i32_96 = arith.constant 1 : i32
    %153 = vector.broadcast %c1_i32_96 : i32 to vector<64x1xi32>
    %154 = arith.cmpi sge, %147, %153 : vector<64x1xi32>
    %cst_97 = arith.constant 0.000000e+00 : f32
    %155 = vector.shape_cast %154 : vector<64x1xi1> to vector<64x1xi1>
    %156 = vector.broadcast %155 : vector<64x1xi1> to vector<64x64xi1>
    %157 = vector.broadcast %cst_97 : f32 to vector<64x64xf32>
    %158 = arith.select %156, %152, %157 : vector<64x64xi1>, vector<64x64xf32>
    %159 = arith.addf %148, %158 : vector<64x64xf32>
    %c8_98 = arith.constant 8 : index
    %c0_99 = arith.constant 0 : index
    %160 = vector.load %arg13[%c8_98, %c0_99] : memref<96x32xf32, #tpu.memory_space<vmem>>, vector<64x32xf32>
    %c1_100 = arith.constant 1 : index
    %c0_101 = arith.constant 0 : index
    %c0_102 = arith.constant 0 : index
    %161 = vector.load %arg4[%c1_100, %c0_101, %c0_102] : memref<9x32x64xf32, #tpu.memory_space<vmem>>, vector<1x32x64xf32>
    %162 = vector.shape_cast %161 : vector<1x32x64xf32> to vector<32x64xf32>
    %cst_103 = arith.constant dense<0.000000e+00> : vector<64x64xf32>
    %163 = tpu.matmul %160, %162, %cst_103 {dimension_numbers = #tpu.dot_dimension_numbers<[1], [0], [0], [1], [0, 0, 1, 1], [], []>} : vector<64x32xf32>, vector<32x64xf32>, vector<64x64xf32> -> vector<64x64xf32>
    %164 = arith.addf %159, %163 : vector<64x64xf32>
    %c9_104 = arith.constant 9 : index
    %c0_105 = arith.constant 0 : index
    %165 = vector.load %arg13[%c9_104, %c0_105] : memref<96x32xf32, #tpu.memory_space<vmem>>, vector<64x32xf32>
    %c2_106 = arith.constant 2 : index
    %c0_107 = arith.constant 0 : index
    %c0_108 = arith.constant 0 : index
    %166 = vector.load %arg4[%c2_106, %c0_107, %c0_108] : memref<9x32x64xf32, #tpu.memory_space<vmem>>, vector<1x32x64xf32>
    %167 = vector.shape_cast %166 : vector<1x32x64xf32> to vector<32x64xf32>
    %cst_109 = arith.constant dense<0.000000e+00> : vector<64x64xf32>
    %168 = tpu.matmul %165, %167, %cst_109 {dimension_numbers = #tpu.dot_dimension_numbers<[1], [0], [0], [1], [0, 0, 1, 1], [], []>} : vector<64x32xf32>, vector<32x64xf32>, vector<64x64xf32> -> vector<64x64xf32>
    %c6_i32 = arith.constant 6 : i32
    %169 = vector.broadcast %c6_i32 : i32 to vector<64x1xi32>
    %170 = arith.cmpi sle, %147, %169 : vector<64x1xi32>
    %cst_110 = arith.constant 0.000000e+00 : f32
    %171 = vector.shape_cast %170 : vector<64x1xi1> to vector<64x1xi1>
    %172 = vector.broadcast %171 : vector<64x1xi1> to vector<64x64xi1>
    %173 = vector.broadcast %cst_110 : f32 to vector<64x64xf32>
    %174 = arith.select %172, %168, %173 : vector<64x64xi1>, vector<64x64xf32>
    %175 = arith.addf %164, %174 : vector<64x64xf32>
    %c15 = arith.constant 15 : index
    %c0_111 = arith.constant 0 : index
    %176 = vector.load %arg13[%c15, %c0_111] : memref<96x32xf32, #tpu.memory_space<vmem>>, vector<64x32xf32>
    %c3_112 = arith.constant 3 : index
    %c0_113 = arith.constant 0 : index
    %c0_114 = arith.constant 0 : index
    %177 = vector.load %arg4[%c3_112, %c0_113, %c0_114] : memref<9x32x64xf32, #tpu.memory_space<vmem>>, vector<1x32x64xf32>
    %178 = vector.shape_cast %177 : vector<1x32x64xf32> to vector<32x64xf32>
    %cst_115 = arith.constant dense<0.000000e+00> : vector<64x64xf32>
    %179 = tpu.matmul %176, %178, %cst_115 {dimension_numbers = #tpu.dot_dimension_numbers<[1], [0], [0], [1], [0, 0, 1, 1], [], []>} : vector<64x32xf32>, vector<32x64xf32>, vector<64x64xf32> -> vector<64x64xf32>
    %c1_i32_116 = arith.constant 1 : i32
    %180 = vector.broadcast %c1_i32_116 : i32 to vector<64x1xi32>
    %181 = arith.cmpi sge, %147, %180 : vector<64x1xi32>
    %cst_117 = arith.constant 0.000000e+00 : f32
    %182 = vector.shape_cast %181 : vector<64x1xi1> to vector<64x1xi1>
    %183 = vector.broadcast %182 : vector<64x1xi1> to vector<64x64xi1>
    %184 = vector.broadcast %cst_117 : f32 to vector<64x64xf32>
    %185 = arith.select %183, %179, %184 : vector<64x64xi1>, vector<64x64xf32>
    %186 = arith.addf %175, %185 : vector<64x64xf32>
    %c16_118 = arith.constant 16 : index
    %c0_119 = arith.constant 0 : index
    %187 = vector.load %arg13[%c16_118, %c0_119] : memref<96x32xf32, #tpu.memory_space<vmem>>, vector<64x32xf32>
    %c4_120 = arith.constant 4 : index
    %c0_121 = arith.constant 0 : index
    %c0_122 = arith.constant 0 : index
    %188 = vector.load %arg4[%c4_120, %c0_121, %c0_122] : memref<9x32x64xf32, #tpu.memory_space<vmem>>, vector<1x32x64xf32>
    %189 = vector.shape_cast %188 : vector<1x32x64xf32> to vector<32x64xf32>
    %cst_123 = arith.constant dense<0.000000e+00> : vector<64x64xf32>
    %190 = tpu.matmul %187, %189, %cst_123 {dimension_numbers = #tpu.dot_dimension_numbers<[1], [0], [0], [1], [0, 0, 1, 1], [], []>} : vector<64x32xf32>, vector<32x64xf32>, vector<64x64xf32> -> vector<64x64xf32>
    %191 = arith.addf %186, %190 : vector<64x64xf32>
    %c17 = arith.constant 17 : index
    %c0_124 = arith.constant 0 : index
    %192 = vector.load %arg13[%c17, %c0_124] : memref<96x32xf32, #tpu.memory_space<vmem>>, vector<64x32xf32>
    %c5_125 = arith.constant 5 : index
    %c0_126 = arith.constant 0 : index
    %c0_127 = arith.constant 0 : index
    %193 = vector.load %arg4[%c5_125, %c0_126, %c0_127] : memref<9x32x64xf32, #tpu.memory_space<vmem>>, vector<1x32x64xf32>
    %194 = vector.shape_cast %193 : vector<1x32x64xf32> to vector<32x64xf32>
    %cst_128 = arith.constant dense<0.000000e+00> : vector<64x64xf32>
    %195 = tpu.matmul %192, %194, %cst_128 {dimension_numbers = #tpu.dot_dimension_numbers<[1], [0], [0], [1], [0, 0, 1, 1], [], []>} : vector<64x32xf32>, vector<32x64xf32>, vector<64x64xf32> -> vector<64x64xf32>
    %c6_i32_129 = arith.constant 6 : i32
    %196 = vector.broadcast %c6_i32_129 : i32 to vector<64x1xi32>
    %197 = arith.cmpi sle, %147, %196 : vector<64x1xi32>
    %cst_130 = arith.constant 0.000000e+00 : f32
    %198 = vector.shape_cast %197 : vector<64x1xi1> to vector<64x1xi1>
    %199 = vector.broadcast %198 : vector<64x1xi1> to vector<64x64xi1>
    %200 = vector.broadcast %cst_130 : f32 to vector<64x64xf32>
    %201 = arith.select %199, %195, %200 : vector<64x64xi1>, vector<64x64xf32>
    %202 = arith.addf %191, %201 : vector<64x64xf32>
    %c23_131 = arith.constant 23 : index
    %c0_132 = arith.constant 0 : index
    %203 = vector.load %arg13[%c23_131, %c0_132] : memref<96x32xf32, #tpu.memory_space<vmem>>, vector<64x32xf32>
    %c6_133 = arith.constant 6 : index
    %c0_134 = arith.constant 0 : index
    %c0_135 = arith.constant 0 : index
    %204 = vector.load %arg4[%c6_133, %c0_134, %c0_135] : memref<9x32x64xf32, #tpu.memory_space<vmem>>, vector<1x32x64xf32>
    %205 = vector.shape_cast %204 : vector<1x32x64xf32> to vector<32x64xf32>
    %cst_136 = arith.constant dense<0.000000e+00> : vector<64x64xf32>
    %206 = tpu.matmul %203, %205, %cst_136 {dimension_numbers = #tpu.dot_dimension_numbers<[1], [0], [0], [1], [0, 0, 1, 1], [], []>} : vector<64x32xf32>, vector<32x64xf32>, vector<64x64xf32> -> vector<64x64xf32>
    %c1_i32_137 = arith.constant 1 : i32
    %207 = vector.broadcast %c1_i32_137 : i32 to vector<64x1xi32>
    %208 = arith.cmpi sge, %147, %207 : vector<64x1xi32>
    %cst_138 = arith.constant 0.000000e+00 : f32
    %209 = vector.shape_cast %208 : vector<64x1xi1> to vector<64x1xi1>
    %210 = vector.broadcast %209 : vector<64x1xi1> to vector<64x64xi1>
    %211 = vector.broadcast %cst_138 : f32 to vector<64x64xf32>
    %212 = arith.select %210, %206, %211 : vector<64x64xi1>, vector<64x64xf32>
    %213 = arith.addf %202, %212 : vector<64x64xf32>
    %c24_139 = arith.constant 24 : index
    %c0_140 = arith.constant 0 : index
    %214 = vector.load %arg13[%c24_139, %c0_140] : memref<96x32xf32, #tpu.memory_space<vmem>>, vector<64x32xf32>
    %c7_141 = arith.constant 7 : index
    %c0_142 = arith.constant 0 : index
    %c0_143 = arith.constant 0 : index
    %215 = vector.load %arg4[%c7_141, %c0_142, %c0_143] : memref<9x32x64xf32, #tpu.memory_space<vmem>>, vector<1x32x64xf32>
    %216 = vector.shape_cast %215 : vector<1x32x64xf32> to vector<32x64xf32>
    %cst_144 = arith.constant dense<0.000000e+00> : vector<64x64xf32>
    %217 = tpu.matmul %214, %216, %cst_144 {dimension_numbers = #tpu.dot_dimension_numbers<[1], [0], [0], [1], [0, 0, 1, 1], [], []>} : vector<64x32xf32>, vector<32x64xf32>, vector<64x64xf32> -> vector<64x64xf32>
    %218 = arith.addf %213, %217 : vector<64x64xf32>
    %c25_145 = arith.constant 25 : index
    %c0_146 = arith.constant 0 : index
    %219 = vector.load %arg13[%c25_145, %c0_146] : memref<96x32xf32, #tpu.memory_space<vmem>>, vector<64x32xf32>
    %c8_147 = arith.constant 8 : index
    %c0_148 = arith.constant 0 : index
    %c0_149 = arith.constant 0 : index
    %220 = vector.load %arg4[%c8_147, %c0_148, %c0_149] : memref<9x32x64xf32, #tpu.memory_space<vmem>>, vector<1x32x64xf32>
    %221 = vector.shape_cast %220 : vector<1x32x64xf32> to vector<32x64xf32>
    %cst_150 = arith.constant dense<0.000000e+00> : vector<64x64xf32>
    %222 = tpu.matmul %219, %221, %cst_150 {dimension_numbers = #tpu.dot_dimension_numbers<[1], [0], [0], [1], [0, 0, 1, 1], [], []>} : vector<64x32xf32>, vector<32x64xf32>, vector<64x64xf32> -> vector<64x64xf32>
    %c6_i32_151 = arith.constant 6 : i32
    %223 = vector.broadcast %c6_i32_151 : i32 to vector<64x1xi32>
    %224 = arith.cmpi sle, %147, %223 : vector<64x1xi32>
    %cst_152 = arith.constant 0.000000e+00 : f32
    %225 = vector.shape_cast %224 : vector<64x1xi1> to vector<64x1xi1>
    %226 = vector.broadcast %225 : vector<64x1xi1> to vector<64x64xi1>
    %227 = vector.broadcast %cst_152 : f32 to vector<64x64xf32>
    %228 = arith.select %226, %222, %227 : vector<64x64xi1>, vector<64x64xf32>
    %229 = arith.addf %218, %228 : vector<64x64xf32>
    %c0_153 = arith.constant 0 : index
    %c0_154 = arith.constant 0 : index
    %230 = vector.load %arg5[%c0_153, %c0_154] : memref<1x64xf32, #tpu.memory_space<vmem>>, vector<1x64xf32>
    %231 = vector.broadcast %230 : vector<1x64xf32> to vector<64x64xf32>
    %232 = arith.addf %229, %231 : vector<64x64xf32>
    %cst_155 = arith.constant 0.000000e+00 : f32
    %233 = vector.broadcast %cst_155 : f32 to vector<64x64xf32>
    %234 = arith.maximumf %232, %233 : vector<64x64xf32>
    %c0_156 = arith.constant 0 : index
    %c0_157 = arith.constant 0 : index
    %c0_158 = arith.constant 0 : index
    %235 = vector.load %arg7[%c0_156, %c0_157, %c0_158] : memref<4x16x64xf32, #tpu.memory_space<vmem>>, vector<1x16x64xf32>
    %236 = vector.shape_cast %235 : vector<1x16x64xf32> to vector<16x64xf32>
    %cst_159 = arith.constant dense<0.000000e+00> : vector<16x64xf32>
    %237 = tpu.matmul %236, %234, %cst_159 {dimension_numbers = #tpu.dot_dimension_numbers<[1], [0], [0], [1], [0, 0, 1, 1], [], []>} : vector<16x64xf32>, vector<64x64xf32>, vector<16x64xf32> -> vector<16x64xf32>
    %c1_160 = arith.constant 1 : index
    %c0_161 = arith.constant 0 : index
    %c0_162 = arith.constant 0 : index
    %238 = vector.load %arg7[%c1_160, %c0_161, %c0_162] : memref<4x16x64xf32, #tpu.memory_space<vmem>>, vector<1x16x64xf32>
    %239 = vector.shape_cast %238 : vector<1x16x64xf32> to vector<16x64xf32>
    %cst_163 = arith.constant dense<0.000000e+00> : vector<16x64xf32>
    %240 = tpu.matmul %239, %234, %cst_163 {dimension_numbers = #tpu.dot_dimension_numbers<[1], [0], [0], [1], [0, 0, 1, 1], [], []>} : vector<16x64xf32>, vector<64x64xf32>, vector<16x64xf32> -> vector<16x64xf32>
    %c2_164 = arith.constant 2 : index
    %c0_165 = arith.constant 0 : index
    %c0_166 = arith.constant 0 : index
    %241 = vector.load %arg7[%c2_164, %c0_165, %c0_166] : memref<4x16x64xf32, #tpu.memory_space<vmem>>, vector<1x16x64xf32>
    %242 = vector.shape_cast %241 : vector<1x16x64xf32> to vector<16x64xf32>
    %cst_167 = arith.constant dense<0.000000e+00> : vector<16x64xf32>
    %243 = tpu.matmul %242, %234, %cst_167 {dimension_numbers = #tpu.dot_dimension_numbers<[1], [0], [0], [1], [0, 0, 1, 1], [], []>} : vector<16x64xf32>, vector<64x64xf32>, vector<16x64xf32> -> vector<16x64xf32>
    %c3_168 = arith.constant 3 : index
    %c0_169 = arith.constant 0 : index
    %c0_170 = arith.constant 0 : index
    %244 = vector.load %arg7[%c3_168, %c0_169, %c0_170] : memref<4x16x64xf32, #tpu.memory_space<vmem>>, vector<1x16x64xf32>
    %245 = vector.shape_cast %244 : vector<1x16x64xf32> to vector<16x64xf32>
    %cst_171 = arith.constant dense<0.000000e+00> : vector<16x64xf32>
    %246 = tpu.matmul %245, %234, %cst_171 {dimension_numbers = #tpu.dot_dimension_numbers<[1], [0], [0], [1], [0, 0, 1, 1], [], []>} : vector<16x64xf32>, vector<64x64xf32>, vector<16x64xf32> -> vector<16x64xf32>
    %247 = arith.maximumf %237, %240 : vector<16x64xf32>
    %248 = arith.maximumf %243, %246 : vector<16x64xf32>
    %249 = arith.maximumf %247, %248 : vector<16x64xf32>
    %c0_172 = arith.constant 0 : index
    %c0_173 = arith.constant 0 : index
    %250 = vector.load %arg8[%c0_172, %c0_173] : memref<1x64xf32, #tpu.memory_space<vmem>>, vector<1x64xf32>
    %cst_174 = arith.constant dense<0.000000e+00> : vector<1x16xf32>
    %251 = tpu.matmul %250, %249, %cst_174 {dimension_numbers = #tpu.dot_dimension_numbers<[1], [1], [0], [0], [0, 0, 1, 0], [], []>} : vector<1x64xf32>, vector<16x64xf32>, vector<1x16xf32> -> vector<1x16xf32>
    %c0_175 = arith.constant 0 : index
    %c0_176 = arith.constant 0 : index
    %252 = vector.load %arg9[%c0_175, %c0_176] : memref<1x1xf32, #tpu.memory_space<vmem>>, vector<1x1xf32>
    %253 = vector.broadcast %252 : vector<1x1xf32> to vector<1x16xf32>
    %254 = arith.addf %251, %253 : vector<1x16xf32>
    %cst_177 = arith.constant dense<0xFF800000> : vector<1xf32>
    %255 = vector.multi_reduction <maximumf>, %254, %cst_177 [1] : vector<1x16xf32> to vector<1xf32>
    %256 = vector.shape_cast %255 : vector<1xf32> to vector<1x1xf32>
    %257 = vector.broadcast %256 : vector<1x1xf32> to vector<1x16xf32>
    %258 = arith.subf %254, %257 : vector<1x16xf32>
    %259 = math.exp %258 : vector<1x16xf32>
    %cst_178 = arith.constant dense<0.000000e+00> : vector<1xf32>
    %260 = vector.multi_reduction <add>, %259, %cst_178 [1] : vector<1x16xf32> to vector<1xf32>
    %261 = vector.shape_cast %260 : vector<1xf32> to vector<1x1xf32>
    %262 = tpu.reciprocal %261 {approx = true} : vector<1x1xf32> -> vector<1x1xf32>
    %263 = vector.broadcast %262 : vector<1x1xf32> to vector<1x16xf32>
    %264 = arith.mulf %259, %263 : vector<1x16xf32>
    %c0_179 = arith.constant 0 : index
    %c0_180 = arith.constant 0 : index
    %265 = vector.load %arg10[%c0_179, %c0_180] : memref<16x4xf32, #tpu.memory_space<vmem>>, vector<16x4xf32>
    %cst_181 = arith.constant dense<0.000000e+00> : vector<1x4xf32>
    %266 = tpu.matmul %264, %265, %cst_181 {dimension_numbers = #tpu.dot_dimension_numbers<[1], [0], [0], [1], [0, 0, 1, 1], [], []>} : vector<1x16xf32>, vector<16x4xf32>, vector<1x4xf32> -> vector<1x4xf32>
    %c0_182 = arith.constant 0 : index
    %c0_183 = arith.constant 0 : index
    %267 = vector.load %arg11[%c0_182, %c0_183] : memref<2x4xf32, #tpu.memory_space<vmem>>, vector<2x4xf32>
    %268 = vector.broadcast %266 : vector<1x4xf32> to vector<2x4xf32>
    %269 = arith.mulf %267, %268 : vector<2x4xf32>
    %270 = vector.shape_cast %269 : vector<2x4xf32> to vector<1x2x4xf32>
    %c0_184 = arith.constant 0 : index
    %c0_185 = arith.constant 0 : index
    %c0_186 = arith.constant 0 : index
    %271 = vector.load %arg12[%c0_184, %c0_185, %c0_186] : memref<1x2x4xf32, #tpu.memory_space<vmem>>, vector<1x2x4xf32>
    tpu.vector_store %arg12[%c0_184, %c0_185, %c0_186], %270 {strides = array<i32>} : memref<1x2x4xf32, #tpu.memory_space<vmem>>, vector<1x2x4xf32>,
    return
  }
  func.func @transform_0(%arg0: i32) -> (i32, i32, i32) {
    %c0_i32 = arith.constant 0 : i32
    %c0_i32_0 = arith.constant 0 : i32
    %c0_i32_1 = arith.constant 0 : i32
    return %arg0, %c0_i32, %c0_i32_0 : i32, i32, i32
  }
  func.func @transform_1(%arg0: i32) -> (i32, i32, i32) {
    %c0_i32 = arith.constant 0 : i32
    %c0_i32_0 = arith.constant 0 : i32
    %c0_i32_1 = arith.constant 0 : i32
    %c0_i32_2 = arith.constant 0 : i32
    return %c0_i32, %c0_i32_0, %c0_i32_1 : i32, i32, i32
  }
  func.func @transform_2(%arg0: i32) -> (i32, i32) {
    %c0_i32 = arith.constant 0 : i32
    %c0_i32_0 = arith.constant 0 : i32
    %c0_i32_1 = arith.constant 0 : i32
    return %c0_i32, %c0_i32_0 : i32, i32
  }
  func.func @transform_3(%arg0: i32) -> (i32, i32, i32) {
    %c0_i32 = arith.constant 0 : i32
    %c0_i32_0 = arith.constant 0 : i32
    %c0_i32_1 = arith.constant 0 : i32
    %c0_i32_2 = arith.constant 0 : i32
    return %c0_i32, %c0_i32_0, %c0_i32_1 : i32, i32, i32
  }
  func.func @transform_4(%arg0: i32) -> (i32, i32) {
    %c0_i32 = arith.constant 0 : i32
    %c0_i32_0 = arith.constant 0 : i32
    %c0_i32_1 = arith.constant 0 : i32
    return %c0_i32, %c0_i32_0 : i32, i32
  }
  func.func @transform_5(%arg0: i32) -> (i32, i32, i32) {
    %c0_i32 = arith.constant 0 : i32
    %c0_i32_0 = arith.constant 0 : i32
    %c0_i32_1 = arith.constant 0 : i32
    %c0_i32_2 = arith.constant 0 : i32
    return %c0_i32, %c0_i32_0, %c0_i32_1 : i32, i32, i32
  }
  func.func @transform_6(%arg0: i32) -> (i32, i32, i32) {
    %c0_i32 = arith.constant 0 : i32
    %c0_i32_0 = arith.constant 0 : i32
    %c0_i32_1 = arith.constant 0 : i32
    %c0_i32_2 = arith.constant 0 : i32
    return %c0_i32, %c0_i32_0, %c0_i32_1 : i32, i32, i32
  }
  func.func @transform_7(%arg0: i32) -> (i32, i32) {
    %c0_i32 = arith.constant 0 : i32
    %c0_i32_0 = arith.constant 0 : i32
    %c0_i32_1 = arith.constant 0 : i32
    return %c0_i32, %c0_i32_0 : i32, i32
  }
  func.func @transform_8(%arg0: i32) -> (i32, i32) {
    %c0_i32 = arith.constant 0 : i32
    %c0_i32_0 = arith.constant 0 : i32
    %c0_i32_1 = arith.constant 0 : i32
    return %c0_i32, %c0_i32_0 : i32, i32
  }
  func.func @transform_9(%arg0: i32) -> (i32, i32) {
    %c0_i32 = arith.constant 0 : i32
    %c0_i32_0 = arith.constant 0 : i32
    %c0_i32_1 = arith.constant 0 : i32
    return %c0_i32, %c0_i32_0 : i32, i32
  }
  func.func @transform_10(%arg0: i32) -> (i32, i32) {
    %c0_i32 = arith.constant 0 : i32
    %c0_i32_0 = arith.constant 0 : i32
    %c0_i32_1 = arith.constant 0 : i32
    return %c0_i32, %c0_i32_0 : i32, i32
  }
  func.func @transform_11(%arg0: i32) -> (i32, i32, i32) {
    %c0_i32 = arith.constant 0 : i32
    %c0_i32_0 = arith.constant 0 : i32
    %c0_i32_1 = arith.constant 0 : i32
    return %arg0, %c0_i32, %c0_i32_0 : i32, i32, i32
  }
}

</mosaic_0001>

<bundles_post_ra>
// kernel: planner_forward.1
= control target key start
LH: loop header
LB: loop body
LE: loop exit
PB: predicated region body
PF: predicated region fallthrough
CT: control target
= control target key end

     0   :  { %s12763_s0 = inlined_call_operand.vmem [shape: f32[2,304,3], index: 0, kind: input, shape index: {}]   ;;  %s12764_s1 = inlined_call_operand.vmem [shape: f32[9,3,32], index: 1, kind: input, shape index: {}]   ;;  %s12765_s2 = inlined_call_operand.vmem [shape: f32[1,32], index: 2, kind: input, shape index: {}]   ;;  %s12766_s3 = inlined_call_operand.vmem [shape: f32[9,32,64], index: 3, kind: input, shape index: {}]   ;;  %s12767_s4 = inlined_call_operand.vmem [shape: f32[1,64], index: 4, kind: input, shape index: {}]   ;;  %s12768_s5 = inlined_call_operand.vmem [shape: f32[4,64,256], index: 5, kind: input, shape index: {}]   ;;  %s12769_s6 = inlined_call_operand.vmem [shape: f32[4,16,64], index: 6, kind: input, shape index: {}]   ;;  %s12770_s7 = inlined_call_operand.vmem [shape: f32[1,64], index: 7, kind: input, shape index: {}]   ;;  %s12771_s8 = inlined_call_operand.<no memory space> [shape: f32[1,1], index: 8, kind: input, shape index: {}]   ;;  %s12772_s9 = inlined_call_operand.vmem [shape: f32[16,4], index: 9, kind: input, shape index: {}]   ;;  %s12773_s10 = inlined_call_operand.vmem [shape: f32[2,4], index: 10, kind: input, shape index: {}]   ;;  %s12774_s11 = inlined_call_operand.hbm [shape: f32[2,2,4], index: 11, kind: output, shape index: {}]  }
   0x1   :  { %12868 = sst [smem:[#allocation94_spill]] %s12763_s0  ;;  %v16_v0 = vstv %s12771_s8 }
   0x2   :  { %17 = vst [vmem:[#allocation3] sm:$0x1] %v16_v0 }
   0x3   :  { %18 = vsyncpa [#allocation5], 0 }
   0x4   :  { %20 = vsyncpa [#allocation5 + $0x1], 0  ;;  %s9526_s19 = smov 0   ;;  %s9528_s20 = smov 0  }
   0x5   :  { %s9530_s21 = smov 0   ;;  %s9532_s22 = smov 0  }
   0x6 LB: > { %s9547_s8 = sadd.s32 4294967295, %s9457_s22   ;;  %s7467_s23 = sadd.s32 4294967294, %s9457_s22   ;;  %s9457_s22 = sphi %s9532_s22, %s13319_s22   ;;  %s9453_s21 = sphi %s9530_s21, %s13318_s21   ;;  %s9449_s20 = sphi %s9528_s20, %s13317_s20   ;;  %s9445_s19 = sphi %s9526_s19, %s13316_s19  }
   0x7   : > { %s9551_s24 = sadd.s32 1, %s9457_s22   ;;  %s269_s25 = sadd.s32 1, %s9453_s21 }
   0x8   : > { %s266_s26 = ssub.s32 %s9457_s22, %s9551_s24  ;;  %p279_p0 = scmp.ne.s32.totalorder %s9453_s21, %s9449_s20 }
   0x9   : > { %p267_p1 = scmp.eq.s32.totalorder %s266_s26, 0  ;;  %p280_p2 = scmp.eq.s32.totalorder %s9547_s8, 1 }
   0xa   : > { %p285_p3 = scmp.ne.s32.totalorder %s9449_s20, %s9445_s19  ;;  %p286_p4 = scmp.eq.s32.totalorder %s7467_s23, 1 }
   0xb   : > { %s9562_s27 = scalar_select %p267_p1, %s9453_s21, %s269_s25  }
   0xc   : > { %p9564_p5 = por %p280_p2, %p279_p0  ;;  %p9568_p6 = por %p286_p4, %p285_p3 }
   0xd   : > { %p7470_p7 = scmp.ge.s32.totalorder %s9457_s22, 1  ;;  %p342_p8 = scmp.lt.s32.totalorder %s9457_s22, 3 }
   0xf   : > { %p343_p9 = pnand %p7470_p7, %p342_p8 }
  0x11   : > { %346 = sbr.rel (%p343_p9) target bundleno = 2096 (0x830), region = 64 }
  0x16   : > { %v836_v1 = vld [vmem:[%s12764_s1] sm:$0x7]  ;;  %vm934_vm0 = vcmask 1042432   ;;  %v7506_v2 = vld [vmem:[%s12764_s1 + $0x4] sm:$0x7]  ;;  %p382_p10 = scmp.lt.s32.totalorder %s9547_s8, 1 }
  0x17   : > { %8629 = vmatprep.subr.msk.mxu0 %vm934_vm0, %v836_v1  ;;  %8679 = vmatprep.subr.msk.mxu1 %vm934_vm0, %v7506_v2  ;;  %v7540_v3 = vld [vmem:[%s12764_s1 + $0x8] sm:$0x7]  ;;  %v7574_v4 = vld [vmem:[%s12764_s1 + $0xc] sm:$0x7]  ;;  %vm837_vm1 = vcmask 23552   ;;  %s12871_s0 = sld [smem:[#allocation94_spill]] }
  0x18   : > { %8630 = vmatpush3.msk.msra.mxu0 %vm934_vm0, %v836_v1  ;;  %s383_s23 = scalar_select %p382_p10, %s9547_s8, 1  ;;  %8680 = vmatpush3.msk.msra.mxu1 %vm934_vm0, %v7506_v2  ;;  %v9616_v11 = vld [vmem:[%s12764_s1 + $0x10] sm:$0x7]  ;;  %v9621_v12 = vld [vmem:[%s12764_s1 + $0x14] sm:$0x7] }
  0x19   : > { %8729 = vmatprep.subr.msk.mxu0 %vm934_vm0, %v7540_v3  ;;  %8779 = vmatprep.subr.msk.mxu1 %vm934_vm0, %v7574_v4  ;;  %s379_s18 = sand.u32 1, %s9449_s20   ;;  %s7951_s30 = sshll.u32 %s9547_s8, 5 }
  0x1a   : > { %s9349_s25 = smul.u32 304, %s383_s23  ;;  %s7471_s23 = sshll.u32 %s379_s18, 1 }
  0x1b   : > { %s7406_s16 = scalar_lea.hbm %s12774_s11, %s7951_s30  ;;  %s7395_s17 = scalar_lea.sflag [#allocation5], %s379_s18 }
  0x1d   : > { %s9597_s12 = scalar_lea.vmem %s12871_s0, %s9349_s25  ;;  %s9462_s25 = smov [#allocation4]  }
  0x1e   : > { %v804_v5 = vld [vmem:[%s9597_s12 + $0x7] sm:$0xff]  ;;  %v805_v7 = vld [vmem:[%s9597_s12 + $0xf] sm:$0xff]  ;;  %v9606_v9 = vld [vmem:[%s9597_s12 + $0x17] sm:$0xff]  ;;  %s9401_s8 = sshll.u32 %s9462_s25, 4  ;;  %s9402_s8 = int_to_ptr.vmem [resolvable:$false] %s9401_s8 }
  0x1f   : > { %v1323_v6 = vld [vmem:[%s9597_s12 + $0x8] sm:$0xff]  ;;  %8631 = vmatprep.mubr.msk.f32.mxu0 %vm837_vm1, %v804_v5  ;;  %v1324_v8 = vld [vmem:[%s9597_s12 + $0x10] sm:$0xff]  ;;  %v9609_v10 = vld [vmem:[%s9597_s12 + $0x18] sm:$0xff] }
  0x20   : > { %8681 = vmatprep.mubr.msk.f32.mxu1 %vm837_vm1, %v1323_v6  ;;  %8632 = vmatmul.mubr.msk.f32.vlgmr.msra.gmra.mxu0 %vm837_vm1, %v805_v7  ;;  %v9628_v13 = vld [vmem:[%s9597_s12 + $0x1f] sm:$0xff]  ;;  %v9634_v15 = vld [vmem:[%s9597_s12 + $0x27] sm:$0xff]  ;;  %v9654_v17 = vld [vmem:[%s9597_s12 + $0x2f] sm:$0xff] }
  0x21   : > { %8682 = vmatmul.mubr.msk.f32.vlgmr.msra.gmra.mxu1 %vm837_vm1, %v1324_v8  ;;  %8634 = vmatprep.mubr.msk.f32.mxu0 %vm837_vm1, %v9606_v9  ;;  %v9631_v14 = vld [vmem:[%s9597_s12 + $0x20] sm:$0xff]  ;;  %12872 = vst [vmem:[#allocation7_spill] sm:$0xff] %v9634_v15  ;;  %v9637_v16 = vld [vmem:[%s9597_s12 + $0x28] sm:$0xff]  ;;  %12873 = vst [vmem:[#allocation8_spill] sm:$0xff] %v9654_v17 }
  0x22   : > { %8684 = vmatprep.mubr.msk.f32.mxu1 %vm837_vm1, %v9609_v10  ;;  %8730 = vmatpush3.msk.msra.mxu0 %vm934_vm0, %v7540_v3  ;;  %v9657_v18 = vld [vmem:[%s9597_s12 + $0x30] sm:$0xff]  ;;  %v9663_v20 = vld [vmem:[%s9597_s12 + $0x38] sm:$0xff]  ;;  %v9677_v22 = vld [vmem:[%s9597_s12 + $0x40] sm:$0xff] }
  0x23   : > { %8780 = vmatpush3.msk.msra.mxu1 %vm934_vm0, %v7574_v4  ;;  %8829 = vmatprep.subr.msk.mxu0 %vm934_vm0, %v9616_v11  ;;  %v9660_v19 = vld [vmem:[%s9597_s12 + $0x37] sm:$0xff]  ;;  %v9674_v21 = vld [vmem:[%s9597_s12 + $0x3f] sm:$0xff]  ;;  %v9680_v23 = vld [vmem:[%s9597_s12 + $0x47] sm:$0xff] }
  0x24   : > { %8879 = vmatprep.subr.msk.mxu1 %vm934_vm0, %v9621_v12  ;;  %8635 = vmatmul.mubr.msk.f32.gmra.mxu0 %vm837_vm1, %v9628_v13  ;;  %12874 = vst [vmem:[#allocation9_spill] sm:$0xff] %v9660_v19  ;;  %12875 = vst [vmem:[#allocation10_spill] sm:$0xff] %v9674_v21  ;;  %v9683_v24 = vld [vmem:[%s9597_s12 + $0x48] sm:$0xff]  ;;  %v9697_v26 = vld [vmem:[%s9597_s12 + $0x50] sm:$0xff] }
  0x25   : > { %8685 = vmatmul.mubr.msk.f32.gmra.mxu1 %vm837_vm1, %v9631_v14  ;;  %8637 = vmatprep.mubr.msk.f32.mxu0 %vm837_vm1, %v9634_v15  ;;  %12876 = vst [vmem:[#allocation11_spill] sm:$0xff] %v9680_v23  ;;  %v9694_v25 = vld [vmem:[%s9597_s12 + $0x4f] sm:$0xff]  ;;  %v9700_v27 = vld [vmem:[%s9597_s12 + $0x57] sm:$0xff]  ;;  %v9714_v29 = vld [vmem:[%s9597_s12 + $0x5f] sm:$0xff] }
  0x26   : > { %8687 = vmatprep.mubr.msk.f32.mxu1 %vm837_vm1, %v9637_v16  ;;  %12877 = vst [vmem:[#allocation12_spill] sm:$0xff] %v9694_v25  ;;  %12878 = vst [vmem:[#allocation13_spill] sm:$0xff] %v9700_v27  ;;  %v9703_v28 = vld [vmem:[%s9597_s12 + $0x58] sm:$0xff]  ;;  %v9717_v30 = vld [vmem:[%s9597_s12 + $0x60] sm:$0xff] }
  0x27   : > { %12879 = vst [vmem:[#allocation14_spill] sm:$0xff] %v9714_v29  ;;  %v9720_v31 = vld [vmem:[%s9597_s12 + $0x67] sm:$0xff]  ;;  %v9734_v33 = vld [vmem:[%s9597_s12 + $0x6f] sm:$0xff]  ;;  %v9740_v35 = vld [vmem:[%s9597_s12 + $0x77] sm:$0xff] }
  0x28   : > { %8638 = vmatmul.mubr.msk.f32.gmra.mxu0 %vm837_vm1, %v9654_v17  ;;  %12880 = vst [vmem:[#allocation15_spill] sm:$0xff] %v9720_v31  ;;  %v9723_v32 = vld [vmem:[%s9597_s12 + $0x68] sm:$0xff]  ;;  %12881 = vst [vmem:[#allocation16_spill] sm:$0xff] %v9734_v33  ;;  %v9737_v34 = vld [vmem:[%s9597_s12 + $0x70] sm:$0xff] }
  0x29   : > { %8688 = vmatmul.mubr.msk.f32.gmra.mxu1 %vm837_vm1, %v9657_v18  ;;  %8640 = vmatprep.mubr.msk.f32.mxu0 %vm837_vm1, %v9660_v19  ;;  %12882 = vst [vmem:[#allocation17_spill] sm:$0xff] %v9740_v35  ;;  %v9743_v36 = vld [vmem:[%s9597_s12 + $0x78] sm:$0xff]  ;;  %v9757_v38 = vld [vmem:[%s9597_s12 + $0x80] sm:$0xff]  ;;  %v9763_v40 = vld [vmem:[%s9597_s12 + $0x88] sm:$0xff] }
  0x2a   : > { %8690 = vmatprep.mubr.msk.f32.mxu1 %vm837_vm1, %v9663_v20  ;;  %v9754_v37 = vld [vmem:[%s9597_s12 + $0x7f] sm:$0xff]  ;;  %v9760_v39 = vld [vmem:[%s9597_s12 + $0x87] sm:$0xff]  ;;  %v9774_v41 = vld [vmem:[%s9597_s12 + $0x8f] sm:$0xff] }
  0x2b   : > { %12883 = vst [vmem:[#allocation18_spill] sm:$0xff] %v9754_v37  ;;  %12884 = vst [vmem:[#allocation19_spill] sm:$0xff] %v9760_v39  ;;  %v9777_v42 = vld [vmem:[%s9597_s12 + $0x90] sm:$0xff]  ;;  %v9783_v44 = vld [vmem:[%s9597_s12 + $0x98] sm:$0xff] }
  0x2c   : > { %8641 = vmatmul.mubr.msk.f32.gmra.mxu0 %vm837_vm1, %v9674_v21  ;;  %12885 = vst [vmem:[#allocation20_spill] sm:$0xff] %v9774_v41  ;;  %v9780_v43 = vld [vmem:[%s9597_s12 + $0x97] sm:$0xff]  ;;  %v9794_v45 = vld [vmem:[%s9597_s12 + $0x9f] sm:$0xff]  ;;  %v9800_v47 = vld [vmem:[%s9597_s12 + $0xa7] sm:$0xff] }
  0x2d   : > { %8691 = vmatmul.mubr.msk.f32.gmra.mxu1 %vm837_vm1, %v9677_v22  ;;  %8643 = vmatprep.mubr.msk.f32.mxu0 %vm837_vm1, %v9680_v23  ;;  %12886 = vst [vmem:[#allocation21_spill] sm:$0xff] %v9780_v43  ;;  %12887 = vst [vmem:[#allocation22_spill] sm:$0xff] %v9794_v45  ;;  %v9797_v46 = vld [vmem:[%s9597_s12 + $0xa0] sm:$0xff]  ;;  %v9803_v48 = vld [vmem:[%s9597_s12 + $0xa8] sm:$0xff] }
  0x2e   : > { %8693 = vmatprep.mubr.msk.f32.mxu1 %vm837_vm1, %v9683_v24  ;;  %12888 = vst [vmem:[#allocation23_spill] sm:$0xff] %v9800_v47  ;;  %v9814_v49 = vld [vmem:[%s9597_s12 + $0xaf] sm:$0xff]  ;;  %v9820_v51 = vld [vmem:[%s9597_s12 + $0xb7] sm:$0xff]  ;;  %v9834_v53 = vld [vmem:[%s9597_s12 + $0xbf] sm:$0xff] }
  0x2f   : > { %12889 = vst [vmem:[#allocation24_spill] sm:$0xff] %v9814_v49  ;;  %v9817_v50 = vld [vmem:[%s9597_s12 + $0xb0] sm:$0xff]  ;;  %12890 = vst [vmem:[#allocation25_spill] sm:$0xff] %v9820_v51  ;;  %v9823_v52 = vld [vmem:[%s9597_s12 + $0xb8] sm:$0xff] }
  0x30   : > { %8644 = vmatmul.mubr.msk.f32.gmra.mxu0 %vm837_vm1, %v9694_v25  ;;  %12891 = vst [vmem:[#allocation26_spill] sm:$0xff] %v9834_v53  ;;  %v9837_v54 = vld [vmem:[%s9597_s12 + $0xc0] sm:$0xff]  ;;  %v9843_v56 = vld [vmem:[%s9597_s12 + $0xc8] sm:$0xff]  ;;  %v9857_v58 = vld [vmem:[%s9597_s12 + $0xd0] sm:$0xff] }
  0x31   : > { %8694 = vmatmul.mubr.msk.f32.gmra.mxu1 %vm837_vm1, %v9697_v26  ;;  %8646 = vmatprep.mubr.msk.f32.mxu0 %vm837_vm1, %v9700_v27  ;;  %v9840_v55 = vld [vmem:[%s9597_s12 + $0xc7] sm:$0xff]  ;;  %v9854_v57 = vld [vmem:[%s9597_s12 + $0xcf] sm:$0xff]  ;;  %v9860_v59 = vld [vmem:[%s9597_s12 + $0xd7] sm:$0xff] }
  0x32   : > { %8696 = vmatprep.mubr.msk.f32.mxu1 %vm837_vm1, %v9703_v28  ;;  %12892 = vst [vmem:[#allocation27_spill] sm:$0xff] %v9840_v55  ;;  %12893 = vst [vmem:[#allocation28_spill] sm:$0xff] %v9854_v57  ;;  %v9863_v60 = vld [vmem:[%s9597_s12 + $0xd8] sm:$0xff]  ;;  %v9877_v62 = vld [vmem:[%s9597_s12 + $0xe0] sm:$0xff] }
  0x33   : > { %12894 = vst [vmem:[#allocation29_spill] sm:$0xff] %v9860_v59  ;;  %v9874_v61 = vld [vmem:[%s9597_s12 + $0xdf] sm:$0xff]  ;;  %v9880_v63 = vld [vmem:[%s9597_s12 + $0xe7] sm:$0xff]  ;;  %v9894_v1 = vld [vmem:[%s9597_s12 + $0xef] sm:$0xff] }
  0x34   : > { %8647 = vmatmul.mubr.msk.f32.gmra.mxu0 %vm837_vm1, %v9714_v29  ;;  %12895 = vst [vmem:[#allocation30_spill] sm:$0xff] %v9874_v61  ;;  %12896 = vst [vmem:[#allocation31_spill] sm:$0xff] %v9880_v63  ;;  %v9883_v0 = vld [vmem:[%s9597_s12 + $0xe8] sm:$0xff]  ;;  %v9897_v2 = vld [vmem:[%s9597_s12 + $0xf0] sm:$0xff] }
  0x35   : > { %8697 = vmatmul.mubr.msk.f32.gmra.mxu1 %vm837_vm1, %v9717_v30  ;;  %8649 = vmatprep.mubr.msk.f32.mxu0 %vm837_vm1, %v9720_v31  ;;  %12897 = vst [vmem:[#allocation32_spill] sm:$0xff] %v9894_v1  ;;  %12898 = vst [vmem:[#allocation33_spill] sm:$0xff] %v9897_v2  ;;  %v9900_v3 = vld [vmem:[%s9597_s12 + $0xf7] sm:$0xff]  ;;  %v9914_v5 = vld [vmem:[%s9597_s12 + $0xff] sm:$0xff] }
  0x36   : > { %8699 = vmatprep.mubr.msk.f32.mxu1 %vm837_vm1, %v9723_v32  ;;  %v9903_v4 = vld [vmem:[%s9597_s12 + $0xf8] sm:$0xff]  ;;  %v9917_v6 = vld [vmem:[%s9597_s12 + $0x100] sm:$0xff]  ;;  %v1713_v7 = vld [vmem:[%s9597_s12 + $0x9] sm:$0xff] }
  0x37   : > { %12899 = vst [vmem:[#allocation34_spill] sm:$0xff] %v9903_v4  ;;  %v1714_v8 = vld [vmem:[%s9597_s12 + $0x11] sm:$0xff] }
  0x38   : > { %8650 = vmatmul.mubr.msk.f32.gmra.mxu0 %vm837_vm1, %v9734_v33 }
  0x39   : > { %8700 = vmatmul.mubr.msk.f32.gmra.mxu1 %vm837_vm1, %v9737_v34  ;;  %8652 = vmatprep.mubr.msk.f32.mxu0 %vm837_vm1, %v9740_v35 }
  0x3a   : > { %8702 = vmatprep.mubr.msk.f32.mxu1 %vm837_vm1, %v9743_v36 }
  0x3c   : > { %8653 = vmatmul.mubr.msk.f32.gmra.mxu0 %vm837_vm1, %v9754_v37 }
  0x3d   : > { %8703 = vmatmul.mubr.msk.f32.gmra.mxu1 %vm837_vm1, %v9757_v38  ;;  %8655 = vmatprep.mubr.msk.f32.mxu0 %vm837_vm1, %v9760_v39 }
  0x3e   : > { %8705 = vmatprep.mubr.msk.f32.mxu1 %vm837_vm1, %v9763_v40 }
  0x40   : > { %8656 = vmatmul.mubr.msk.f32.gmra.mxu0 %vm837_vm1, %v9774_v41 }
  0x41   : > { %8706 = vmatmul.mubr.msk.f32.gmra.mxu1 %vm837_vm1, %v9777_v42  ;;  %8658 = vmatprep.mubr.msk.f32.mxu0 %vm837_vm1, %v9780_v43 }
  0x42   : > { %8708 = vmatprep.mubr.msk.f32.mxu1 %vm837_vm1, %v9783_v44 }
  0x44   : > { %8659 = vmatmul.mubr.msk.f32.gmra.mxu0 %vm837_vm1, %v9794_v45 }
  0x45   : > { %8709 = vmatmul.mubr.msk.f32.gmra.mxu1 %vm837_vm1, %v9797_v46  ;;  %8661 = vmatprep.mubr.msk.f32.mxu0 %vm837_vm1, %v9800_v47 }
  0x46   : > { %8711 = vmatprep.mubr.msk.f32.mxu1 %vm837_vm1, %v9803_v48 }
  0x48   : > { %8662 = vmatmul.mubr.msk.f32.gmra.mxu0 %vm837_vm1, %v9814_v49 }
  0x49   : > { %8712 = vmatmul.mubr.msk.f32.gmra.mxu1 %vm837_vm1, %v9817_v50  ;;  %8664 = vmatprep.mubr.msk.f32.mxu0 %vm837_vm1, %v9820_v51 }
  0x4a   : > { %8714 = vmatprep.mubr.msk.f32.mxu1 %vm837_vm1, %v9823_v52 }
  0x4c   : > { %8665 = vmatmul.mubr.msk.f32.gmra.mxu0 %vm837_vm1, %v9834_v53 }
  0x4d   : > { %8715 = vmatmul.mubr.msk.f32.gmra.mxu1 %vm837_vm1, %v9837_v54  ;;  %8667 = vmatprep.mubr.msk.f32.mxu0 %vm837_vm1, %v9840_v55 }
  0x4e   : > { %8717 = vmatprep.mubr.msk.f32.mxu1 %vm837_vm1, %v9843_v56 }
  0x50   : > { %8668 = vmatmul.mubr.msk.f32.gmra.mxu0 %vm837_vm1, %v9854_v57 }
  0x51   : > { %8718 = vmatmul.mubr.msk.f32.gmra.mxu1 %vm837_vm1, %v9857_v58  ;;  %8670 = vmatprep.mubr.msk.f32.mxu0 %vm837_vm1, %v9860_v59 }
  0x52   : > { %8720 = vmatprep.mubr.msk.f32.mxu1 %vm837_vm1, %v9863_v60 }
  0x54   : > { %8671 = vmatmul.mubr.msk.f32.gmra.mxu0 %vm837_vm1, %v9874_v61 }
  0x55   : > { %8721 = vmatmul.mubr.msk.f32.gmra.mxu1 %vm837_vm1, %v9877_v62  ;;  %8673 = vmatprep.mubr.msk.f32.mxu0 %vm837_vm1, %v9880_v63 }
  0x56   : > { %8723 = vmatprep.mubr.msk.f32.mxu1 %vm837_vm1, %v9883_v0 }
  0x58   : > { %8674 = vmatmul.mubr.msk.f32.gmra.mxu0 %vm837_vm1, %v9894_v1 }
  0x59   : > { %8724 = vmatmul.mubr.msk.f32.gmra.mxu1 %vm837_vm1, %v9897_v2  ;;  %8676 = vmatprep.mubr.msk.f32.mxu0 %vm837_vm1, %v9900_v3  ;;  %v9929_v2 = vld [vmem:[%s9597_s12 + $0x19] sm:$0xff] }
  0x5a   : > { %8726 = vmatprep.mubr.msk.f32.mxu1 %vm837_vm1, %v9903_v4  ;;  %v9937_v4 = vld [vmem:[%s12764_s1 + $0x18] sm:$0x7] }
  0x5c   : > { %8677 = vmatmul.mubr.msk.f32.gmra.mxu0 %vm837_vm1, %v9914_v5 }
  0x5d   : > { %8727 = vmatmul.mubr.msk.f32.gmra.mxu1 %vm837_vm1, %v9917_v6  ;;  %8731 = vmatprep.mubr.msk.f32.mxu0 %vm837_vm1, %v1713_v7  ;;  %v9942_v7 = vld [vmem:[%s12764_s1 + $0x1c] sm:$0x7] }
  0x5e   : > { %8781 = vmatprep.mubr.msk.f32.mxu1 %vm837_vm1, %v9606_v9  ;;  %v9947_v9 = vld [vmem:[%s9597_s12 + $0x21] sm:$0xff] }
  0x60   : > { %8732 = vmatmul.mubr.msk.f32.vlgmr.msra.gmra.mxu0 %vm837_vm1, %v1714_v8  ;;  %v9983_v8 = vld [vmem:[%s9597_s12 + $0x41] sm:$0xff] }
  0x61   : > { %8782 = vmatmul.mubr.msk.f32.vlgmr.msra.gmra.mxu1 %vm837_vm1, %v9628_v13  ;;  %8734 = vmatprep.mubr.msk.f32.mxu0 %vm837_vm1, %v9929_v2  ;;  %v9952_v13 = vld [vmem:[%s9597_s12 + $0x29] sm:$0xff] }
  0x62   : > { %8784 = vmatprep.mubr.msk.f32.mxu1 %vm837_vm1, %v9634_v15  ;;  %8830 = vmatpush3.msk.msra.mxu0 %vm934_vm0, %v9616_v11  ;;  %v9969_v11 = vld [vmem:[%s9597_s12 + $0x31] sm:$0xff]  ;;  %v10145_v15 = vld [vmem:[%s9597_s12 + $0x107] sm:$0xff] }
  0x63   : > { %8880 = vmatpush3.msk.msra.mxu1 %vm934_vm0, %v9621_v12  ;;  %8929 = vmatprep.subr.msk.mxu0 %vm934_vm0, %v9937_v4  ;;  %v9974_v12 = vld [vmem:[%s9597_s12 + $0x39] sm:$0xff] }
  0x64   : > { %8979 = vmatprep.subr.msk.mxu1 %vm934_vm0, %v9942_v7  ;;  %8735 = vmatmul.mubr.msk.f32.gmra.mxu0 %vm837_vm1, %v9947_v9 }
  0x65   : > { %8785 = vmatmul.mubr.msk.f32.gmra.mxu1 %vm837_vm1, %v9654_v17  ;;  %8737 = vmatprep.mubr.msk.f32.mxu0 %vm837_vm1, %v9952_v13  ;;  %v9988_v17 = vld [vmem:[%s9597_s12 + $0x49] sm:$0xff] }
  0x66   : > { %8787 = vmatprep.mubr.msk.f32.mxu1 %vm837_vm1, %v9660_v19  ;;  %v10002_v19 = vld [vmem:[%s9597_s12 + $0x59] sm:$0xff] }
  0x68   : > { %8738 = vmatmul.mubr.msk.f32.gmra.mxu0 %vm837_vm1, %v9969_v11 }
  0x69   : > { %8788 = vmatmul.mubr.msk.f32.gmra.mxu1 %vm837_vm1, %v9674_v21  ;;  %8740 = vmatprep.mubr.msk.f32.mxu0 %vm837_vm1, %v9974_v12  ;;  %v9997_v21 = vld [vmem:[%s9597_s12 + $0x51] sm:$0xff] }
  0x6a   : > { %8790 = vmatprep.mubr.msk.f32.mxu1 %vm837_vm1, %v9680_v23  ;;  %v10016_v23 = vld [vmem:[%s9597_s12 + $0x69] sm:$0xff] }
  0x6c   : > { %8741 = vmatmul.mubr.msk.f32.gmra.mxu0 %vm837_vm1, %v9983_v8 }
  0x6d   : > { %8791 = vmatmul.mubr.msk.f32.gmra.mxu1 %vm837_vm1, %v9694_v25  ;;  %8743 = vmatprep.mubr.msk.f32.mxu0 %vm837_vm1, %v9988_v17  ;;  %v10011_v25 = vld [vmem:[%s9597_s12 + $0x61] sm:$0xff] }
  0x6e   : > { %8793 = vmatprep.mubr.msk.f32.mxu1 %vm837_vm1, %v9700_v27  ;;  %v10030_v27 = vld [vmem:[%s9597_s12 + $0x79] sm:$0xff] }
  0x70   : > { %8744 = vmatmul.mubr.msk.f32.gmra.mxu0 %vm837_vm1, %v9997_v21 }
  0x71   : > { %8794 = vmatmul.mubr.msk.f32.gmra.mxu1 %vm837_vm1, %v9714_v29  ;;  %8746 = vmatprep.mubr.msk.f32.mxu0 %vm837_vm1, %v10002_v19  ;;  %v10025_v29 = vld [vmem:[%s9597_s12 + $0x71] sm:$0xff] }
  0x72   : > { %8796 = vmatprep.mubr.msk.f32.mxu1 %vm837_vm1, %v9720_v31  ;;  %v10044_v31 = vld [vmem:[%s9597_s12 + $0x89] sm:$0xff] }
  0x74   : > { %8747 = vmatmul.mubr.msk.f32.gmra.mxu0 %vm837_vm1, %v10011_v25 }
  0x75   : > { %8797 = vmatmul.mubr.msk.f32.gmra.mxu1 %vm837_vm1, %v9734_v33  ;;  %8749 = vmatprep.mubr.msk.f32.mxu0 %vm837_vm1, %v10016_v23  ;;  %v10039_v33 = vld [vmem:[%s9597_s12 + $0x81] sm:$0xff] }
  0x76   : > { %8799 = vmatprep.mubr.msk.f32.mxu1 %vm837_vm1, %v9740_v35  ;;  %v10058_v35 = vld [vmem:[%s9597_s12 + $0x99] sm:$0xff] }
  0x78   : > { %8750 = vmatmul.mubr.msk.f32.gmra.mxu0 %vm837_vm1, %v10025_v29 }
  0x79   : > { %8800 = vmatmul.mubr.msk.f32.gmra.mxu1 %vm837_vm1, %v9754_v37  ;;  %8752 = vmatprep.mubr.msk.f32.mxu0 %vm837_vm1, %v10030_v27  ;;  %v10053_v37 = vld [vmem:[%s9597_s12 + $0x91] sm:$0xff] }
  0x7a   : > { %8802 = vmatprep.mubr.msk.f32.mxu1 %vm837_vm1, %v9760_v39  ;;  %v10072_v39 = vld [vmem:[%s9597_s12 + $0xa9] sm:$0xff] }
  0x7c   : > { %8753 = vmatmul.mubr.msk.f32.gmra.mxu0 %vm837_vm1, %v10039_v33 }
  0x7d   : > { %8803 = vmatmul.mubr.msk.f32.gmra.mxu1 %vm837_vm1, %v9774_v41  ;;  %8755 = vmatprep.mubr.msk.f32.mxu0 %vm837_vm1, %v10044_v31  ;;  %v10067_v41 = vld [vmem:[%s9597_s12 + $0xa1] sm:$0xff] }
  0x7e   : > { %8805 = vmatprep.mubr.msk.f32.mxu1 %vm837_vm1, %v9780_v43  ;;  %v10086_v43 = vld [vmem:[%s9597_s12 + $0xb9] sm:$0xff] }
  0x80   : > { %8756 = vmatmul.mubr.msk.f32.gmra.mxu0 %vm837_vm1, %v10053_v37 }
  0x81   : > { %8806 = vmatmul.mubr.msk.f32.gmra.mxu1 %vm837_vm1, %v9794_v45  ;;  %8758 = vmatprep.mubr.msk.f32.mxu0 %vm837_vm1, %v10058_v35  ;;  %v10081_v45 = vld [vmem:[%s9597_s12 + $0xb1] sm:$0xff] }
  0x82   : > { %8808 = vmatprep.mubr.msk.f32.mxu1 %vm837_vm1, %v9800_v47  ;;  %v10100_v47 = vld [vmem:[%s9597_s12 + $0xc9] sm:$0xff] }
  0x84   : > { %8759 = vmatmul.mubr.msk.f32.gmra.mxu0 %vm837_vm1, %v10067_v41 }
  0x85   : > { %8809 = vmatmul.mubr.msk.f32.gmra.mxu1 %vm837_vm1, %v9814_v49  ;;  %8761 = vmatprep.mubr.msk.f32.mxu0 %vm837_vm1, %v10072_v39  ;;  %v10095_v49 = vld [vmem:[%s9597_s12 + $0xc1] sm:$0xff] }
  0x86   : > { %8811 = vmatprep.mubr.msk.f32.mxu1 %vm837_vm1, %v9820_v51  ;;  %v10128_v51 = vld [vmem:[%s9597_s12 + $0xe9] sm:$0xff] }
  0x88   : > { %8762 = vmatmul.mubr.msk.f32.gmra.mxu0 %vm837_vm1, %v10081_v45 }
  0x89   : > { %8812 = vmatmul.mubr.msk.f32.gmra.mxu1 %vm837_vm1, %v9834_v53  ;;  %8764 = vmatprep.mubr.msk.f32.mxu0 %vm837_vm1, %v10086_v43  ;;  %v10109_v53 = vld [vmem:[%s9597_s12 + $0xd1] sm:$0xff] }
  0x8a   : > { %8814 = vmatprep.mubr.msk.f32.mxu1 %vm837_vm1, %v9840_v55  ;;  %v10114_v55 = vld [vmem:[%s9597_s12 + $0xd9] sm:$0xff] }
  0x8c   : > { %8765 = vmatmul.mubr.msk.f32.gmra.mxu0 %vm837_vm1, %v10095_v49 }
  0x8d   : > { %8815 = vmatmul.mubr.msk.f32.gmra.mxu1 %vm837_vm1, %v9854_v57  ;;  %8767 = vmatprep.mubr.msk.f32.mxu0 %vm837_vm1, %v10100_v47  ;;  %v10123_v57 = vld [vmem:[%s9597_s12 + $0xe1] sm:$0xff] }
  0x8e   : > { %8817 = vmatprep.mubr.msk.f32.mxu1 %vm837_vm1, %v9860_v59  ;;  %v10142_v59 = vld [vmem:[%s9597_s12 + $0xf9] sm:$0xff] }
  0x90   : > { %8768 = vmatmul.mubr.msk.f32.gmra.mxu0 %vm837_vm1, %v10109_v53 }
  0x91   : > { %8818 = vmatmul.mubr.msk.f32.gmra.mxu1 %vm837_vm1, %v9874_v61  ;;  %8770 = vmatprep.mubr.msk.f32.mxu0 %vm837_vm1, %v10114_v55  ;;  %v10137_v61 = vld [vmem:[%s9597_s12 + $0xf1] sm:$0xff] }
  0x92   : > { %8820 = vmatprep.mubr.msk.f32.mxu1 %vm837_vm1, %v9880_v63  ;;  %v10159_v63 = vld [vmem:[%s9597_s12 + $0x10f] sm:$0xff] }
  0x94   : > { %8771 = vmatmul.mubr.msk.f32.gmra.mxu0 %vm837_vm1, %v10123_v57 }
  0x95   : > { %8821 = vmatmul.mubr.msk.f32.gmra.mxu1 %vm837_vm1, %v9894_v1  ;;  %8773 = vmatprep.mubr.msk.f32.mxu0 %vm837_vm1, %v10128_v51  ;;  %v10154_v1 = vld [vmem:[%s9597_s12 + $0x101] sm:$0xff] }
  0x96   : > { %8823 = vmatprep.mubr.msk.f32.mxu1 %vm837_vm1, %v9900_v3  ;;  %v10176_v3 = vld [vmem:[%s12764_s1 + $0x20] sm:$0x7] }
  0x98   : > { %8774 = vmatmul.mubr.msk.f32.gmra.mxu0 %vm837_vm1, %v10137_v61 }
  0x99   : > { %8824 = vmatmul.mubr.msk.f32.gmra.mxu1 %vm837_vm1, %v9914_v5  ;;  %8776 = vmatprep.mubr.msk.f32.mxu0 %vm837_vm1, %v10142_v59 }
  0x9a   : > { %8826 = vmatprep.mubr.msk.f32.mxu1 %vm837_vm1, %v10145_v15 }
  0x9c   : > { %8777 = vmatmul.mubr.msk.f32.gmra.mxu0 %vm837_vm1, %v10154_v1 }
  0x9d   : > { %8827 = vmatmul.mubr.msk.f32.gmra.mxu1 %vm837_vm1, %v10159_v63  ;;  %8831 = vmatprep.mubr.msk.f32.mxu0 %vm837_vm1, %v9609_v10  ;;  %v12900_v10 = vld [vmem:[#allocation33_spill] sm:$0xff] }
  0x9e   : > { %8881 = vmatprep.mubr.msk.f32.mxu1 %vm837_vm1, %v9929_v2 }
  0xa0   : > { %8832 = vmatmul.mubr.msk.f32.vlgmr.msra.gmra.mxu0 %vm837_vm1, %v9631_v14  ;;  %v387_v14 = vlaneseq }
  0xa1   : > { %8882 = vmatmul.mubr.msk.f32.vlgmr.msra.gmra.mxu1 %vm837_vm1, %v9947_v9  ;;  %8834 = vmatprep.mubr.msk.f32.mxu0 %vm837_vm1, %v9637_v16 }
  0xa2   : > { %8884 = vmatprep.mubr.msk.f32.mxu1 %vm837_vm1, %v9952_v13  ;;  %8930 = vmatpush3.msk.msra.mxu0 %vm934_vm0, %v9937_v4  ;;  %v12916_v4 = vld [vmem:[#allocation11_spill] sm:$0xff] }
  0xa3   : > { %8980 = vmatpush3.msk.msra.mxu1 %vm934_vm0, %v9942_v7  ;;  %9029 = vmatprep.subr.msk.mxu0 %vm934_vm0, %v10176_v3 }
  0xa4   : > { %8835 = vmatmul.mubr.msk.f32.gmra.mxu0 %vm837_vm1, %v9657_v18 }
  0xa5   : > { %8885 = vmatmul.mubr.msk.f32.gmra.mxu1 %vm837_vm1, %v9969_v11  ;;  %8837 = vmatprep.mubr.msk.f32.mxu0 %vm837_vm1, %v9663_v20  ;;  %v12917_v11 = vld [vmem:[#allocation12_spill] sm:$0xff] }
  0xa6   : > { %8887 = vmatprep.mubr.msk.f32.mxu1 %vm837_vm1, %v9974_v12  ;;  %v12918_v12 = vmov 0 }
  0xa8   : > { %8838 = vmatmul.mubr.msk.f32.gmra.mxu0 %vm837_vm1, %v9677_v22 }
  0xa9   : > { %8888 = vmatmul.mubr.msk.f32.gmra.mxu1 %vm837_vm1, %v9983_v8  ;;  %8840 = vmatprep.mubr.msk.f32.mxu0 %vm837_vm1, %v9683_v24 }
  0xaa   : > { %8890 = vmatprep.mubr.msk.f32.mxu1 %vm837_vm1, %v9988_v17  ;;  %v12901_v17 = vld [vmem:[#allocation34_spill] sm:$0xff] }
  0xac   : > { %8841 = vmatmul.mubr.msk.f32.gmra.mxu0 %vm837_vm1, %v9697_v26 }
  0xad   : > { %8891 = vmatmul.mubr.msk.f32.gmra.mxu1 %vm837_vm1, %v9997_v21  ;;  %8843 = vmatprep.mubr.msk.f32.mxu0 %vm837_vm1, %v9703_v28  ;;  %v3073_v21 = vld [vmem:[%s9597_s12 + $0x109] sm:$0xff] }
  0xae   : > { %8893 = vmatprep.mubr.msk.f32.mxu1 %vm837_vm1, %v10002_v19  ;;  %v10293_v19 = vld [vmem:[%s9597_s12 + $0x108] sm:$0xff] }
  0xb0   : > { %8844 = vmatmul.mubr.msk.f32.gmra.mxu0 %vm837_vm1, %v9717_v30 }
  0xb1   : > { %8894 = vmatmul.mubr.msk.f32.gmra.mxu1 %vm837_vm1, %v10011_v25  ;;  %8846 = vmatprep.mubr.msk.f32.mxu0 %vm837_vm1, %v9723_v32  ;;  %v10305_v25 = vld [vmem:[%s9597_s12 + $0x110] sm:$0xff] }
  0xb2   : > { %8896 = vmatprep.mubr.msk.f32.mxu1 %vm837_vm1, %v10016_v23  ;;  %v10300_v23 = vshrl.u32 %v387_v14, 7 }
  0xb4   : > { %8847 = vmatmul.mubr.msk.f32.gmra.mxu0 %vm837_vm1, %v9737_v34  ;;  %12902 = vst [vmem:[#allocation33_spill] sm:$0xff] %v10300_v23  ;;  %v396_v8 = vadd.s32 64, %v10300_v23 }
  0xb5   : > { %8897 = vmatmul.mubr.msk.f32.gmra.mxu1 %vm837_vm1, %v10025_v29  ;;  %8849 = vmatprep.mubr.msk.f32.mxu0 %vm837_vm1, %v9743_v36  ;;  %v424_v29 = vand.u32 15, %v10300_v23 }
  0xb6   : > { %8899 = vmatprep.mubr.msk.f32.mxu1 %vm837_vm1, %v10030_v27  ;;  %v3074_v27 = vld [vmem:[%s9597_s12 + $0x111] sm:$0xff] }
  0xb7   : > { %vm10322_vm2 = vcmp.ge.s32.totalorder %v424_v29, 1 }
  0xb8   : > { %8850 = vmatmul.mubr.msk.f32.gmra.mxu0 %vm837_vm1, %v9757_v38 }
  0xb9   : > { %8900 = vmatmul.mubr.msk.f32.gmra.mxu1 %vm837_vm1, %v10039_v33  ;;  %8852 = vmatprep.mubr.msk.f32.mxu0 %vm837_vm1, %v9763_v40  ;;  %v12904_v33 = vld [vmem:[#allocation7_spill] sm:$0xff] }
  0xba   : > { %8902 = vmatprep.mubr.msk.f32.mxu1 %vm837_vm1, %v10044_v31  ;;  %v10314_v31 = vadd.s32 16, %v10300_v23 }
  0xbc   : > { %8853 = vmatmul.mubr.msk.f32.gmra.mxu0 %vm837_vm1, %v9777_v42  ;;  %12903 = vst [vmem:[#allocation34_spill] sm:$0xff] %v10314_v31 }
  0xbd   : > { %8903 = vmatmul.mubr.msk.f32.gmra.mxu1 %vm837_vm1, %v10053_v37  ;;  %8855 = vmatprep.mubr.msk.f32.mxu0 %vm837_vm1, %v9783_v44 }
  0xbe   : > { %8905 = vmatprep.mubr.msk.f32.mxu1 %vm837_vm1, %v10058_v35 }
  0xc0   : > { %8856 = vmatmul.mubr.msk.f32.gmra.mxu0 %vm837_vm1, %v9797_v46 }
  0xc1   : > { %8906 = vmatmul.mubr.msk.f32.gmra.mxu1 %vm837_vm1, %v10067_v41  ;;  %8858 = vmatprep.mubr.msk.f32.mxu0 %vm837_vm1, %v9803_v48  ;;  %v12906_v41 = vmov 0 }
  0xc2   : > { %8908 = vmatprep.mubr.msk.f32.mxu1 %vm837_vm1, %v10072_v39  ;;  %v12905_v39 = vld [vmem:[#allocation8_spill] sm:$0xff]  ;;  %v12907_v41 = vsel %vm10322_vm2, 4294967295, %v12906_v41 }
  0xc3   : > { %12908 = vst [vmem:[#allocation7_spill] sm:$0xff] %v12907_v41  ;;  %v413_v41 = vadd.s32 200, %v10300_v23 }
  0xc4   : > { %8859 = vmatmul.mubr.msk.f32.gmra.mxu0 %vm837_vm1, %v9817_v50 }
  0xc5   : > { %8909 = vmatmul.mubr.msk.f32.gmra.mxu1 %vm837_vm1, %v10081_v45  ;;  %8861 = vmatprep.mubr.msk.f32.mxu0 %vm837_vm1, %v9823_v52  ;;  %v10330_v45 = vadd.s32 32, %v10300_v23 }
  0xc6   : > { %8911 = vmatprep.mubr.msk.f32.mxu1 %vm837_vm1, %v10086_v43  ;;  %v438_v43 = vand.u32 15, %v10314_v31  ;;  %v12970_v31 = vmov 0 }
  0xc7   : > { %12909 = vst [vmem:[#allocation8_spill] sm:$0xff] %v10330_v45 }
  0xc8   : > { %8862 = vmatmul.mubr.msk.f32.gmra.mxu0 %vm837_vm1, %v9837_v54  ;;  %vm10346_vm3 = vcmp.ge.s32.totalorder %v438_v43, 1  ;;  %v12926_v43 = vld [vmem:[#allocation15_spill] sm:$0xff] }
  0xc9   : > { %8912 = vmatmul.mubr.msk.f32.gmra.mxu1 %vm837_vm1, %v10095_v49  ;;  %8864 = vmatprep.mubr.msk.f32.mxu0 %vm837_vm1, %v9843_v56 }
  0xca   : > { %8914 = vmatprep.mubr.msk.f32.mxu1 %vm837_vm1, %v10100_v47 }
  0xcc   : > { %8865 = vmatmul.mubr.msk.f32.gmra.mxu0 %vm837_vm1, %v9857_v58 }
  0xcd   : > { %8915 = vmatmul.mubr.msk.f32.gmra.mxu1 %vm837_vm1, %v10109_v53  ;;  %8867 = vmatprep.mubr.msk.f32.mxu0 %vm837_vm1, %v9863_v60 }
  0xce   : > { %8917 = vmatprep.mubr.msk.f32.mxu1 %vm837_vm1, %v10114_v55 }
  0xd0   : > { %8868 = vmatmul.mubr.msk.f32.gmra.mxu0 %vm837_vm1, %v9877_v62 }
  0xd1   : > { %8918 = vmatmul.mubr.msk.f32.gmra.mxu1 %vm837_vm1, %v10123_v57  ;;  %8870 = vmatprep.mubr.msk.f32.mxu0 %vm837_vm1, %v9883_v0 }
  0xd2   : > { %8920 = vmatprep.mubr.msk.f32.mxu1 %vm837_vm1, %v10128_v51 }
  0xd4   : > { %8871 = vmatmul.mubr.msk.f32.gmra.mxu0 %vm837_vm1, %v12900_v10  ;;  %v12921_v10 = vld [vmem:[#allocation13_spill] sm:$0xff] }
  0xd5   : > { %8921 = vmatmul.mubr.msk.f32.gmra.mxu1 %vm837_vm1, %v10137_v61  ;;  %8873 = vmatprep.mubr.msk.f32.mxu0 %vm837_vm1, %v12901_v17  ;;  %v12912_v61 = vmov 0 }
  0xd6   : > { %8923 = vmatprep.mubr.msk.f32.mxu1 %vm837_vm1, %v10142_v59  ;;  %v12911_v59 = vld [vmem:[#allocation10_spill] sm:$0xff]  ;;  %v12913_v61 = vsel %vm10346_vm3, 4294967295, %v12912_v61 }
  0xd8   : > { %8874 = vmatmul.mubr.msk.f32.gmra.mxu0 %vm837_vm1, %v9917_v6 }
  0xd9   : > { %8924 = vmatmul.mubr.msk.f32.gmra.mxu1 %vm837_vm1, %v10154_v1  ;;  %8876 = vmatprep.mubr.msk.f32.mxu0 %vm837_vm1, %v10293_v19  ;;  %v10354_v1 = vadd.s32 48, %v10300_v23 }
  0xda   : > { %8926 = vmatprep.mubr.msk.f32.mxu1 %vm837_vm1, %v3073_v21 }
  0xdb   : > { %12915 = vst [vmem:[#allocation10_spill] sm:$0xff] %v10354_v1 }
  0xdc   : > { %8877 = vmatmul.mubr.msk.f32.gmra.mxu0 %vm837_vm1, %v10305_v25 }
  0xdd   : > { %8927 = vmatmul.mubr.msk.f32.gmra.mxu1 %vm837_vm1, %v3074_v27  ;;  %8931 = vmatprep.mubr.msk.f32.mxu0 %vm837_vm1, %v12904_v33  ;;  %v12922_v33 = vld [vmem:[#allocation14_spill] sm:$0xff] }
  0xde   : > { %8981 = vmatprep.mubr.msk.f32.mxu1 %vm837_vm1, %v9637_v16  ;;  %v12910_v16 = vld [vmem:[#allocation9_spill] sm:$0xff] }
  0xdf   : > { %12914 = vst [vmem:[#allocation9_spill] sm:$0xff] %v12913_v61 }
  0xe0   : > { %v8633_v35 = vpop.f32.mrf.mxu0  ;;  %8932 = vmatmul.mubr.msk.f32.vlgmr.msra.gmra.mxu0 %vm837_vm1, %v12905_v39 }
  0xe1   : > { %v8683_v37 = vpop.f32.mrf.mxu1  ;;  %8982 = vmatmul.mubr.msk.f32.vlgmr.msra.gmra.mxu1 %vm837_vm1, %v9657_v18  ;;  %8934 = vmatprep.mubr.msk.f32.mxu0 %vm837_vm1, %v12910_v16 }
  0xe2   : > { %v10332_v47 = vadd.f32 %v8683_v37, %v8633_v35  ;;  %8984 = vmatprep.mubr.msk.f32.mxu1 %vm837_vm1, %v9663_v20  ;;  %v1004_v49 = vpop.f32.mrf.mxu0  ;;  %9030 = vmatpush3.msk.msra.mxu0 %vm934_vm0, %v10176_v3  ;;  %v452_v20 = vand.u32 15, %v10330_v45  ;;  %v12923_v35 = vmov 0  ;;  %v398_v37 = vadd.s32 80, %v10300_v23 }
  0xe3   : > { %v1522_v51 = vpop.f32.mrf.mxu1  ;;  %v1259_v18 = vsel %vm10322_vm2, %v1004_v49, 0.0 }
  0xe4   : > { %v10342_v53 = vadd.f32 %v1522_v51, %v1259_v18  ;;  %v8636_v55 = vpop.f32.mrf.mxu0  ;;  %8935 = vmatmul.mubr.msk.f32.gmra.mxu0 %vm837_vm1, %v12911_v59  ;;  %vm10368_vm4 = vcmp.ge.s32.totalorder %v452_v20, 1  ;;  %v12928_v59 = vmov 0  ;;  %v400_v20 = vadd.s32 96, %v10300_v23 }
  0xe5   : > { %v8686_v57 = vpop.f32.mrf.mxu1  ;;  %8985 = vmatmul.mubr.msk.f32.gmra.mxu1 %vm837_vm1, %v9677_v22  ;;  %8937 = vmatprep.mubr.msk.f32.mxu0 %vm837_vm1, %v12916_v4  ;;  %v12919_v12 = vsel %vm10368_vm4, 4294967295, %v12918_v12 }
  0xe6   : > { %v10356_v2 = vadd.f32 %v8686_v57, %v8636_v55  ;;  %8987 = vmatprep.mubr.msk.f32.mxu1 %vm837_vm1, %v9683_v24  ;;  %v1014_v5 = vpop.f32.mrf.mxu0  ;;  %12920 = vst [vmem:[#allocation11_spill] sm:$0xff] %v12919_v12  ;;  %v466_v24 = vand.u32 15, %v10354_v1  ;;  %v12927_v57 = vld [vmem:[#allocation16_spill] sm:$0xff] }
  0xe7   : > { %v1532_v6 = vpop.f32.mrf.mxu1  ;;  %v1261_v7 = vsel %vm10346_vm3, %v1014_v5, 0.0  ;;  %v12931_v5 = vld [vmem:[#allocation17_spill] sm:$0xff] }
  0xe8   : > { %v10364_v9 = vadd.f32 %v1532_v6, %v1261_v7  ;;  %v8639_v22 = vpop.f32.mrf.mxu0  ;;  %8938 = vmatmul.mubr.msk.f32.gmra.mxu0 %vm837_vm1, %v12917_v11  ;;  %vm10388_vm5 = vcmp.ge.s32.totalorder %v466_v24, 1  ;;  %v12932_v24 = vld [vmem:[#allocation18_spill] sm:$0xff] }
  0xe9   : > { %v8689_v13 = vpop.f32.mrf.mxu1  ;;  %8988 = vmatmul.mubr.msk.f32.gmra.mxu1 %vm837_vm1, %v9697_v26  ;;  %8940 = vmatprep.mubr.msk.f32.mxu0 %vm837_vm1, %v12921_v10  ;;  %v12924_v35 = vsel %vm10388_vm5, 4294967295, %v12923_v35  ;;  %v402_v10 = vadd.s32 112, %v10300_v23 }
  0xea   : > { %v10376_v3 = vadd.f32 %v8689_v13, %v8639_v22  ;;  %8990 = vmatprep.mubr.msk.f32.mxu1 %vm837_vm1, %v9703_v28  ;;  %v1024_v14 = vpop.f32.mrf.mxu0  ;;  %12925 = vst [vmem:[#allocation12_spill] sm:$0xff] %v12924_v35  ;;  %v480_v28 = vand.u32 15, %v396_v8  ;;  %v12933_v8 = vmov 0 }
  0xeb   : > { %v1542_v17 = vpop.f32.mrf.mxu1  ;;  %v1263_v21 = vsel %vm10368_vm4, %v1024_v14, 0.0 }
  0xec   : > { %v10384_v27 = vadd.f32 %v1542_v17, %v1263_v21  ;;  %v8642_v26 = vpop.f32.mrf.mxu0  ;;  %8941 = vmatmul.mubr.msk.f32.gmra.mxu0 %vm837_vm1, %v12922_v33  ;;  %vm10407_vm6 = vcmp.ge.s32.totalorder %v480_v28, 1  ;;  %v12936_v17 = vld [vmem:[#allocation19_spill] sm:$0xff] }
  0xed   : > { %v8692_v29 = vpop.f32.mrf.mxu1  ;;  %8991 = vmatmul.mubr.msk.f32.gmra.mxu1 %vm837_vm1, %v9717_v30  ;;  %8943 = vmatprep.mubr.msk.f32.mxu0 %vm837_vm1, %v12926_v43  ;;  %v12929_v59 = vsel %vm10407_vm6, 4294967295, %v12928_v59  ;;  %v12938_v43 = vmov 0 }
  0xee   : > { %v10395_v39 = vadd.f32 %v8692_v29, %v8642_v26  ;;  %8993 = vmatprep.mubr.msk.f32.mxu1 %vm837_vm1, %v9723_v32  ;;  %v1034_v16 = vpop.f32.mrf.mxu0  ;;  %12930 = vst [vmem:[#allocation13_spill] sm:$0xff] %v12929_v59  ;;  %v494_v32 = vand.u32 15, %v398_v37  ;;  %v12937_v37 = vld [vmem:[#allocation20_spill] sm:$0xff] }
  0xef   : > { %v1552_v49 = vpop.f32.mrf.mxu1  ;;  %v1265_v51 = vsel %vm10388_vm5, %v1034_v16, 0.0 }
  0xf0   : > { %v10403_v18 = vadd.f32 %v1552_v49, %v1265_v51  ;;  %v8645_v55 = vpop.f32.mrf.mxu0  ;;  %8944 = vmatmul.mubr.msk.f32.gmra.mxu0 %vm837_vm1, %v12927_v57  ;;  %vm10426_vm7 = vcmp.ge.s32.totalorder %v494_v32, 1  ;;  %v12940_v49 = vld [vmem:[#allocation21_spill] sm:$0xff] }
  0xf1   : > { %v8695_v30 = vpop.f32.mrf.mxu1  ;;  %8994 = vmatmul.mubr.msk.f32.gmra.mxu1 %vm837_vm1, %v9737_v34  ;;  %8946 = vmatprep.mubr.msk.f32.mxu0 %vm837_vm1, %v12931_v5  ;;  %v12934_v8 = vsel %vm10426_vm7, 4294967295, %v12933_v8  ;;  %v12941_v5 = vld [vmem:[#allocation22_spill] sm:$0xff] }
  0xf2   : > { %v10414_v4 = vadd.f32 %v8695_v30, %v8645_v55  ;;  %8996 = vmatprep.mubr.msk.f32.mxu1 %vm837_vm1, %v9743_v36  ;;  %v1044_v6 = vpop.f32.mrf.mxu0  ;;  %12935 = vst [vmem:[#allocation14_spill] sm:$0xff] %v12934_v8  ;;  %v508_v36 = vand.u32 15, %v400_v20  ;;  %v4282_v8 = vld [vmem:[%s9597_s12 + $0x51] sm:$0xff] }
  0xf3   : > { %v1562_v7 = vpop.f32.mrf.mxu1  ;;  %v1267_v22 = vsel %vm10407_vm6, %v1044_v6, 0.0  ;;  %v12944_v6 = vld [vmem:[#allocation23_spill] sm:$0xff] }
  0xf4   : > { %v10422_v13 = vadd.f32 %v1562_v7, %v1267_v22  ;;  %v8648_v11 = vpop.f32.mrf.mxu0  ;;  %8947 = vmatmul.mubr.msk.f32.gmra.mxu0 %vm837_vm1, %v12932_v24  ;;  %vm10445_vm8 = vcmp.ge.s32.totalorder %v508_v36, 1 }
  0xf5   : > { %v8698_v34 = vpop.f32.mrf.mxu1  ;;  %8997 = vmatmul.mubr.msk.f32.gmra.mxu1 %vm837_vm1, %v9757_v38  ;;  %8949 = vmatprep.mubr.msk.f32.mxu0 %vm837_vm1, %v12936_v17  ;;  %v12939_v43 = vsel %vm10445_vm8, 4294967295, %v12938_v43  ;;  %v12946_v17 = vld [vmem:[#allocation25_spill] sm:$0xff] }
  0xf6   : > { %v10433_v14 = vadd.f32 %v8698_v34, %v8648_v11  ;;  %8999 = vmatprep.mubr.msk.f32.mxu1 %vm837_vm1, %v9763_v40  ;;  %v1054_v21 = vpop.f32.mrf.mxu0  ;;  %v522_v40 = vand.u32 15, %v402_v10  ;;  %v12945_v10 = vld [vmem:[#allocation24_spill] sm:$0xff] }
  0xf7   : > { %v1572_v26 = vpop.f32.mrf.mxu1  ;;  %v1269_v29 = vsel %vm10426_vm7, %v1054_v21, 0.0 }
  0xf8   : > { %v10441_v33 = vadd.f32 %v1572_v26, %v1269_v29  ;;  %v8651_v28 = vpop.f32.mrf.mxu0  ;;  %8950 = vmatmul.mubr.msk.f32.gmra.mxu0 %vm837_vm1, %v12937_v37  ;;  %vm10463_vm9 = vcmp.ge.s32.totalorder %v522_v40, 1 }
  0xf9   : > { %v8701_v38 = vpop.f32.mrf.mxu1  ;;  %9000 = vmatmul.mubr.msk.f32.gmra.mxu1 %vm837_vm1, %v9777_v42  ;;  %8952 = vmatprep.mubr.msk.f32.mxu0 %vm837_vm1, %v12940_v49  ;;  %v12942_v42 = vmov 0 }
  0xfa   : > { %v10451_v16 = vadd.f32 %v8701_v38, %v8651_v28  ;;  %9002 = vmatprep.mubr.msk.f32.mxu1 %vm837_vm1, %v9783_v44  ;;  %v1064_v51 = vpop.f32.mrf.mxu0  ;;  %v12943_v42 = vsel %vm10463_vm9, 4294967295, %v12942_v42  ;;  %v12947_v28 = vld [vmem:[#allocation26_spill] sm:$0xff]  ;;  %v12948_v38 = vld [vmem:[#allocation27_spill] sm:$0xff] }
  0xfb   : > { %v1582_v55 = vpop.f32.mrf.mxu1  ;;  %v1271_v30 = vsel %vm10445_vm8, %v1064_v51, 0.0  ;;  %v12949_v51 = vld [vmem:[#allocation28_spill] sm:$0xff] }
  0xfc   : > { %v10459_v57 = vadd.f32 %v1582_v55, %v1271_v30  ;;  %v8654_v32 = vpop.f32.mrf.mxu0  ;;  %8953 = vmatmul.mubr.msk.f32.gmra.mxu0 %vm837_vm1, %v12941_v5  ;;  %v12950_v55 = vld [vmem:[#allocation29_spill] sm:$0xff]  ;;  %v12951_v5 = vld [vmem:[#allocation30_spill] sm:$0xff] }
  0xfd   : > { %v8704_v20 = vpop.f32.mrf.mxu1  ;;  %9003 = vmatmul.mubr.msk.f32.gmra.mxu1 %vm837_vm1, %v9797_v46  ;;  %8955 = vmatprep.mubr.msk.f32.mxu0 %vm837_vm1, %v12944_v6  ;;  %v12952_v6 = vld [vmem:[#allocation31_spill] sm:$0xff] }
  0xfe   : > { %v10469_v44 = vadd.f32 %v8704_v20, %v8654_v32  ;;  %9005 = vmatprep.mubr.msk.f32.mxu1 %vm837_vm1, %v9803_v48  ;;  %v1074_v7 = vpop.f32.mrf.mxu0 }
  0xff   : > { %v1592_v22 = vpop.f32.mrf.mxu1  ;;  %v1273_v11 = vsel %vm10463_vm9, %v1074_v7, 0.0 }
 0x100   : > { %v10477_v34 = vadd.f32 %v1592_v22, %v1273_v11  ;;  %v8657_v24 = vpop.f32.mrf.mxu0  ;;  %8956 = vmatmul.mubr.msk.f32.gmra.mxu0 %vm837_vm1, %v12945_v10  ;;  %v3491_v11 = vld [vmem:[%s9597_s12 + $0xf7] sm:$0xff] }
 0x101   : > { %v8707_v36 = vpop.f32.mrf.mxu1  ;;  %9006 = vmatmul.mubr.msk.f32.gmra.mxu1 %vm837_vm1, %v9817_v50  ;;  %8958 = vmatprep.mubr.msk.f32.mxu0 %vm837_vm1, %v12946_v17  ;;  %v12954_v17 = vld [vmem:[#allocation32_spill] sm:$0xff] }
 0x102   : > { %v10483_v46 = vadd.f32 %v8707_v36, %v8657_v24  ;;  %9008 = vmatprep.mubr.msk.f32.mxu1 %vm837_vm1, %v9823_v52  ;;  %v10489_v48 = vpop.f32.mrf.mxu0  ;;  %v3913_v24 = vld [vmem:[%s9597_s12 + $0xf8] sm:$0xff] }
 0x103   : > { %v10491_v21 = vpop.f32.mrf.mxu1 }
 0x104   : > { %v8660_v26 = vpop.f32.mrf.mxu0  ;;  %8959 = vmatmul.mubr.msk.f32.gmra.mxu0 %vm837_vm1, %v12947_v28 }
 0x105   : > { %v8710_v29 = vpop.f32.mrf.mxu1  ;;  %9009 = vmatmul.mubr.msk.f32.gmra.mxu1 %vm837_vm1, %v9837_v54  ;;  %8961 = vmatprep.mubr.msk.f32.mxu0 %vm837_vm1, %v12948_v38 }
 0x106   : > { %v10497_v50 = vadd.f32 %v8710_v29, %v8660_v26  ;;  %9011 = vmatprep.mubr.msk.f32.mxu1 %vm837_vm1, %v9843_v56  ;;  %v10503_v52 = vpop.f32.mrf.mxu0  ;;  %v3914_v26 = vld [vmem:[%s9597_s12 + $0x100] sm:$0xff] }
 0x107   : > { %v10505_v37 = vpop.f32.mrf.mxu1 }
 0x108   : > { %v8663_v40 = vpop.f32.mrf.mxu0  ;;  %8962 = vmatmul.mubr.msk.f32.gmra.mxu0 %vm837_vm1, %v12949_v51 }
 0x109   : > { %v8713_v49 = vpop.f32.mrf.mxu1  ;;  %9012 = vmatmul.mubr.msk.f32.gmra.mxu1 %vm837_vm1, %v9857_v58  ;;  %8964 = vmatprep.mubr.msk.f32.mxu0 %vm837_vm1, %v12950_v55 }
 0x10a   : > { %v10511_v54 = vadd.f32 %v8713_v49, %v8663_v40  ;;  %9014 = vmatprep.mubr.msk.f32.mxu1 %vm837_vm1, %v9863_v60  ;;  %v10517_v56 = vpop.f32.mrf.mxu0  ;;  %v3912_v60 = vld [vmem:[%s9597_s12 + $0xf0] sm:$0xff] }
 0x10b   : > { %v10519_v30 = vpop.f32.mrf.mxu1 }
 0x10c   : > { %v8666_v32 = vpop.f32.mrf.mxu0  ;;  %8965 = vmatmul.mubr.msk.f32.gmra.mxu0 %vm837_vm1, %v12951_v5  ;;  %v10566_v5 = vadd.s32 8, %v10300_v23 }
 0x10d   : > { %v8716_v20 = vpop.f32.mrf.mxu1  ;;  %9015 = vmatmul.mubr.msk.f32.gmra.mxu1 %vm837_vm1, %v9877_v62  ;;  %8967 = vmatprep.mubr.msk.f32.mxu0 %vm837_vm1, %v12952_v6 }
 0x10e   : > { %v10525_v58 = vadd.f32 %v8716_v20, %v8666_v32  ;;  %9017 = vmatprep.mubr.msk.f32.mxu1 %vm837_vm1, %v9883_v0  ;;  %v10532_v7 = vpop.f32.mrf.mxu0  ;;  %v3492_v0 = vld [vmem:[%s9597_s12 + $0xff] sm:$0xff]  ;;  %v3495_v32 = vld [vmem:[%s9597_s12 + $0x117] sm:$0xff]  ;;  %12959 = vst [vmem:[#allocation20_spill] sm:$0xff] %v10566_v5 }
 0x10f   : > { %v10534_v22 = vpop.f32.mrf.mxu1  ;;  %v3917_v20 = vld [vmem:[%s9597_s12 + $0x118] sm:$0xff] }
 0x110   : > { %12953 = vst [vmem:[#allocation15_spill] sm:$0xff] %v10534_v22  ;;  %v8669_v36 = vpop.f32.mrf.mxu0  ;;  %8968 = vmatmul.mubr.msk.f32.gmra.mxu0 %vm837_vm1, %v12954_v17  ;;  %v10585_v17 = vadd.s32 24, %v10300_v23 }
 0x111   : > { %v8719_v10 = vpop.f32.mrf.mxu1  ;;  %9018 = vmatmul.mubr.msk.f32.gmra.mxu1 %vm837_vm1, %v3912_v60  ;;  %8970 = vmatprep.mubr.msk.f32.mxu0 %vm837_vm1, %v3491_v11  ;;  %v3918_v11 = vld [vmem:[%s9597_s12 + $0x120] sm:$0xff] }
 0x112   : > { %v10541_v62 = vadd.f32 %v8719_v10, %v8669_v36  ;;  %9020 = vmatprep.mubr.msk.f32.mxu1 %vm837_vm1, %v3913_v24  ;;  %v10547_v29 = vpop.f32.mrf.mxu0  ;;  %v4277_v10 = vld [vmem:[%s9597_s12 + $0x29] sm:$0xff]  ;;  %12962 = vst [vmem:[#allocation23_spill] sm:$0xff] %v10585_v17 }
 0x113   : > { %12955 = vst [vmem:[#allocation16_spill] sm:$0xff] %v10547_v29  ;;  %v10549_v28 = vpop.f32.mrf.mxu1 }
 0x114   : > { %12956 = vst [vmem:[#allocation17_spill] sm:$0xff] %v10549_v28  ;;  %v8672_v38 = vpop.f32.mrf.mxu0  ;;  %8971 = vmatmul.mubr.msk.f32.gmra.mxu0 %vm837_vm1, %v3492_v0  ;;  %v417_v28 = vadd.s32 232, %v10300_v23 }
 0x115   : > { %v8722_v40 = vpop.f32.mrf.mxu1  ;;  %9021 = vmatmul.mubr.msk.f32.gmra.mxu1 %vm837_vm1, %v3914_v26  ;;  %8973 = vmatprep.mubr.msk.f32.mxu0 %vm837_vm1, %v10145_v15 }
 0x116   : > { %v10553_v49 = vadd.f32 %v8722_v40, %v8672_v38  ;;  %9023 = vmatprep.mubr.msk.f32.mxu1 %vm837_vm1, %v10293_v19  ;;  %v10559_v51 = vpop.f32.mrf.mxu0  ;;  %v3496_v19 = vld [vmem:[%s9597_s12 + $0x11f] sm:$0xff]  ;;  %v4278_v38 = vld [vmem:[%s9597_s12 + $0x31] sm:$0xff] }
 0x117   : > { %12957 = vst [vmem:[#allocation18_spill] sm:$0xff] %v10559_v51  ;;  %v10561_v55 = vpop.f32.mrf.mxu1 }
 0x118   : > { %12958 = vst [vmem:[#allocation19_spill] sm:$0xff] %v10561_v55  ;;  %v8675_v6 = vpop.f32.mrf.mxu0  ;;  %8974 = vmatmul.mubr.msk.f32.gmra.mxu0 %vm837_vm1, %v10159_v63  ;;  %v431_v63 = vand.u32 15, %v10566_v5  ;;  %v10621_v5 = vadd.s32 56, %v10300_v23 }
 0x119   : > { %v8725_v60 = vpop.f32.mrf.mxu1  ;;  %9024 = vmatmul.mubr.msk.f32.gmra.mxu1 %vm837_vm1, %v10305_v25  ;;  %8976 = vmatprep.mubr.msk.f32.mxu0 %vm837_vm1, %v3495_v32 }
 0x11a   : > { %v10572_v15 = vadd.f32 %v8725_v60, %v8675_v6  ;;  %9026 = vmatprep.mubr.msk.f32.mxu1 %vm837_vm1, %v3917_v20  ;;  %v10578_v24 = vpop.f32.mrf.mxu0  ;;  %vm10597_vm10 = vcmp.le.s32.totalorder %v431_v63, 14  ;;  %v12965_v20 = vmov 0  ;;  %v4279_v6 = vld [vmem:[%s9597_s12 + $0x39] sm:$0xff]  ;;  %v445_v60 = vand.u32 15, %v10585_v17  ;;  %v4280_v63 = vld [vmem:[%s9597_s12 + $0x41] sm:$0xff]  ;;  %v4281_v17 = vld [vmem:[%s9597_s12 + $0x49] sm:$0xff] }
 0x11b   : > { %12960 = vst [vmem:[#allocation21_spill] sm:$0xff] %v10578_v24  ;;  %v10580_v36 = vpop.f32.mrf.mxu1  ;;  %v12966_v20 = vsel %vm10597_vm10, 4294967295, %v12965_v20  ;;  %12973 = vst [vmem:[#allocation30_spill] sm:$0xff] %v10621_v5  ;;  %v415_v24 = vadd.s32 216, %v10300_v23 }
 0x11c   : > { %12961 = vst [vmem:[#allocation22_spill] sm:$0xff] %v10580_v36  ;;  %v8678_v25 = vpop.f32.mrf.mxu0  ;;  %8977 = vmatmul.mubr.msk.f32.gmra.mxu0 %vm837_vm1, %v3496_v19  ;;  %12967 = vst [vmem:[#allocation26_spill] sm:$0xff] %v12966_v20  ;;  %v10604_v19 = vadd.s32 40, %v10300_v23  ;;  %vm10614_vm11 = vcmp.le.s32.totalorder %v445_v60, 14 }
 0x11d   : > { %v8728_v0 = vpop.f32.mrf.mxu1  ;;  %9027 = vmatmul.mubr.msk.f32.gmra.mxu1 %vm837_vm1, %v3918_v11  ;;  %9031 = vmatprep.mubr.msk.f32.mxu0 %vm837_vm1, %v4277_v10  ;;  %v12971_v31 = vsel %vm10614_vm11, 4294967295, %v12970_v31 }
 0x11e   : > { %v10589_v26 = vadd.f32 %v8728_v0, %v8678_v25  ;;  %v10593_v40 = vpop.f32.mrf.mxu0  ;;  %12968 = vst [vmem:[#allocation27_spill] sm:$0xff] %v10604_v19  ;;  %12972 = vst [vmem:[#allocation29_spill] sm:$0xff] %v12971_v31 }
 0x11f   : > { %12963 = vst [vmem:[#allocation24_spill] sm:$0xff] %v10593_v40  ;;  %v10595_v32 = vpop.f32.mrf.mxu1 }
 0x120   : > { %12964 = vst [vmem:[#allocation25_spill] sm:$0xff] %v10595_v32  ;;  %v8733_v11 = vpop.f32.mrf.mxu0  ;;  %9032 = vmatmul.mubr.msk.f32.vlgmr.msra.gmra.mxu0 %vm837_vm1, %v4278_v38  ;;  %v459_v38 = vand.u32 15, %v10604_v19 }
 0x121   : > { %v8783_v10 = vpop.f32.mrf.mxu1  ;;  %v2168_v25 = vsel %vm10597_vm10, %v8733_v11, 0.0  ;;  %9034 = vmatprep.mubr.msk.f32.mxu0 %vm837_vm1, %v4279_v6 }
 0x122   : > { %v2200_v0 = vadd.f32 %v2168_v25, %v10332_v47  ;;  %v1912_v1 = vpop.f32.mrf.mxu0  ;;  %vm10636_vm12 = vcmp.le.s32.totalorder %v459_v38, 14 }
 0x123   : > { %v10612_v45 = vpop.f32.mrf.mxu1  ;;  %v10624_v6 = vadd.f32 %v1912_v1, %v10342_v53  ;;  %v12976_v53 = vmov 0  ;;  %v4283_v1 = vld [vmem:[%s9597_s12 + $0x59] sm:$0xff] }
 0x124   : > { %12969 = vst [vmem:[#allocation28_spill] sm:$0xff] %v10612_v45  ;;  %v10626_v11 = vadd.f32 %v8783_v10, %v2200_v0  ;;  %v8736_v47 = vpop.f32.mrf.mxu0  ;;  %9035 = vmatmul.mubr.msk.f32.gmra.mxu0 %vm837_vm1, %v4280_v63  ;;  %v12977_v53 = vsel %vm10636_vm12, 4294967295, %v12976_v53  ;;  %v473_v10 = vand.u32 15, %v10621_v5  ;;  %v397_v63 = vadd.s32 72, %v10300_v23 }
 0x125   : > { %12974 = vst [vmem:[#allocation31_spill] sm:$0xff] %v10624_v6  ;;  %v8786_v25 = vpop.f32.mrf.mxu1  ;;  %v2170_v60 = vsel %vm10614_vm11, %v8736_v47, 0.0  ;;  %9037 = vmatprep.mubr.msk.f32.mxu0 %vm837_vm1, %v4281_v17  ;;  %12978 = vst [vmem:[#allocation35_spill] sm:$0xff] %v12977_v53 }
 0x126   : > { %v2202_v19 = vadd.f32 %v2170_v60, %v10356_v2  ;;  %v1922_v59 = vpop.f32.mrf.mxu0  ;;  %v4284_v60 = vld [vmem:[%s9597_s12 + $0x61] sm:$0xff]  ;;  %vm10656_vm13 = vcmp.le.s32.totalorder %v473_v10, 14 }
 0x127   : > { %v10634_v32 = vpop.f32.mrf.mxu1  ;;  %v10644_v0 = vadd.f32 %v1922_v59, %v10364_v9  ;;  %v12981_v9 = vmov 0  ;;  %v4285_v59 = vld [vmem:[%s9597_s12 + $0x69] sm:$0xff] }
 0x128   : > { %12975 = vst [vmem:[#allocation32_spill] sm:$0xff] %v10634_v32  ;;  %v10646_v17 = vadd.f32 %v8786_v25, %v2202_v19  ;;  %v8739_v47 = vpop.f32.mrf.mxu0  ;;  %9038 = vmatmul.mubr.msk.f32.gmra.mxu0 %vm837_vm1, %v4282_v8  ;;  %v12982_v9 = vsel %vm10656_vm13, 4294967295, %v12981_v9  ;;  %v487_v8 = vand.u32 15, %v397_v63  ;;  %v399_v19 = vadd.s32 88, %v10300_v23 }
 0x129   : > { %12979 = vst [vmem:[#allocation36_spill] sm:$0xff] %v10644_v0  ;;  %v8789_v2 = vpop.f32.mrf.mxu1  ;;  %v2172_v38 = vsel %vm10636_vm12, %v8739_v47, 0.0  ;;  %9040 = vmatprep.mubr.msk.f32.mxu0 %vm837_vm1, %v4283_v1  ;;  %12983 = vst [vmem:[#allocation38_spill] sm:$0xff] %v12982_v9 }
 0x12a   : > { %v2204_v5 = vadd.f32 %v2172_v38, %v10376_v3  ;;  %v1932_v40 = vpop.f32.mrf.mxu0  ;;  %v4286_v38 = vld [vmem:[%s9597_s12 + $0x71] sm:$0xff]  ;;  %vm10675_vm14 = vcmp.le.s32.totalorder %v487_v8, 14 }
 0x12b   : > { %v10654_v35 = vpop.f32.mrf.mxu1  ;;  %v10663_v25 = vadd.f32 %v1932_v40, %v10384_v27  ;;  %v12986_v27 = vmov 0  ;;  %v501_v40 = vand.u32 15, %v399_v19 }
 0x12c   : > { %12980 = vst [vmem:[#allocation37_spill] sm:$0xff] %v10654_v35  ;;  %v10665_v1 = vadd.f32 %v8789_v2, %v2204_v5  ;;  %v8742_v47 = vpop.f32.mrf.mxu0  ;;  %9041 = vmatmul.mubr.msk.f32.gmra.mxu0 %vm837_vm1, %v4284_v60  ;;  %v12987_v27 = vsel %vm10675_vm14, 4294967295, %v12986_v27  ;;  %v4287_v5 = vld [vmem:[%s9597_s12 + $0x79] sm:$0xff]  ;;  %v401_v2 = vadd.s32 104, %v10300_v23 }
 0x12d   : > { %12984 = vst [vmem:[#allocation39_spill] sm:$0xff] %v10663_v25  ;;  %v8792_v3 = vpop.f32.mrf.mxu1  ;;  %v2174_v10 = vsel %vm10656_vm13, %v8742_v47, 0.0  ;;  %9043 = vmatprep.mubr.msk.f32.mxu0 %vm837_vm1, %v4285_v59  ;;  %12988 = vst [vmem:[#allocation41_spill] sm:$0xff] %v12987_v27  ;;  %vm10694_vm15 = vcmp.le.s32.totalorder %v501_v40, 14 }
 0x12e   : > { %v2206_v63 = vadd.f32 %v2174_v10, %v10395_v39  ;;  %v1942_v12 = vpop.f32.mrf.mxu0  ;;  %v4288_v10 = vld [vmem:[%s9597_s12 + $0x81] sm:$0xff] }
 0x12f   : > { %v10673_v35 = vpop.f32.mrf.mxu1  ;;  %v10682_v60 = vadd.f32 %v1942_v12, %v10403_v18  ;;  %v12991_v12 = vmov 0  ;;  %v4289_v18 = vld [vmem:[%s9597_s12 + $0x89] sm:$0xff] }
 0x130   : > { %12985 = vst [vmem:[#allocation40_spill] sm:$0xff] %v10673_v35  ;;  %v10684_v59 = vadd.f32 %v8792_v3, %v2206_v63  ;;  %v8745_v47 = vpop.f32.mrf.mxu0  ;;  %9044 = vmatmul.mubr.msk.f32.gmra.mxu0 %vm837_vm1, %v4286_v38  ;;  %v12992_v12 = vsel %vm10694_vm15, 4294967295, %v12991_v12  ;;  %v515_v3 = vand.u32 15, %v401_v2  ;;  %v403_v38 = vadd.s32 120, %v10300_v23 }
 0x131   : > { %12989 = vst [vmem:[#allocation42_spill] sm:$0xff] %v10682_v60  ;;  %v8795_v39 = vpop.f32.mrf.mxu1  ;;  %v2176_v8 = vsel %vm10675_vm14, %v8745_v47, 0.0  ;;  %9046 = vmatprep.mubr.msk.f32.mxu0 %vm837_vm1, %v4287_v5  ;;  %12993 = vst [vmem:[#allocation44_spill] sm:$0xff] %v12992_v12 }
 0x132   : > { %v2208_v19 = vadd.f32 %v2176_v8, %v10414_v4  ;;  %v1952_v35 = vpop.f32.mrf.mxu0  ;;  %v4290_v8 = vld [vmem:[%s9597_s12 + $0x91] sm:$0xff]  ;;  %vm10713_vm0 = vcmp.le.s32.totalorder %v515_v3, 14 }
 0x133   : > { %v10692_v25 = vpop.f32.mrf.mxu1  ;;  %v10701_v63 = vadd.f32 %v1952_v35, %v10422_v13  ;;  %v12996_v35 = vmov 0  ;;  %v4291_v13 = vld [vmem:[%s9597_s12 + $0x99] sm:$0xff] }
 0x134   : > { %12990 = vst [vmem:[#allocation43_spill] sm:$0xff] %v10692_v25  ;;  %v10703_v5 = vadd.f32 %v8795_v39, %v2208_v19  ;;  %v8748_v47 = vpop.f32.mrf.mxu0  ;;  %9047 = vmatmul.mubr.msk.f32.gmra.mxu0 %vm837_vm1, %v4288_v10  ;;  %v12997_v35 = vsel %vm10713_vm0, 4294967295, %v12996_v35  ;;  %v529_v39 = vand.u32 15, %v403_v38  ;;  %v405_v10 = vadd.s32 136, %v10300_v23 }
 0x135   : > { %12994 = vst [vmem:[#allocation45_spill] sm:$0xff] %v10701_v63  ;;  %v8798_v4 = vpop.f32.mrf.mxu1  ;;  %v2178_v40 = vsel %vm10694_vm15, %v8748_v47, 0.0  ;;  %9049 = vmatprep.mubr.msk.f32.mxu0 %vm837_vm1, %v4289_v18  ;;  %12998 = vst [vmem:[#allocation47_spill] sm:$0xff] %v12997_v35 }
 0x136   : > { %v2210_v2 = vadd.f32 %v2178_v40, %v10433_v14  ;;  %v1962_v25 = vpop.f32.mrf.mxu0  ;;  %v4292_v40 = vld [vmem:[%s9597_s12 + $0xa1] sm:$0xff]  ;;  %vm10732_vm7 = vcmp.le.s32.totalorder %v529_v39, 14 }
 0x137   : > { %v10711_v60 = vpop.f32.mrf.mxu1  ;;  %v10720_v19 = vadd.f32 %v1962_v25, %v10441_v33  ;;  %v13000_v33 = vmov 0  ;;  %v4293_v25 = vld [vmem:[%s9597_s12 + $0xa9] sm:$0xff] }
 0x138   : > { %12995 = vst [vmem:[#allocation46_spill] sm:$0xff] %v10711_v60  ;;  %v10722_v18 = vadd.f32 %v8798_v4, %v2210_v2  ;;  %v8751_v47 = vpop.f32.mrf.mxu0  ;;  %9050 = vmatmul.mubr.msk.f32.gmra.mxu0 %vm837_vm1, %v4290_v8  ;;  %v13001_v33 = vsel %vm10732_vm7, 4294967295, %v13000_v33  ;;  %v543_v4 = vand.u32 15, %v405_v10  ;;  %v407_v8 = vadd.s32 152, %v10300_v23 }
 0x139   : > { %12999 = vst [vmem:[#allocation48_spill] sm:$0xff] %v10720_v19  ;;  %v8801_v14 = vpop.f32.mrf.mxu1  ;;  %v2180_v3 = vsel %vm10713_vm0, %v8751_v47, 0.0  ;;  %9052 = vmatprep.mubr.msk.f32.mxu0 %vm837_vm1, %v4291_v13  ;;  %13002 = vst [vmem:[#allocation49_spill] sm:$0xff] %v13001_v33 }
 0x13a   : > { %v2212_v38 = vadd.f32 %v2180_v3, %v10451_v16  ;;  %v1972_v63 = vpop.f32.mrf.mxu0  ;;  %v4294_v3 = vld [vmem:[%s9597_s12 + $0xb1] sm:$0xff]  ;;  %vm10751_vm6 = vcmp.le.s32.totalorder %v543_v4, 14 }
 0x13b   : > { %v10730_v60 = vpop.f32.mrf.mxu1  ;;  %v10739_v2 = vadd.f32 %v1972_v63, %v10459_v57  ;;  %v13003_v57 = vmov 0  ;;  %v4295_v63 = vld [vmem:[%s9597_s12 + $0xb9] sm:$0xff] }
 0x13c   : > { %v10741_v13 = vadd.f32 %v8801_v14, %v2212_v38  ;;  %v8754_v47 = vpop.f32.mrf.mxu0  ;;  %9053 = vmatmul.mubr.msk.f32.gmra.mxu0 %vm837_vm1, %v4292_v40  ;;  %v13004_v57 = vsel %vm10751_vm6, 4294967295, %v13003_v57  ;;  %v557_v14 = vand.u32 15, %v407_v8  ;;  %v409_v40 = vadd.s32 168, %v10300_v23 }
 0x13d   : > { %v8804_v16 = vpop.f32.mrf.mxu1  ;;  %v2182_v39 = vsel %vm10732_vm7, %v8754_v47, 0.0  ;;  %9055 = vmatprep.mubr.msk.f32.mxu0 %vm837_vm1, %v4293_v25  ;;  %13005 = vst [vmem:[#allocation50_spill] sm:$0xff] %v13004_v57 }
 0x13e   : > { %v2214_v10 = vadd.f32 %v2182_v39, %v10469_v44  ;;  %v1982_v19 = vpop.f32.mrf.mxu0  ;;  %v4296_v39 = vld [vmem:[%s9597_s12 + $0xc1] sm:$0xff]  ;;  %vm10772_vm5 = vcmp.le.s32.totalorder %v557_v14, 14  ;;  %v4298_v14 = vld [vmem:[%s9597_s12 + $0xd1] sm:$0xff] }
 0x13f   : > { %v10749_v0 = vpop.f32.mrf.mxu1  ;;  %v10758_v38 = vadd.f32 %v1982_v19, %v10477_v34  ;;  %v13006_v34 = vmov 0  ;;  %v4297_v19 = vld [vmem:[%s9597_s12 + $0xc9] sm:$0xff] }
 0x140   : > { %v10760_v25 = vadd.f32 %v8804_v16, %v2214_v10  ;;  %v8757_v47 = vpop.f32.mrf.mxu0  ;;  %9056 = vmatmul.mubr.msk.f32.gmra.mxu0 %vm837_vm1, %v4294_v3  ;;  %v13007_v34 = vsel %vm10772_vm5, 4294967295, %v13006_v34  ;;  %v571_v16 = vand.u32 15, %v409_v40  ;;  %v411_v3 = vadd.s32 184, %v10300_v23 }
 0x141   : > { %v8807_v44 = vpop.f32.mrf.mxu1  ;;  %v2184_v4 = vsel %vm10751_vm6, %v8757_v47, 0.0  ;;  %9058 = vmatprep.mubr.msk.f32.mxu0 %vm837_vm1, %v4295_v63  ;;  %13008 = vst [vmem:[#allocation51_spill] sm:$0xff] %v13007_v34 }
 0x142   : > { %v2216_v8 = vadd.f32 %v2184_v4, %v10483_v46  ;;  %v10768_v61 = vpop.f32.mrf.mxu0  ;;  %vm10790_vm4 = vcmp.le.s32.totalorder %v571_v16, 14  ;;  %v4300_v16 = vld [vmem:[%s9597_s12 + $0xe1] sm:$0xff] }
 0x143   : > { %v10770_v32 = vpop.f32.mrf.mxu1 }
 0x144   : > { %v10778_v10 = vadd.f32 %v8807_v44, %v2216_v8  ;;  %v8760_v47 = vpop.f32.mrf.mxu0  ;;  %9059 = vmatmul.mubr.msk.f32.gmra.mxu0 %vm837_vm1, %v4296_v39  ;;  %v13009_v44 = vmov 0  ;;  %v4299_v39 = vld [vmem:[%s9597_s12 + $0xd9] sm:$0xff]  ;;  %v585_v8 = vand.u32 15, %v411_v3 }
 0x145   : > { %v8810_v63 = vpop.f32.mrf.mxu1  ;;  %v2186_v46 = vsel %vm10772_vm5, %v8760_v47, 0.0  ;;  %9061 = vmatprep.mubr.msk.f32.mxu0 %vm837_vm1, %v4297_v19  ;;  %v13010_v44 = vsel %vm10790_vm4, 4294967295, %v13009_v44 }
 0x146   : > { %v2218_v4 = vadd.f32 %v2186_v46, %v10497_v50  ;;  %v10786_v6 = vpop.f32.mrf.mxu0  ;;  %13011 = vst [vmem:[#allocation52_spill] sm:$0xff] %v13010_v44  ;;  %vm10808_vm3 = vcmp.le.s32.totalorder %v585_v8, 14  ;;  %v4302_v8 = vld [vmem:[%s9597_s12 + $0xf1] sm:$0xff] }
 0x147   : > { %v10788_v40 = vpop.f32.mrf.mxu1 }
 0x148   : > { %v10796_v47 = vadd.f32 %v8810_v63, %v2218_v4  ;;  %v8763_v45 = vpop.f32.mrf.mxu0  ;;  %9062 = vmatmul.mubr.msk.f32.gmra.mxu0 %vm837_vm1, %v4298_v14  ;;  %v13013_v63 = vmov 0  ;;  %v4301_v14 = vld [vmem:[%s9597_s12 + $0xe9] sm:$0xff]  ;;  %v599_v4 = vand.u32 15, %v413_v41 }
 0x149   : > { %v8813_v19 = vpop.f32.mrf.mxu1  ;;  %v2188_v50 = vsel %vm10790_vm4, %v8763_v45, 0.0  ;;  %9064 = vmatprep.mubr.msk.f32.mxu0 %vm837_vm1, %v4299_v39  ;;  %v13014_v63 = vsel %vm10808_vm3, 4294967295, %v13013_v63 }
 0x14a   : > { %v2220_v46 = vadd.f32 %v2188_v50, %v10511_v54  ;;  %v10804_v36 = vpop.f32.mrf.mxu0  ;;  %13015 = vst [vmem:[#allocation54_spill] sm:$0xff] %v13014_v63  ;;  %vm10826_vm2 = vcmp.le.s32.totalorder %v599_v4, 14  ;;  %v4304_v4 = vld [vmem:[%s9597_s12 + $0x101] sm:$0xff] }
 0x14b   : > { %v10806_v3 = vpop.f32.mrf.mxu1 }
 0x14c   : > { %13012 = vst [vmem:[#allocation53_spill] sm:$0xff] %v10806_v3  ;;  %v10814_v45 = vadd.f32 %v8813_v19, %v2220_v46  ;;  %v8766_v55 = vpop.f32.mrf.mxu0  ;;  %9065 = vmatmul.mubr.msk.f32.gmra.mxu0 %vm837_vm1, %v4300_v16  ;;  %v13018_v19 = vmov 0  ;;  %v4303_v16 = vld [vmem:[%s9597_s12 + $0xf9] sm:$0xff]  ;;  %v613_v46 = vand.u32 15, %v415_v24 }
 0x14d   : > { %v8816_v39 = vpop.f32.mrf.mxu1  ;;  %v2190_v54 = vsel %vm10808_vm3, %v8766_v55, 0.0  ;;  %9067 = vmatprep.mubr.msk.f32.mxu0 %vm837_vm1, %v4301_v14  ;;  %v13019_v19 = vsel %vm10826_vm2, 4294967295, %v13018_v19 }
 0x14e   : > { %v2222_v50 = vadd.f32 %v2190_v54, %v10525_v58  ;;  %v10822_v51 = vpop.f32.mrf.mxu0  ;;  %13020 = vst [vmem:[#allocation57_spill] sm:$0xff] %v13019_v19  ;;  %vm10844_vm9 = vcmp.le.s32.totalorder %v613_v46, 14  ;;  %v4306_v46 = vld [vmem:[%s9597_s12 + $0x111] sm:$0xff] }
 0x14f   : > { %13016 = vst [vmem:[#allocation55_spill] sm:$0xff] %v10822_v51  ;;  %v10824_v41 = vpop.f32.mrf.mxu1  ;;  %v419_v51 = vadd.s32 248, %v10300_v23 }
 0x150   : > { %13017 = vst [vmem:[#allocation56_spill] sm:$0xff] %v10824_v41  ;;  %v10832_v55 = vadd.f32 %v8816_v39, %v2222_v50  ;;  %v8769_v29 = vpop.f32.mrf.mxu0  ;;  %9068 = vmatmul.mubr.msk.f32.gmra.mxu0 %vm837_vm1, %v4302_v8  ;;  %v13023_v39 = vmov 0  ;;  %v4305_v8 = vld [vmem:[%s9597_s12 + $0x109] sm:$0xff]  ;;  %v627_v50 = vand.u32 15, %v417_v28 }
 0x151   : > { %v8819_v14 = vpop.f32.mrf.mxu1  ;;  %v2192_v58 = vsel %vm10826_vm2, %v8769_v29, 0.0  ;;  %9070 = vmatprep.mubr.msk.f32.mxu0 %vm837_vm1, %v4303_v16  ;;  %v13024_v39 = vsel %vm10844_vm9, 4294967295, %v13023_v39 }
 0x152   : > { %v2224_v54 = vadd.f32 %v2192_v58, %v10541_v62  ;;  %v10840_v41 = vpop.f32.mrf.mxu0  ;;  %13025 = vst [vmem:[#allocation60_spill] sm:$0xff] %v13024_v39  ;;  %vm10862_vm8 = vcmp.le.s32.totalorder %v627_v50, 14 }
 0x153   : > { %13021 = vst [vmem:[#allocation58_spill] sm:$0xff] %v10840_v41  ;;  %v10842_v24 = vpop.f32.mrf.mxu1 }
 0x154   : > { %13022 = vst [vmem:[#allocation59_spill] sm:$0xff] %v10842_v24  ;;  %v10850_v29 = vadd.f32 %v8819_v14, %v2224_v54  ;;  %v8772_v22 = vpop.f32.mrf.mxu0  ;;  %9071 = vmatmul.mubr.msk.f32.gmra.mxu0 %vm837_vm1, %v4304_v4  ;;  %v13028_v14 = vmov 0  ;;  %v4307_v54 = vld [vmem:[%s9597_s12 + $0x119] sm:$0xff]  ;;  %v641_v4 = vand.u32 15, %v419_v51  ;;  %v13033_v51 = vmov 0 }
 0x155   : > { %v8822_v16 = vpop.f32.mrf.mxu1  ;;  %v2194_v62 = vsel %vm10844_vm9, %v8772_v22, 0.0  ;;  %9073 = vmatprep.mubr.msk.f32.mxu0 %vm837_vm1, %v4305_v8  ;;  %v13029_v14 = vsel %vm10862_vm8, 4294967295, %v13028_v14 }
 0x156   : > { %v2226_v58 = vadd.f32 %v2194_v62, %v10553_v49  ;;  %v10858_v24 = vpop.f32.mrf.mxu0  ;;  %13030 = vst [vmem:[#allocation63_spill] sm:$0xff] %v13029_v14  ;;  %v4308_v49 = vld [vmem:[%s9597_s12 + $0x121] sm:$0xff]  ;;  %vm10879_vm9 = vcmp.le.s32.totalorder %v641_v4, 14  ;;  %s381_s12 = scalar_lea.vmem [#allocation4], %s7471_s23  ;;  %s9403_s23 = scalar_lea.vmem %s9402_s8, 64 }
 0x157   : > { %13026 = vst [vmem:[#allocation61_spill] sm:$0xff] %v10858_v24  ;;  %v10860_v28 = vpop.f32.mrf.mxu1  ;;  %v13034_v51 = vsel %vm10879_vm9, 4294967295, %v13033_v51  ;;  %s7408_s13 = sshll.u32 %s381_s12, 4  ;;  %s7409_s13 = int_to_ptr.vmem [resolvable:$true] %s7408_s13 }
 0x158   : > { %13027 = vst [vmem:[#allocation62_spill] sm:$0xff] %v10860_v28  ;;  %v10867_v41 = vadd.f32 %v8822_v16, %v2226_v58  ;;  %v8775_v3 = vpop.f32.mrf.mxu0  ;;  %9074 = vmatmul.mubr.msk.f32.gmra.mxu0 %vm837_vm1, %v4306_v46  ;;  %13035 = vst [vmem:[#allocation66_spill] sm:$0xff] %v13034_v51  ;;  %s9397_s0 = scalar_lea.vmem %s7409_s13, 32  ;;  %p9404_p0 = scmp.lt.s32.totalorder %s7409_s13, %s9402_s8 }
 0x159   : > { %v8825_v22 = vpop.f32.mrf.mxu1  ;;  %v2196_v8 = vsel %vm10862_vm8, %v8775_v3, 0.0  ;;  %9076 = vmatprep.mubr.msk.f32.mxu0 %vm837_vm1, %v4307_v54  ;;  %p9398_p11 = scmp.ne.s32.totalorder %s7409_s13, %s9397_s0  ;;  %p9405_p1 = scmp.lt.s32.totalorder %s9403_s23, %s9397_s0 }
 0x15a   : > { %v2228_v62 = vadd.f32 %v2196_v8, %v10572_v15  ;;  %v10875_v50 = vpop.f32.mrf.mxu0 }
 0x15b   : > { %13031 = vst [vmem:[#allocation64_spill] sm:$0xff] %v10875_v50  ;;  %v10877_v28 = vpop.f32.mrf.mxu1  ;;  %p9399_p12 = pnand %p9398_p11, %p9564_p5  ;;  %p9406_p2 = por %p9405_p1, %p9404_p0 }
 0x15c   : > { %13032 = vst [vmem:[#allocation65_spill] sm:$0xff] %v10877_v28  ;;  %v10883_v16 = vadd.f32 %v8825_v22, %v2228_v62  ;;  %v8778_v46 = vpop.f32.mrf.mxu0  ;;  %9077 = vmatmul.mubr.msk.f32.gmra.mxu0 %vm837_vm1, %v4308_v49  ;;  %vm13050_vm1 = vnez %v13024_v39 }
 0x15d   : > { %v8828_v58 = vpop.f32.mrf.mxu1  ;;  %v2198_v3 = vsel %vm10879_vm9, %v8778_v46, 0.0  ;;  %p9400_p13 = pneg %p9399_p12 }
 0x15e   : > { %v2230_v54 = vadd.f32 %v2198_v3, %v10589_v26  ;;  %v10889_v15 = vpop.f32.mrf.mxu0 }
 0x15f   : > { %13036 = vst [vmem:[#allocation67_spill] sm:$0xff] %v10889_v15  ;;  %v10891_v8 = vpop.f32.mrf.mxu1  ;;  %p9407_p3 = pnand %p9406_p2, %p9400_p13 }
 0x160   : > { %13037 = vst [vmem:[#allocation68_spill] sm:$0xff] %v10891_v8  ;;  %v10893_v28 = vadd.f32 %v8828_v58, %v2230_v54  ;;  %v8833_v4 = vpop.f32.mrf.mxu0 }
 0x161   : > { %v8883_v50 = vpop.f32.mrf.mxu1  ;;  %v3012_v22 = vadd.f32 %v8833_v4, %v10626_v11 }
 0x162   : > { %v3402_v62 = vsel %vm10597_vm10, %v8883_v50, 0.0  ;;  %v10898_v49 = vpop.f32.mrf.mxu0 }
 0x163   : > { %13038 = vst [vmem:[#allocation69_spill] sm:$0xff] %v10898_v49  ;;  %v10900_v24 = vpop.f32.mrf.mxu1  ;;  %v10902_v46 = vadd.f32 %v3402_v62, %v3012_v22 }
 0x164   : > { %13039 = vst [vmem:[#allocation70_spill] sm:$0xff] %v10900_v24  ;;  %v8836_v26 = vpop.f32.mrf.mxu0 }
 0x165   : > { %v8886_v3 = vpop.f32.mrf.mxu1  ;;  %v3014_v51 = vadd.f32 %v8836_v26, %v10646_v17 }
 0x166   : > { %v3404_v58 = vsel %vm10614_vm11, %v8886_v3, 0.0  ;;  %v10907_v54 = vpop.f32.mrf.mxu0 }
 0x167   : > { %13040 = vst [vmem:[#allocation71_spill] sm:$0xff] %v10907_v54  ;;  %v10909_v8 = vpop.f32.mrf.mxu1  ;;  %v10911_v11 = vadd.f32 %v3404_v58, %v3014_v51 }
 0x168   : > { %13041 = vst [vmem:[#allocation72_spill] sm:$0xff] %v10909_v8  ;;  %v8839_v50 = vpop.f32.mrf.mxu0 }
 0x169   : > { %v8889_v4 = vpop.f32.mrf.mxu1  ;;  %v3016_v15 = vadd.f32 %v8839_v50, %v10665_v1 }
 0x16a   : > { %v3406_v22 = vsel %vm10636_vm12, %v8889_v4, 0.0  ;;  %v10916_v62 = vpop.f32.mrf.mxu0 }
 0x16b   : > { %13042 = vst [vmem:[#allocation73_spill] sm:$0xff] %v10916_v62  ;;  %v10918_v20 = vpop.f32.mrf.mxu1  ;;  %v10920_v17 = vadd.f32 %v3406_v22, %v3016_v15 }
 0x16c   : > { %13043 = vst [vmem:[#allocation74_spill] sm:$0xff] %v10918_v20  ;;  %v8842_v26 = vpop.f32.mrf.mxu0 }
 0x16d   : > { %v8892_v3 = vpop.f32.mrf.mxu1  ;;  %v3018_v31 = vadd.f32 %v8842_v26, %v10684_v59 }
 0x16e   : > { %v3408_v51 = vsel %vm10656_vm13, %v8892_v3, 0.0  ;;  %v10925_v58 = vpop.f32.mrf.mxu0 }
 0x16f   : > { %13044 = vst [vmem:[#allocation75_spill] sm:$0xff] %v10925_v58  ;;  %v10927_v8 = vpop.f32.mrf.mxu1  ;;  %v10929_v1 = vadd.f32 %v3408_v51, %v3018_v31 }
 0x170   : > { %13045 = vst [vmem:[#allocation76_spill] sm:$0xff] %v10927_v8  ;;  %v8845_v50 = vpop.f32.mrf.mxu0 }
 0x171   : > { %v8895_v4 = vpop.f32.mrf.mxu1  ;;  %v3020_v53 = vadd.f32 %v8845_v50, %v10703_v5 }
 0x172   : > { %v3410_v15 = vsel %vm10675_vm14, %v8895_v4, 0.0  ;;  %v10934_v22 = vpop.f32.mrf.mxu0 }
 0x173   : > { %13046 = vst [vmem:[#allocation77_spill] sm:$0xff] %v10934_v22  ;;  %v10936_v20 = vpop.f32.mrf.mxu1  ;;  %v10938_v59 = vadd.f32 %v3410_v15, %v3020_v53 }
 0x174   : > { %13047 = vst [vmem:[#allocation78_spill] sm:$0xff] %v10936_v20  ;;  %v8848_v26 = vpop.f32.mrf.mxu0 }
 0x175   : > { %v8898_v3 = vpop.f32.mrf.mxu1  ;;  %v3022_v9 = vadd.f32 %v8848_v26, %v10722_v18 }
 0x176   : > { %v3412_v31 = vsel %vm10694_vm15, %v8898_v3, 0.0  ;;  %v10943_v51 = vpop.f32.mrf.mxu0 }
 0x177   : > { %13048 = vst [vmem:[#allocation79_spill] sm:$0xff] %v10943_v51  ;;  %v10945_v8 = vpop.f32.mrf.mxu1  ;;  %v10947_v5 = vadd.f32 %v3412_v31, %v3022_v9 }
 0x178   : > { %13049 = vst [vmem:[#allocation80_spill] sm:$0xff] %v10945_v8  ;;  %v8851_v50 = vpop.f32.mrf.mxu0 }
 0x179   : > { %v8901_v4 = vpop.f32.mrf.mxu1  ;;  %v3024_v27 = vadd.f32 %v8851_v50, %v10741_v13 }
 0x17a   : > { %v3414_v53 = vsel %vm10713_vm0, %v8901_v4, 0.0  ;;  %v10952_v15 = vpop.f32.mrf.mxu0 }
 0x17b   : > { %v10954_v20 = vpop.f32.mrf.mxu1  ;;  %v10956_v18 = vadd.f32 %v3414_v53, %v3024_v27 }
 0x17c   : > { %v8854_v26 = vpop.f32.mrf.mxu0 }
 0x17d   : > { %v8904_v3 = vpop.f32.mrf.mxu1  ;;  %v3026_v12 = vadd.f32 %v8854_v26, %v10760_v25 }
 0x17e   : > { %v3416_v9 = vsel %vm10732_vm7, %v8904_v3, 0.0  ;;  %v10961_v31 = vpop.f32.mrf.mxu0 }
 0x17f   : > { %v10963_v8 = vpop.f32.mrf.mxu1  ;;  %v10965_v13 = vadd.f32 %v3416_v9, %v3026_v12 }
 0x180   : > { %v8857_v50 = vpop.f32.mrf.mxu0 }
 0x181   : > { %v8907_v4 = vpop.f32.mrf.mxu1  ;;  %v3028_v35 = vadd.f32 %v8857_v50, %v10778_v10 }
 0x182   : > { %v3418_v27 = vsel %vm10751_vm6, %v8907_v4, 0.0  ;;  %v10970_v53 = vpop.f32.mrf.mxu0 }
 0x183   : > { %v10972_v51 = vpop.f32.mrf.mxu1  ;;  %v10974_v25 = vadd.f32 %v3418_v27, %v3028_v35 }
 0x184   : > { %v8860_v26 = vpop.f32.mrf.mxu0 }
 0x185   : > { %v8910_v3 = vpop.f32.mrf.mxu1  ;;  %v3030_v33 = vadd.f32 %v8860_v26, %v10796_v47 }
 0x186   : > { %v3420_v12 = vsel %vm10772_vm5, %v8910_v3, 0.0  ;;  %v10979_v9 = vpop.f32.mrf.mxu0  ;;  %vm13065_vm5 = vnez %v12939_v43 }
 0x187   : > { %v10981_v22 = vpop.f32.mrf.mxu1  ;;  %v10983_v10 = vadd.f32 %v3420_v12, %v3030_v33 }
 0x188   : > { %v8863_v50 = vpop.f32.mrf.mxu0 }
 0x189   : > { %v8913_v4 = vpop.f32.mrf.mxu1  ;;  %v3032_v57 = vadd.f32 %v8863_v50, %v10814_v45 }
 0x18a   : > { %v3422_v35 = vsel %vm10790_vm4, %v8913_v4, 0.0  ;;  %v10988_v27 = vpop.f32.mrf.mxu0 }
 0x18b   : > { %v10990_v58 = vpop.f32.mrf.mxu1  ;;  %v10992_v47 = vadd.f32 %v3422_v35, %v3032_v57 }
 0x18c   : > { %v8866_v26 = vpop.f32.mrf.mxu0 }
 0x18d   : > { %v8916_v3 = vpop.f32.mrf.mxu1  ;;  %v3034_v34 = vadd.f32 %v8866_v26, %v10832_v55 }
 0x18e   : > { %v3424_v33 = vsel %vm10808_vm3, %v8916_v3, 0.0  ;;  %v10997_v12 = vpop.f32.mrf.mxu0  ;;  %vm13068_vm3 = vnez %v12943_v42 }
 0x18f   : > { %v10999_v62 = vpop.f32.mrf.mxu1  ;;  %v11001_v45 = vadd.f32 %v3424_v33, %v3034_v34 }
 0x190   : > { %v8869_v50 = vpop.f32.mrf.mxu0 }
 0x191   : > { %v8919_v4 = vpop.f32.mrf.mxu1  ;;  %v3036_v44 = vadd.f32 %v8869_v50, %v10850_v29 }
 0x192   : > { %v3426_v57 = vsel %vm10826_vm2, %v8919_v4, 0.0  ;;  %v11006_v35 = vpop.f32.mrf.mxu0 }
 0x193   : > { %v11008_v54 = vpop.f32.mrf.mxu1  ;;  %v11010_v55 = vadd.f32 %v3426_v57, %v3036_v44 }
 0x194   : > { %v8872_v26 = vpop.f32.mrf.mxu0 }
 0x195   : > { %v8922_v3 = vpop.f32.mrf.mxu1  ;;  %v3038_v63 = vadd.f32 %v8872_v26, %v10867_v41 }
 0x196   : > { %v3428_v34 = vsel %vm13050_vm1, %v8922_v3, 0.0  ;;  %v11015_v33 = vpop.f32.mrf.mxu0 }
 0x197   : > { %v11017_v24 = vpop.f32.mrf.mxu1  ;;  %v11019_v29 = vadd.f32 %v3428_v34, %v3038_v63 }
 0x198   : > { %v8875_v50 = vpop.f32.mrf.mxu0 }
 0x199   : > { %v8925_v4 = vpop.f32.mrf.mxu1  ;;  %v3040_v19 = vadd.f32 %v8875_v50, %v10883_v16 }
 0x19a   : > { %v3430_v44 = vsel %vm10862_vm8, %v8925_v4, 0.0  ;;  %v11024_v57 = vpop.f32.mrf.mxu0 }
 0x19b   : > { %13051 = vst [vmem:[#allocation81_spill] sm:$0xff] %v11024_v57  ;;  %v11026_v49 = vpop.f32.mrf.mxu1  ;;  %v11028_v41 = vadd.f32 %v3430_v44, %v3040_v19 }
 0x19c   : > { %13052 = vst [vmem:[#allocation82_spill] sm:$0xff] %v11026_v49  ;;  %v8878_v26 = vpop.f32.mrf.mxu0 }
 0x19d   : > { %v11030_v3 = vpop.f32.mrf.mxu1  ;;  %v11033_v39 = vadd.f32 %v8878_v26, %v10893_v28 }
 0x19e   : > { %13053 = vst [vmem:[#allocation83_spill] sm:$0xff] %v11030_v3  ;;  %v11035_v63 = vpop.f32.mrf.mxu0 }
 0x19f   : > { %13054 = vst [vmem:[#allocation84_spill] sm:$0xff] %v11033_v39  ;;  %13055 = vst [vmem:[#allocation85_spill] sm:$0xff] %v11035_v63  ;;  %v11037_v34 = vpop.f32.mrf.mxu1 }
 0x1a0   : > { %13056 = vst [vmem:[#allocation86_spill] sm:$0xff] %v11037_v34  ;;  %v8933_v16 = vpop.f32.mrf.mxu0  ;;  %v404_v34 = vadd.s32 128, %v10300_v23 }
 0x1a1   : > { %v8983_v50 = vpop.f32.mrf.mxu1  ;;  %v3856_v4 = vadd.f32 %v8933_v16, %v10902_v46 }
 0x1a2   : > { %v11040_v14 = vpop.f32.mrf.mxu0 }
 0x1a3   : > { %13057 = vst [vmem:[#allocation87_spill] sm:$0xff] %v11040_v14  ;;  %v11042_v57 = vpop.f32.mrf.mxu1  ;;  %v11044_v19 = vadd.f32 %v8983_v50, %v3856_v4 }
 0x1a4   : > { %13058 = vst [vmem:[#allocation88_spill] sm:$0xff] %v11042_v57  ;;  %v8936_v44 = vpop.f32.mrf.mxu0 }
 0x1a5   : > { %13059 = vst [vmem:[#allocation89_spill] sm:$0xff] %v11044_v19  ;;  %v8986_v49 = vpop.f32.mrf.mxu1  ;;  %v3858_v3 = vadd.f32 %v8936_v44, %v10911_v11  ;;  %v536_v19 = vand.u32 15, %v404_v34  ;;  %v406_v11 = vadd.s32 144, %v10300_v23  ;;  %v2601_v34 = vsel %vm13065_vm5, %v10730_v60, 0.0 }
 0x1a6   : > { %v11047_v28 = vpop.f32.mrf.mxu0  ;;  %v2603_v60 = vsel %vm13068_vm3, %v10749_v0, 0.0 }
 0x1a7   : > { %v11049_v26 = vpop.f32.mrf.mxu1  ;;  %v11051_v39 = vadd.f32 %v8986_v49, %v3858_v3  ;;  %vm11067_vm6 = vcmp.ge.s32.totalorder %v536_v19, 1 }
 0x1a8   : > { %13060 = vst [vmem:[#allocation90_spill] sm:$0xff] %v11049_v26  ;;  %v8939_v63 = vpop.f32.mrf.mxu0 }
 0x1a9   : > { %13061 = vst [vmem:[#allocation91_spill] sm:$0xff] %v11051_v39  ;;  %v8989_v46 = vpop.f32.mrf.mxu1  ;;  %v3860_v16 = vadd.f32 %v8939_v63, %v10920_v17  ;;  %v550_v17 = vand.u32 15, %v406_v11  ;;  %v408_v63 = vadd.s32 160, %v10300_v23 }
 0x1aa   : > { %v11055_v14 = vpop.f32.mrf.mxu0 }
 0x1ab   : > { %v11057_v50 = vpop.f32.mrf.mxu1  ;;  %v11059_v4 = vadd.f32 %v8989_v46, %v3860_v16  ;;  %vm11083_vm4 = vcmp.ge.s32.totalorder %v550_v17, 1  ;;  %v564_v11 = vand.u32 15, %v408_v63 }
 0x1ac   : > { %v8942_v44 = vpop.f32.mrf.mxu0  ;;  %v1277_v63 = vsel %vm11083_vm4, %v10503_v52, 0.0 }
 0x1ad   : > { %v8992_v57 = vpop.f32.mrf.mxu1  ;;  %v3862_v49 = vadd.f32 %v8942_v44, %v10929_v1  ;;  %v410_v44 = vadd.s32 176, %v10300_v23  ;;  %vm11103_vm14 = vcmp.ge.s32.totalorder %v564_v11, 1  ;;  %v1699_v52 = vadd.f32 %v10505_v37, %v1277_v63 }
 0x1ae   : > { %v11063_v3 = vpop.f32.mrf.mxu0 }
 0x1af   : > { %v11065_v39 = vadd.f32 %v8992_v57, %v3862_v49  ;;  %v1275_v57 = vsel %vm11067_vm6, %v10489_v48, 0.0  ;;  %v2633_v49 = vadd.f32 %v2601_v34, %v10739_v2  ;;  %v412_v2 = vadd.s32 192, %v10300_v23 }
 0x1b0   : > { %v8945_v46 = vpop.f32.mrf.mxu0  ;;  %v578_v0 = vand.u32 15, %v410_v44 }
 0x1b1   : > { %13062 = vst [vmem:[#allocation92_spill] sm:$0xff] %v11065_v39  ;;  %v11076_v16 = vadd.f32 %v8945_v46, %v10938_v59  ;;  %v1697_v46 = vadd.f32 %v10491_v21, %v1275_v57  ;;  %v3023_v48 = vadd.f32 %v10952_v15, %v2633_v49  ;;  %v2605_v15 = vsel %vm11067_vm6, %v10770_v32, 0.0 }
 0x1b2   : > { %v11078_v1 = vpop.f32.mrf.mxu0  ;;  %vm11126_vm2 = vcmp.ge.s32.totalorder %v578_v0, 1 }
 0x1b3   : > { %v3445_v11 = vadd.f32 %v10954_v20, %v3023_v48  ;;  %v2217_v20 = vadd.f32 %v10786_v6, %v1699_v52  ;;  %v1281_v6 = vsel %vm11126_vm2, %v10532_v7, 0.0  ;;  %v13076_v52 = vld [vmem:[#allocation53_spill] sm:$0xff] }
 0x1b4   : > { %v8948_v39 = vpop.f32.mrf.mxu0  ;;  %v2609_v7 = vsel %vm11103_vm14, %v13076_v52, 0.0 }
 0x1b5   : > { %v11093_v59 = vadd.f32 %v8948_v39, %v10947_v5  ;;  %v2635_v39 = vadd.f32 %v2603_v60, %v10758_v38  ;;  %v2215_v5 = vadd.f32 %v10768_v61, %v1697_v46  ;;  %v1279_v61 = vsel %vm11103_vm14, %v10517_v56, 0.0 }
 0x1b6   : > { %v11097_v17 = vpop.f32.mrf.mxu0  ;;  %v592_v38 = vand.u32 15, %v412_v2  ;;  %v414_v60 = vadd.s32 208, %v10300_v23  ;;  %v2607_v56 = vsel %vm11083_vm4, %v10788_v40, 0.0  ;;  %v1701_v43 = vadd.f32 %v10519_v30, %v1279_v61 }
 0x1b7   : > { %13069 = vst [vmem:[#allocation93_spill] sm:$0xff] %v11093_v59  ;;  %v3025_v49 = vadd.f32 %v10961_v31, %v2635_v39  ;;  %v11118_v59 = vpop.f32.mrf.mxu1  ;;  %v2637_v37 = vadd.f32 %v2605_v15, %v2215_v5  ;;  %v416_v30 = vadd.s32 224, %v10300_v23 }
 0x1b8   : > { %v8951_v21 = vpop.f32.mrf.mxu0  ;;  %v606_v40 = vand.u32 15, %v414_v60 }
 0x1b9   : > { %v11113_v57 = vadd.f32 %v8951_v21, %v10956_v18  ;;  %v3447_v63 = vadd.f32 %v10963_v8, %v3025_v49  ;;  %v3027_v2 = vadd.f32 %v10970_v53, %v2637_v37  ;;  %v11142_v0 = vpop.f32.mrf.mxu1  ;;  %v2639_v8 = vadd.f32 %v2607_v56, %v2217_v20  ;;  %v13078_v49 = vld [vmem:[#allocation15_spill] sm:$0xff] }
 0x1ba   : > { %v3724_v44 = vpop.f32.mrf.mxu0  ;;  %v2219_v53 = vadd.f32 %v10804_v36, %v1701_v43  ;;  %v4771_v36 = vld [vmem:[%s12768_s5 + $0x8] sm:$0xff] }
 0x1bb   : > { %v3835_v32 = vsel %vm13065_vm5, %v3724_v44, 0.0  ;;  %vm11147_vm5 = vcmp.ge.s32.totalorder %v592_v38, 1  ;;  %v1703_v44 = vadd.f32 %v13078_v49, %v1281_v6  ;;  %v3449_v42 = vadd.f32 %v10972_v51, %v3027_v2  ;;  %v11166_v38 = vpop.f32.mrf.mxu1  ;;  %4850 = vmatprep.mubr.f32.mxu1 %v4771_v36  ;;  %v13084_v2 = vld [vmem:[#allocation56_spill] sm:$0xff] }
 0x1bc   : > { %v11131_v31 = vadd.f32 %v3835_v32, %v3445_v11  ;;  %v8954_v46 = vpop.f32.mrf.mxu0  ;;  %v3029_v61 = vadd.f32 %v10979_v9, %v2639_v8  ;;  %v13079_v32 = vld [vmem:[#allocation16_spill] sm:$0xff]  ;;  %v620_v9 = vand.u32 15, %v416_v30  ;;  %v2641_v20 = vadd.f32 %v2609_v7, %v2219_v53 }
 0x1bd   : > { %v11137_v48 = vadd.f32 %v8954_v46, %v10965_v13  ;;  %v1283_v37 = vsel %vm11147_vm5, %v13079_v32, 0.0  ;;  %v13082_v46 = vld [vmem:[#allocation55_spill] sm:$0xff]  ;;  %v11192_v30 = vpop.f32.mrf.mxu1  ;;  %v13125_v49 = vld [vmem:[#allocation72_spill] sm:$0xff] }
 0x1be   : > { %v3734_v39 = vpop.f32.mrf.mxu0  ;;  %v2221_v56 = vadd.f32 %v13082_v46, %v1703_v44  ;;  %v3451_v26 = vadd.f32 %v10981_v22, %v3029_v61  ;;  %v3031_v8 = vadd.f32 %v10988_v27, %v2641_v20  ;;  %v13090_v44 = vld [vmem:[#allocation58_spill] sm:$0xff]  ;;  %v13092_v61 = vld [vmem:[#allocation59_spill] sm:$0xff]  ;;  %v13095_v46 = vld [vmem:[#allocation21_spill] sm:$0xff] }
 0x1bf   : > { %v3837_v13 = vsel %vm13068_vm3, %v3734_v39, 0.0  ;;  %vm11174_vm3 = vcmp.ge.s32.totalorder %v606_v40, 1  ;;  %v2611_v39 = vsel %vm11126_vm2, %v13084_v2, 0.0  ;;  %v13086_v40 = vld [vmem:[#allocation17_spill] sm:$0xff]  ;;  %v13094_v32 = vld [vmem:[#allocation19_spill] sm:$0xff] }
 0x1c0   : > { %v11155_v21 = vadd.f32 %v3837_v13, %v3447_v63  ;;  %v8957_v15 = vpop.f32.mrf.mxu0  ;;  %v1705_v13 = vadd.f32 %v13086_v40, %v1283_v37  ;;  %v3453_v37 = vadd.f32 %v10990_v58, %v3031_v8  ;;  %v13099_v8 = vld [vmem:[#allocation22_spill] sm:$0xff] }
 0x1c1   : > { %v11161_v11 = vadd.f32 %v8957_v15, %v10974_v25  ;;  %v13087_v15 = vld [vmem:[#allocation18_spill] sm:$0xff] }
 0x1c2   : > { %v3744_v60 = vpop.f32.mrf.mxu0  ;;  %v1285_v52 = vsel %vm11174_vm3, %v13087_v15, 0.0 }
 0x1c3   : > { %13077 = vst [vmem:[#allocation53_spill] sm:$0xff] %v11161_v11  ;;  %v3839_v51 = vsel %vm11067_vm6, %v3744_v60, 0.0  ;;  %vm11199_vm6 = vcmp.ge.s32.totalorder %v620_v9, 1  ;;  %v2613_v60 = vsel %vm11147_vm5, %v13092_v61, 0.0  ;;  %v1707_v19 = vadd.f32 %v13094_v32, %v1285_v52  ;;  %v11215_v9 = vpop.f32.mrf.mxu1  ;;  %v13166_v11 = vld [vmem:[#allocation68_spill] sm:$0xff] }
 0x1c4   : > { %v11181_v43 = vadd.f32 %v3839_v51, %v3449_v42  ;;  %v8960_v63 = vpop.f32.mrf.mxu0  ;;  %v2223_v42 = vadd.f32 %v13090_v44, %v1705_v13 }
 0x1c5   : > { %v11187_v6 = vadd.f32 %v8960_v63, %v10983_v10  ;;  %v2643_v10 = vadd.f32 %v2611_v39, %v2221_v56  ;;  %v1287_v56 = vsel %vm11199_vm6, %v13095_v46, 0.0  ;;  %v13096_v39 = vld [vmem:[#allocation61_spill] sm:$0xff]  ;;  %v11234_v52 = vpop.f32.mrf.mxu1 }
 0x1c6   : > { %13083 = vst [vmem:[#allocation15_spill] sm:$0xff] %v11181_v43  ;;  %v3754_v53 = vpop.f32.mrf.mxu0  ;;  %v2645_v2 = vadd.f32 %v2613_v60, %v2223_v42  ;;  %v13100_v42 = vld [vmem:[#allocation64_spill] sm:$0xff] }
 0x1c7   : > { %13085 = vst [vmem:[#allocation16_spill] sm:$0xff] %v11187_v6  ;;  %v3841_v7 = vsel %vm11083_vm4, %v3754_v53, 0.0  ;;  %v3033_v51 = vadd.f32 %v10997_v12, %v2643_v10  ;;  %v1709_v53 = vadd.f32 %v13099_v8, %v1287_v56  ;;  %v13110_v8 = vld [vmem:[#allocation81_spill] sm:$0xff] }
 0x1c8   : > { %v11204_v22 = vadd.f32 %v3841_v7, %v3451_v26  ;;  %v8963_v27 = vpop.f32.mrf.mxu0  ;;  %v13098_v26 = vld [vmem:[#allocation62_spill] sm:$0xff]  ;;  %v3035_v34 = vadd.f32 %v11006_v35, %v2645_v2  ;;  %v13103_v35 = vld [vmem:[#allocation28_spill] sm:$0xff]  ;;  %v13174_v6 = vld [vmem:[#allocation45_spill] sm:$0xff] }
 0x1c9   : > { %v11210_v36 = vadd.f32 %v8963_v27, %v10992_v47  ;;  %v2225_v47 = vadd.f32 %v13096_v39, %v1707_v19  ;;  %v2615_v58 = vsel %vm11174_vm3, %v13098_v26, 0.0  ;;  %v3455_v15 = vadd.f32 %v10999_v62, %v3033_v51  ;;  %v13104_v19 = vld [vmem:[#allocation7_spill] sm:$0xff]  ;;  %v13107_v26 = vld [vmem:[#allocation32_spill] sm:$0xff] }
 0x1ca   : > { %13091 = vst [vmem:[#allocation55_spill] sm:$0xff] %v11204_v22  ;;  %v3764_v20 = vpop.f32.mrf.mxu0  ;;  %v2227_v27 = vadd.f32 %v13100_v42, %v1709_v53  ;;  %vm13105_vm4 = vnez %v13104_v19  ;;  %v3457_v18 = vadd.f32 %v11008_v54, %v3035_v34  ;;  %v13111_v34 = vld [vmem:[#allocation69_spill] sm:$0xff]  ;;  %v13112_v42 = vld [vmem:[#allocation36_spill] sm:$0xff] }
 0x1cb   : > { %13093 = vst [vmem:[#allocation56_spill] sm:$0xff] %v11210_v36  ;;  %v3843_v63 = vsel %vm11103_vm14, %v3764_v20, 0.0  ;;  %v2647_v44 = vadd.f32 %v2615_v58, %v2225_v47  ;;  %v11252_v20 = vpop.f32.mrf.mxu1  ;;  %v13108_v58 = vld [vmem:[#allocation9_spill] sm:$0xff]  ;;  %v13122_v19 = vld [vmem:[#allocation12_spill] sm:$0xff] }
 0x1cc   : > { %v11223_v40 = vadd.f32 %v3843_v63, %v3453_v37  ;;  %v8966_v13 = vpop.f32.mrf.mxu0  ;;  %v2589_v37 = vsel %vm13105_vm4, %v13103_v35, 0.0  ;;  %v13116_v35 = vld [vmem:[#allocation82_spill] sm:$0xff]  ;;  %v13179_v36 = vld [vmem:[#allocation77_spill] sm:$0xff] }
 0x1cd   : > { %v11229_v12 = vadd.f32 %v8966_v13, %v11001_v45  ;;  %v13102_v45 = vld [vmem:[#allocation65_spill] sm:$0xff]  ;;  %v3037_v51 = vadd.f32 %v11015_v33, %v2647_v44 }
 0x1ce   : > { %13097 = vst [vmem:[#allocation17_spill] sm:$0xff] %v11223_v40  ;;  %v3774_v7 = vpop.f32.mrf.mxu0  ;;  %v2617_v32 = vsel %vm11199_vm6, %v13102_v45, 0.0  ;;  %v13113_v45 = vld [vmem:[#allocation37_spill] sm:$0xff] }
 0x1cf   : > { %v3845_v10 = vsel %vm11126_vm2, %v3774_v7, 0.0  ;;  %v2649_v63 = vadd.f32 %v2617_v32, %v2227_v27  ;;  %vm13109_vm2 = vnez %v13108_v58  ;;  %v3459_v33 = vadd.f32 %v11017_v24, %v3037_v51  ;;  %v13114_v24 = vld [vmem:[#allocation11_spill] sm:$0xff] }
 0x1d0   : > { %v11239_v61 = vadd.f32 %v3845_v10, %v3455_v15  ;;  %v8969_v60 = vpop.f32.mrf.mxu0  ;;  %v2591_v54 = vsel %vm13109_vm2, %v13107_v26, 0.0  ;;  %v11267_v15 = vpop.f32.mrf.mxu1  ;;  %vm13115_vm14 = vnez %v13114_v24 }
 0x1d1   : > { %v11245_v62 = vadd.f32 %v8969_v60, %v11010_v55  ;;  %v13106_v55 = vld [vmem:[#allocation31_spill] sm:$0xff]  ;;  %v3039_v53 = vadd.f32 %v13110_v8, %v2649_v63  ;;  %v2623_v27 = vadd.f32 %v2591_v54, %v13112_v42  ;;  %v2593_v32 = vsel %vm13115_vm14, %v13113_v45, 0.0  ;;  %v13126_v42 = vld [vmem:[#allocation73_spill] sm:$0xff] }
 0x1d2   : > { %13101 = vst [vmem:[#allocation18_spill] sm:$0xff] %v11239_v61  ;;  %v3784_v46 = vpop.f32.mrf.mxu0  ;;  %v2621_v47 = vadd.f32 %v2589_v37, %v13106_v55  ;;  %v11285_v25 = vpop.f32.mrf.mxu1  ;;  %v13120_v54 = vld [vmem:[#allocation39_spill] sm:$0xff] }
 0x1d3   : > { %v3847_v56 = vsel %vm11147_vm5, %v3784_v46, 0.0  ;;  %v3461_v37 = vadd.f32 %v13116_v35, %v3039_v53  ;;  %v13121_v53 = vld [vmem:[#allocation40_spill] sm:$0xff]  ;;  %vm13123_vm5 = vnez %v13122_v19  ;;  %v13127_v35 = vld [vmem:[#allocation42_spill] sm:$0xff] }
 0x1d4   : > { %v11256_v2 = vadd.f32 %v3847_v56, %v3457_v18  ;;  %v8972_v39 = vpop.f32.mrf.mxu0  ;;  %v3011_v7 = vadd.f32 %v13111_v34, %v2621_v47  ;;  %v13117_v18 = vld [vmem:[#allocation87_spill] sm:$0xff]  ;;  %v13118_v56 = vld [vmem:[#allocation70_spill] sm:$0xff]  ;;  %v3825_v34 = vsel %vm13109_vm2, %v11047_v28, 0.0  ;;  %v3827_v28 = vsel %vm13115_vm14, %v11055_v14, 0.0 }
 0x1d5   : > { %v11260_v13 = vadd.f32 %v8972_v39, %v11019_v29  ;;  %v3823_v51 = vsel %vm13105_vm4, %v13117_v18, 0.0  ;;  %v13119_v39 = vld [vmem:[#allocation71_spill] sm:$0xff]  ;;  %v3829_v14 = vsel %vm13123_vm5, %v11063_v3, 0.0 }
 0x1d6   : > { %v3794_v5 = vpop.f32.mrf.mxu0  ;;  %v3433_v63 = vadd.f32 %v13118_v56, %v3011_v7  ;;  %v3013_v55 = vadd.f32 %v13119_v39, %v2623_v27  ;;  %v11302_v7 = vpop.f32.mrf.mxu1 }
 0x1d7   : > { %v3849_v10 = vsel %vm11174_vm3, %v3794_v5, 0.0  ;;  %v2595_v5 = vsel %vm13123_vm5, %v13121_v53, 0.0  ;;  %13124 = vst [vmem:[#allocation58_spill] sm:$0xff] %v11302_v7  ;;  %vm12867_vm3 = vcmask 523264  }
 0x1d8   : > { %v11272_v44 = vadd.f32 %v3849_v10, %v3459_v33  ;;  %v8975_v29 = vpop.f32.mrf.mxu0  ;;  %v2625_v33 = vadd.f32 %v2593_v32, %v13120_v54  ;;  %v3855_v8 = vadd.f32 %v3823_v51, %v3433_v63  ;;  %v2627_v32 = vadd.f32 %v2595_v5, %v13127_v35  ;;  %v11315_v58 = vpop.f32.mrf.mxu1  ;;  %v13131_v63 = vld [vmem:[#allocation89_spill] sm:$0xff]  ;;  %v13139_v35 = vld [vmem:[#allocation91_spill] sm:$0xff] }
 0x1d9   : > { %v11276_v60 = vadd.f32 %v8975_v29, %v11028_v41  ;;  %v3435_v29 = vadd.f32 %v13125_v49, %v3013_v55  ;;  %13130 = vst [vmem:[#allocation59_spill] sm:$0xff] %v11315_v58 }
 0x1da   : > { %v3804_v46 = vpop.f32.mrf.mxu0  ;;  %v3015_v27 = vadd.f32 %v13126_v42, %v2625_v33  ;;  %v13134_v33 = vld [vmem:[#allocation75_spill] sm:$0xff] }
 0x1db   : > { %v3851_v41 = vsel %vm11199_vm6, %v3804_v46, 0.0  ;;  %v3857_v51 = vadd.f32 %v3825_v34, %v3435_v29  ;;  %v3017_v53 = vadd.f32 %v13134_v33, %v2627_v32  ;;  %v13136_v34 = vld [vmem:[#allocation90_spill] sm:$0xff]  ;;  %v13141_v32 = vld [vmem:[#allocation76_spill] sm:$0xff] }
 0x1dc   : > { %v11291_v47 = vadd.f32 %v3851_v41, %v3461_v37  ;;  %v11293_v26 = vpop.f32.mrf.mxu0  ;;  %v13128_v37 = vld [vmem:[#allocation88_spill] sm:$0xff]  ;;  %v13133_v41 = vld [vmem:[#allocation74_spill] sm:$0xff] }
 0x1dd   : > { %v4245_v18 = vadd.f32 %v13128_v37, %v3855_v8  ;;  %v3437_v54 = vadd.f32 %v13133_v41, %v3015_v27  ;;  %v4247_v49 = vadd.f32 %v13136_v34, %v3857_v51 }
 0x1de   : > { %v11304_v10 = vpop.f32.mrf.mxu0 }
 0x1df   : > { %v3859_v29 = vadd.f32 %v3827_v28, %v3437_v54 }
 0x1e0   : > { %v9033_v45 = vpop.f32.mrf.mxu0 }
 0x1e1   : > { %v4636_v56 = vsel %vm10597_vm10, %v9033_v45, 0.0  ;;  %v11330_v45 = vpop.f32.mrf.mxu1  ;;  %v4249_v51 = vadd.f32 %v11057_v50, %v3859_v29  ;;  %v13149_v50 = vld [vmem:[#allocation92_spill] sm:$0xff] }
 0x1e2   : > { %v11318_v39 = vadd.f32 %v4636_v56, %v13131_v63  ;;  %v4476_v55 = vpop.f32.mrf.mxu0  ;;  %13138 = vst [vmem:[#allocation61_spill] sm:$0xff] %v11330_v45  ;;  %v418_v63 = vadd.s32 240, %v10300_v23  ;;  %v13172_v45 = vld [vmem:[#allocation14_spill] sm:$0xff] }
 0x1e3   : > { %v11322_v5 = vadd.f32 %v4476_v55, %v4245_v18  ;;  %v3439_v18 = vadd.f32 %v13141_v32, %v3017_v53  ;;  %v11341_v41 = vpop.f32.mrf.mxu1 }
 0x1e4   : > { %13132 = vst [vmem:[#allocation19_spill] sm:$0xff] %v11318_v39  ;;  %v9036_v8 = vpop.f32.mrf.mxu0  ;;  %13144 = vst [vmem:[#allocation64_spill] sm:$0xff] %v11341_v41  ;;  %v13169_v41 = vld [vmem:[#allocation13_spill] sm:$0xff] }
 0x1e5   : > { %13135 = vst [vmem:[#allocation21_spill] sm:$0xff] %v11322_v5  ;;  %v4638_v24 = vsel %vm10614_vm11, %v9036_v8, 0.0  ;;  %v3861_v28 = vadd.f32 %v3829_v14, %v3439_v18  ;;  %v634_v8 = vand.u32 15, %v418_v63  ;;  %vm13170_vm11 = vnez %v13169_v41 }
 0x1e6   : > { %v11333_v37 = vadd.f32 %v4638_v24, %v13139_v35  ;;  %v4486_v27 = vpop.f32.mrf.mxu0 }
 0x1e7   : > { %v11336_v46 = vadd.f32 %v4486_v27, %v4247_v49  ;;  %v4251_v53 = vadd.f32 %v11118_v59, %v3861_v28  ;;  %v11351_v49 = vpop.f32.mrf.mxu1  ;;  %vm11392_vm10 = vcmp.ge.s32.totalorder %v634_v8, 1 }
 0x1e8   : > { %13140 = vst [vmem:[#allocation62_spill] sm:$0xff] %v11333_v37  ;;  %v9039_v56 = vpop.f32.mrf.mxu0  ;;  %13148 = vst [vmem:[#allocation7_spill] sm:$0xff] %v11351_v49  ;;  %v13178_v49 = vld [vmem:[#allocation85_spill] sm:$0xff] }
 0x1e9   : > { %13142 = vst [vmem:[#allocation22_spill] sm:$0xff] %v11336_v46  ;;  %v4640_v55 = vsel %vm10636_vm12, %v9039_v56, 0.0  ;;  %v13161_v46 = vld [vmem:[#allocation24_spill] sm:$0xff]  ;;  %vm13173_vm12 = vnez %v13172_v45 }
 0x1ea   : > { %v11344_v3 = vadd.f32 %v4640_v55, %v11059_v4  ;;  %v4496_v19 = vpop.f32.mrf.mxu0  ;;  %v11360_v4 = vpop.f32.mrf.mxu1  ;;  %v1289_v37 = vsel %vm11392_vm10, %v13161_v46, 0.0  ;;  %v13168_v46 = vld [vmem:[#allocation43_spill] sm:$0xff] }
 0x1eb   : > { %v11346_v54 = vadd.f32 %v4496_v19, %v4249_v51  ;;  %13152 = vst [vmem:[#allocation9_spill] sm:$0xff] %v11360_v4  ;;  %v2597_v22 = vsel %vm13170_vm11, %v13168_v46, 0.0  ;;  %v13176_v4 = vld [vmem:[#allocation83_spill] sm:$0xff] }
 0x1ec   : > { %13145 = vst [vmem:[#allocation65_spill] sm:$0xff] %v11344_v3  ;;  %v9042_v33 = vpop.f32.mrf.mxu0  ;;  %v11366_v59 = vpop.f32.mrf.mxu1 }
 0x1ed   : > { %13146 = vst [vmem:[#allocation28_spill] sm:$0xff] %v11346_v54  ;;  %v4642_v34 = vsel %vm10656_vm13, %v9042_v33, 0.0  ;;  %v13165_v54 = vld [vmem:[#allocation67_spill] sm:$0xff] }
 0x1ee   : > { %v11354_v29 = vadd.f32 %v4642_v34, %v13149_v50  ;;  %v4506_v42 = vpop.f32.mrf.mxu0  ;;  %v11372_v56 = vpop.f32.mrf.mxu1 }
 0x1ef   : > { %v11356_v24 = vadd.f32 %v4506_v42, %v4251_v53  ;;  %13154 = vst [vmem:[#allocation69_spill] sm:$0xff] %v11372_v56  ;;  %v7796_v53 = vld [vmem:[%s12768_s5 + $0x108] sm:$0xff] }
 0x1f0   : > { %13150 = vst [vmem:[#allocation31_spill] sm:$0xff] %v11354_v29  ;;  %v11358_v14 = vpop.f32.mrf.mxu0  ;;  %v11377_v55 = vpop.f32.mrf.mxu1  ;;  %5094 = vmatprep.mubr.f32.mxu0 %v7796_v53 }
 0x1f1   : > { %13151 = vst [vmem:[#allocation32_spill] sm:$0xff] %v11356_v24  ;;  %v13171_v24 = vld [vmem:[#allocation46_spill] sm:$0xff] }
 0x1f2   : > { %v11362_v35 = vpop.f32.mrf.mxu0  ;;  %v11386_v34 = vpop.f32.mrf.mxu1 }
 0x1f3   : > { %13153 = vst [vmem:[#allocation81_spill] sm:$0xff] %v11362_v35  ;;  %v13181_v35 = vld [vmem:[#allocation84_spill] sm:$0xff] }
 0x1f4   : > { %v11364_v27 = vpop.f32.mrf.mxu0  ;;  %v11396_v5 = vpop.f32.mrf.mxu1 }
 0x1f6   : > { %v11368_v32 = vpop.f32.mrf.mxu0  ;;  %v11405_v53 = vpop.f32.mrf.mxu1 }
 0x1f8   : > { %v11370_v18 = vpop.f32.mrf.mxu0 }
 0x1fa   : > { %v11374_v51 = vpop.f32.mrf.mxu0 }
 0x1fc   : > { %v9054_v28 = vpop.f32.mrf.mxu0 }
 0x1fd   : > { %v4650_v23 = vsel %vm10732_vm7, %v9054_v28, 0.0  ;;  %v4259_v28 = vadd.f32 %v11285_v25, %v11155_v21 }
 0x1fe   : > { %v11379_v19 = vpop.f32.mrf.mxu0 }
 0x1ff   : > { %v4681_v21 = vadd.f32 %v11379_v19, %v4259_v28 }
 0x200   : > { %v11381_v33 = vpop.f32.mrf.mxu0 }
 0x201   : > { %13155 = vst [vmem:[#allocation36_spill] sm:$0xff] %v11381_v33  ;;  %v9025_v33 = vpop.f32.mrf.mxu1 }
 0x202   : > { %v11388_v50 = vpop.f32.mrf.mxu0 }
 0x203   : > { %13156 = vst [vmem:[#allocation37_spill] sm:$0xff] %v11388_v50  ;;  %v13164_v50 = vld [vmem:[#allocation25_spill] sm:$0xff] }
 0x204   : > { %v11390_v42 = vpop.f32.mrf.mxu0  ;;  %v1711_v43 = vadd.f32 %v13164_v50, %v1289_v37 }
 0x205   : > { %13157 = vst [vmem:[#allocation11_spill] sm:$0xff] %v11390_v42 }
 0x206   : > { %v11398_v39 = vpop.f32.mrf.mxu0  ;;  %v2229_v7 = vadd.f32 %v13165_v54, %v1711_v43  ;;  %v2629_v43 = vadd.f32 %v2597_v22, %v13174_v6  ;;  %v4226_v54 = vpop.f32.mrf.mxu1  ;;  %v3853_v6 = vsel %vm11392_vm10, %v11304_v10, 0.0 }
 0x207   : > { %13160 = vst [vmem:[#allocation82_spill] sm:$0xff] %v11398_v39  ;;  %v2619_v39 = vsel %vm11392_vm10, %v13166_v11, 0.0  ;;  %v13175_v11 = vld [vmem:[#allocation48_spill] sm:$0xff] }
 0x208   : > { %v11403_v63 = vpop.f32.mrf.mxu0  ;;  %v2651_v50 = vadd.f32 %v2619_v39, %v2229_v7  ;;  %v9028_v22 = vpop.f32.mrf.mxu1 }
 0x209   : > { %13162 = vst [vmem:[#allocation87_spill] sm:$0xff] %v11403_v63  ;;  %v3019_v63 = vadd.f32 %v13179_v36, %v2629_v43  ;;  %v3833_v36 = vsel %vm13173_vm12, %v11097_v17, 0.0 }
 0x20a   : > { %v11407_v58 = vpop.f32.mrf.mxu0  ;;  %v3041_v46 = vadd.f32 %v13178_v49, %v2651_v50  ;;  %v13183_v49 = vld [vmem:[#allocation78_spill] sm:$0xff]  ;;  %v4236_v17 = vpop.f32.mrf.mxu1 }
 0x20b   : > { %13163 = vst [vmem:[#allocation70_spill] sm:$0xff] %v11407_v58  ;;  %v2599_v58 = vsel %vm13173_vm12, %v13171_v24, 0.0  ;;  %v13180_v24 = vld [vmem:[#allocation79_spill] sm:$0xff]  ;;  %v3441_v50 = vadd.f32 %v13183_v49, %v3019_v63  ;;  %v13186_v63 = vld [vmem:[#allocation93_spill] sm:$0xff]  ;;  %v13195_v49 = vld [vmem:[#allocation54_spill] sm:$0xff] }
 0x20c   : > { %v11410_v8 = vpop.f32.mrf.mxu0  ;;  %v2631_v29 = vadd.f32 %v2599_v58, %v13175_v11  ;;  %v13182_v58 = vld [vmem:[#allocation86_spill] sm:$0xff]  ;;  %v4256_v45 = vadd.f32 %v11192_v30, %v13186_v63  ;;  %v4648_v30 = vsel %vm10713_vm0, %v11370_v18, 0.0  ;;  %v13193_v63 = vld [vmem:[#allocation41_spill] sm:$0xff] }
 0x20d   : > { %v3463_v11 = vadd.f32 %v13182_v58, %v3041_v46  ;;  %v4260_v46 = vadd.f32 %v11267_v15, %v11137_v48  ;;  %v4258_v48 = vadd.f32 %v11234_v52, %v11113_v57  ;;  %v4274_v15 = vadd.f32 %v9025_v33, %v11276_v60  ;;  %v11477_v57 = vld [vmem:[%s12765_s2] ss:$0 sm:$0xff] }
 0x20e   : > { %v11416_v3 = vpop.f32.mrf.mxu0  ;;  %v3021_v61 = vadd.f32 %v13180_v24, %v2631_v29  ;;  %v4646_v60 = vsel %vm10694_vm15, %v11364_v27, 0.0  ;;  %v4271_v27 = vadd.f32 %v11405_v53, %v11272_v44 }
 0x20f   : > { %13167 = vst [vmem:[#allocation71_spill] sm:$0xff] %v11416_v3  ;;  %v3432_v3 = vsel %vm10879_vm9, %v13176_v4, 0.0  ;;  %v3831_v4 = vsel %vm13170_vm11, %v11078_v1, 0.0  ;;  %v3885_v24 = vadd.f32 %v3853_v6, %v3463_v11  ;;  %v4254_v1 = vadd.f32 %v11142_v0, %v11076_v16 }
 0x210   : > { %v11424_v37 = vpop.f32.mrf.mxu0  ;;  %v3464_v7 = vadd.f32 %v3432_v3, %v13181_v35  ;;  %v13185_v35 = vld [vmem:[#allocation80_spill] sm:$0xff]  ;;  %v3863_v41 = vadd.f32 %v3831_v4, %v3441_v50  ;;  %v4257_v11 = vadd.f32 %v11252_v20, %v11131_v31  ;;  %v4273_v50 = vadd.f32 %v4226_v54, %v11291_v47 }
 0x211   : > { %v3443_v43 = vadd.f32 %v13185_v35, %v3021_v61  ;;  %v4275_v4 = vadd.f32 %v4236_v17, %v3885_v24  ;;  %v4680_v20 = vadd.f32 %v4648_v30, %v4258_v48  ;;  %v4272_v54 = vadd.f32 %v11396_v5, %v11260_v13  ;;  %v13191_v24 = vld [vmem:[#allocation57_spill] sm:$0xff] }
 0x212   : > { %v11427_v42 = vpop.f32.mrf.mxu0  ;;  %v3886_v3 = vadd.f32 %v11293_v26, %v3464_v7  ;;  %v4682_v7 = vadd.f32 %v4650_v23, %v4260_v46  ;;  %v4679_v23 = vadd.f32 %v11374_v51, %v4257_v11  ;;  %vm13192_vm7 = vnez %v13191_v24  ;;  %v13212_v24 = vld [vmem:[#allocation16_spill] sm:$0xff] }
 0x213   : > { %v3865_v26 = vadd.f32 %v3833_v36, %v3443_v43  ;;  %v4678_v43 = vadd.f32 %v4646_v60, %v4256_v45  ;;  %v4719_v13 = vadd.f32 %v11477_v57, %v4680_v20  ;;  %v4660_v44 = vsel %vm13192_vm7, %v11424_v37, 0.0  ;;  %v13203_v60 = vld [vmem:[#allocation56_spill] sm:$0xff] }
 0x214   : > { %v9072_v56 = vpop.f32.mrf.mxu0  ;;  %v4276_v16 = vadd.f32 %v9028_v22, %v3886_v3  ;;  %v4721_v19 = vadd.f32 %v11477_v57, %v4682_v7  ;;  %v4270_v51 = vadd.f32 %v11377_v55, %v11245_v62  ;;  %v4718_v28 = vadd.f32 %v11477_v57, %v4679_v23 }
 0x215   : > { %v4662_v40 = vsel %vm13050_vm1, %v9072_v56, 0.0  ;;  %v4255_v47 = vadd.f32 %v11215_v9, %v3865_v26  ;;  %v4253_v26 = vadd.f32 %v11166_v38, %v3863_v41  ;;  %v4269_v62 = vadd.f32 %v11386_v34, %v11256_v2 }
 0x216   : > { %v4606_v39 = vpop.f32.mrf.mxu0  ;;  %v4694_v56 = vadd.f32 %v4662_v40, %v4272_v54  ;;  %v11498_v5 = vmax.f32 %v4721_v19, 0.0  ;;  %v11528_v41 = vmax.f32 %v4719_v13, 0.0  ;;  %v4268_v2 = vadd.f32 %v11366_v59, %v11229_v12  ;;  %v13198_v12 = vld [vmem:[#allocation18_spill] sm:$0xff]  ;;  %v13199_v59 = vld [vmem:[#allocation69_spill] sm:$0xff] }
 0x217   : > { %v4693_v17 = vadd.f32 %v4606_v39, %v4271_v27  ;;  %v4677_v37 = vadd.f32 %v11368_v32, %v4255_v47  ;;  %v4717_v32 = vadd.f32 %v11477_v57, %v4678_v43  ;;  %v4691_v34 = vadd.f32 %v11427_v42, %v4269_v62  ;;  %v13206_v47 = vld [vmem:[#allocation17_spill] sm:$0xff]  ;;  %v13216_v62 = vld [vmem:[#allocation55_spill] sm:$0xff] }
 0x218   : > { %v9075_v10 = vpop.f32.mrf.mxu0  ;;  %v4733_v55 = vadd.f32 %v11477_v57, %v4694_v56  ;;  %v11545_v0 = vmax.f32 %v4718_v28, 0.0  ;;  %v4267_v42 = vadd.f32 %v13199_v59, %v13198_v12  ;;  %v13207_v54 = vld [vmem:[#allocation9_spill] sm:$0xff]  ;;  %v13209_v56 = vld [vmem:[#allocation11_spill] sm:$0xff]  ;;  %v13223_v12 = vld [vmem:[#allocation58_spill] sm:$0xff]  ;;  %vm5281_vm1 = vcmask 261120  }
 0x219   : > { %v4664_v61 = vsel %vm10862_vm8, %v9075_v10, 0.0  ;;  %v4720_v10 = vadd.f32 %v11477_v57, %v4681_v21  ;;  %vm13194_vm8 = vnez %v13193_v63  ;;  %v4732_v48 = vadd.f32 %v11477_v57, %v4693_v17  ;;  %v13214_v63 = vld [vmem:[#allocation70_spill] sm:$0xff] }
 0x21a   : > { %v4616_v58 = vpop.f32.mrf.mxu0  ;;  %v4696_v18 = vadd.f32 %v4664_v61, %v4274_v15  ;;  %v4644_v45 = vsel %vm13194_vm8, %v11358_v14, 0.0  ;;  %v4692_v14 = vadd.f32 %v4660_v44, %v4270_v51  ;;  %v13197_v15 = vld [vmem:[#allocation81_spill] sm:$0xff]  ;;  %v11552_v11 = vmax.f32 %v4733_v55, 0.0 }
 0x21b   : > { %v4695_v3 = vadd.f32 %v4616_v58, %v4273_v50  ;;  %v11516_v7 = vmax.f32 %v4720_v10, 0.0  ;;  %v4676_v38 = vadd.f32 %v4644_v45, %v4254_v1  ;;  %v11557_v21 = vmax.f32 %v4717_v32, 0.0  ;;  %v13201_v50 = vld [vmem:[#allocation52_spill] sm:$0xff]  ;;  %v13208_v10 = vld [vmem:[#allocation31_spill] sm:$0xff]  ;;  %v13213_v44 = vld [vmem:[#allocation61_spill] sm:$0xff] }
 0x21c   : > { %v9078_v6 = vpop.f32.mrf.mxu0  ;;  %v4735_v46 = vadd.f32 %v11477_v57, %v4696_v18  ;;  %vm13202_vm13 = vnez %v13201_v50  ;;  %v13204_v18 = vld [vmem:[#allocation7_spill] sm:$0xff]  ;;  %v4730_v19 = vadd.f32 %v11477_v57, %v4691_v34  ;;  %v11568_v22 = vmax.f32 %v4732_v48, 0.0  ;;  %v13219_v48 = vld [vmem:[#allocation36_spill] sm:$0xff] }
 0x21d   : > { %v4666_v25 = vsel %vm10879_vm9, %v9078_v6, 0.0  ;;  %v4734_v58 = vadd.f32 %v11477_v57, %v4695_v3  ;;  %vm13196_vm9 = vnez %v13195_v49  ;;  %v4731_v6 = vadd.f32 %v11477_v57, %v4692_v14  ;;  %v13217_v14 = vld [vmem:[#allocation64_spill] sm:$0xff] }
 0x21e   : > { %v4698_v33 = vadd.f32 %v4666_v25, %v4276_v16  ;;  %v4626_v31 = vpop.f32.mrf.mxu0  ;;  %v11523_v39 = vmax.f32 %v4735_v46, 0.0  ;;  %v4658_v61 = vsel %vm13196_vm9, %v11410_v8, 0.0  ;;  %v4675_v16 = vadd.f32 %v13197_v15, %v4253_v26  ;;  %v13200_v25 = vld [vmem:[#allocation87_spill] sm:$0xff]  ;;  %v13215_v26 = vld [vmem:[#allocation32_spill] sm:$0xff]  ;;  %v13220_v15 = vld [vmem:[#allocation50_spill] sm:$0xff] }
 0x21f   : > { %v4697_v36 = vadd.f32 %v4626_v31, %v4275_v4  ;;  %v11539_v1 = vmax.f32 %v4734_v58, 0.0  ;;  %v4716_v8 = vadd.f32 %v11477_v57, %v4677_v37  ;;  %v4690_v30 = vadd.f32 %v4658_v61, %v4268_v2  ;;  %v13205_v31 = vld [vmem:[#allocation71_spill] sm:$0xff]  ;;  %v13218_v61 = vld [vmem:[#allocation65_spill] sm:$0xff] }
 0x220   : > { %v4737_v29 = vadd.f32 %v11477_v57, %v4698_v33  ;;  %v4715_v4 = vadd.f32 %v11477_v57, %v4676_v38  ;;  %v4656_v52 = vsel %vm13202_vm13, %v13200_v25, 0.0  ;;  %v4266_v33 = vadd.f32 %v13204_v18, %v13203_v60  ;;  %v13210_v46 = vld [vmem:[#allocation51_spill] sm:$0xff]  ;;  %v13225_v25 = vld [vmem:[#allocation28_spill] sm:$0xff] }
 0x221   : > { %v4736_v35 = vadd.f32 %v11477_v57, %v4697_v36  ;;  %v4689_v20 = vadd.f32 %v13205_v31, %v4267_v42  ;;  %v4714_v40 = vadd.f32 %v11477_v57, %v4675_v16  ;;  %v11573_v36 = vmax.f32 %v4716_v8, 0.0  ;;  %v13222_v8 = vld [vmem:[#allocation53_spill] sm:$0xff]  ;;  %v13224_v42 = vld [vmem:[#allocation82_spill] sm:$0xff]  ;;  %v13226_v60 = vld [vmem:[#allocation15_spill] sm:$0xff] }
 0x222   : > { %v11495_v9 = vmax.f32 %v4737_v29, 0.0  ;;  %v4265_v3 = vadd.f32 %v13207_v54, %v13206_v47  ;;  %v4688_v29 = vadd.f32 %v4656_v52, %v4266_v33  ;;  %v4729_v27 = vadd.f32 %v11477_v57, %v4690_v30  ;;  %v13227_v18 = vld [vmem:[#allocation59_spill] sm:$0xff] }
 0x223   : > { %v11503_v53 = vmax.f32 %v4736_v35, 0.0  ;;  %v11580_v23 = vmax.f32 %v4731_v6, 0.0  ;;  %v4713_v35 = vadd.f32 %v11477_v57, %v13208_v10  ;;  %v11586_v43 = vmax.f32 %v4715_v4, 0.0 }
 0x224   : > { %8251 = vmatprep.subr.mxu1 %v11495_v9  ;;  %8363 = vmatprep.subr.mxu0 %v11495_v9  ;;  %vm13211_vm15 = vnez %v13210_v46  ;;  %v4264_v51 = vadd.f32 %v13213_v44, %v13212_v24  ;;  %v4687_v45 = vadd.f32 %v13214_v63, %v4265_v3  ;;  %v4728_v17 = vadd.f32 %v11477_v57, %v4689_v20  ;;  %v13229_v3 = vld [vmem:[#allocation37_spill] sm:$0xff]  ;;  %v13231_v44 = vld [vmem:[#allocation19_spill] sm:$0xff] }
 0x225   : > { %8252 = vmatpush3.msra.mxu1 %v11498_v5  ;;  %8364 = vmatpush3.msra.mxu0 %v11498_v5  ;;  %v4654_v13 = vsel %vm13211_vm15, %v13209_v56, 0.0  ;;  %v11597_v58 = vmax.f32 %v4730_v19, 0.0  ;;  %v4712_v37 = vadd.f32 %v11477_v57, %v13215_v26  ;;  %v11603_v28 = vmax.f32 %v4714_v40, 0.0  ;;  %v13228_v40 = vld [vmem:[#allocation62_spill] sm:$0xff]  ;;  %v13232_v26 = vld [vmem:[#allocation21_spill] sm:$0xff] }
 0x226   : > { %8253 = vmatprep.subr.mxu1 %v11503_v53  ;;  %8365 = vmatprep.subr.mxu0 %v11503_v53  ;;  %v4263_v55 = vadd.f32 %v13217_v14, %v13216_v62  ;;  %v4686_v38 = vadd.f32 %v4654_v13, %v4264_v51  ;;  %v4727_v32 = vadd.f32 %v11477_v57, %v4688_v29  ;;  %v11610_v49 = vmax.f32 %v4729_v27, 0.0 }
 0x227   : > { %8254 = vmatpush3.msra.mxu1 %v11516_v7  ;;  %8366 = vmatpush3.msra.mxu0 %v11516_v7  ;;  %v4711_v2 = vadd.f32 %v11477_v57, %v13218_v61  ;;  %v11616_v34 = vmax.f32 %v4713_v35, 0.0  ;;  %vm13221_vm0 = vnez %v13220_v15  ;;  %v4262_v59 = vadd.f32 %v13223_v12, %v13222_v8  ;;  %v13230_v35 = vld [vmem:[#allocation22_spill] sm:$0xff]  ;;  %v4772_v15 = vld [vmem:[%s12768_s5 + $0x10] sm:$0xff]  ;;  %v7800_v12 = vld [vmem:[%s12768_s5 + $0x128] sm:$0xff] }
 0x228   : > { %8255 = vmatprep.subr.mxu1 %v11523_v39  ;;  %8367 = vmatprep.subr.mxu0 %v11523_v39  ;;  %v4652_v16 = vsel %vm13221_vm0, %v13219_v48, 0.0  ;;  %v4685_v30 = vadd.f32 %v13224_v42, %v4263_v55  ;;  %v4726_v6 = vadd.f32 %v11477_v57, %v4687_v45  ;;  %v11627_v4 = vmax.f32 %v4728_v17, 0.0  ;;  %v4773_v61 = vld [vmem:[%s12768_s5 + $0x18] sm:$0xff]  ;;  %v7797_v8 = vld [vmem:[%s12768_s5 + $0x110] sm:$0xff] }
 0x229   : > { %8256 = vmatpush3.msra.mxu1 %v11528_v41  ;;  %8368 = vmatpush3.msra.mxu0 %v11528_v41  ;;  %v4710_v50 = vadd.f32 %v11477_v57, %v13225_v25  ;;  %v11633_v52 = vmax.f32 %v4712_v37, 0.0  ;;  %v4261_v33 = vadd.f32 %v13227_v18, %v13226_v60  ;;  %v4684_v31 = vadd.f32 %v4652_v16, %v4262_v59  ;;  %v7798_v48 = vld [vmem:[%s12768_s5 + $0x118] sm:$0xff]  ;;  %v4775_v16 = vld [vmem:[%s12768_s5 + $0x28] sm:$0xff]  ;;  %v4774_v59 = vld [vmem:[%s12768_s5 + $0x20] sm:$0xff] }
 0x22a   : > { %8257 = vmatprep.subr.mxu1 %v11539_v1  ;;  %8369 = vmatprep.subr.mxu0 %v11539_v1  ;;  %v4725_v20 = vadd.f32 %v11477_v57, %v4686_v38  ;;  %v11640_v19 = vmax.f32 %v4727_v32, 0.0  ;;  %v4709_v47 = vadd.f32 %v11477_v57, %v13228_v40  ;;  %v11646_v54 = vmax.f32 %v4711_v2, 0.0  ;;  %v4770_v32 = vld [vmem:[%s12768_s5] sm:$0xff]  ;;  %v4777_v42 = vld [vmem:[%s12768_s5 + $0x38] sm:$0xff]  ;;  %v4776_v25 = vld [vmem:[%s12768_s5 + $0x30] sm:$0xff] }
 0x22b   : > { %8258 = vmatpush3.msra.mxu1 %v11545_v0  ;;  %8370 = vmatpush3.msra.mxu0 %v11545_v0  ;;  %v4683_v29 = vadd.f32 %v13229_v3, %v4261_v33  ;;  %v4724_v27 = vadd.f32 %v11477_v57, %v4685_v30  ;;  %v11652_v10 = vmax.f32 %v4726_v6, 0.0  ;;  %v4708_v56 = vadd.f32 %v11477_v57, %v13230_v35  ;;  %v7795_v2 = vld [vmem:[%s12768_s5 + $0x100] sm:$0xff]  ;;  %v7802_v6 = vld [vmem:[%s12768_s5 + $0x138] sm:$0xff]  ;;  %v7801_v60 = vld [vmem:[%s12768_s5 + $0x130] sm:$0xff] }
 0x22c   : > { %8259 = vmatprep.subr.mxu1 %v11552_v11  ;;  %8371 = vmatprep.subr.mxu0 %v11552_v11  ;;  %v11658_v46 = vmax.f32 %v4710_v50, 0.0  ;;  %v4723_v13 = vadd.f32 %v11477_v57, %v4684_v31  ;;  %v11663_v24 = vmax.f32 %v4725_v20, 0.0  ;;  %v4707_v51 = vadd.f32 %v11477_v57, %v13231_v44  ;;  %v7799_v30 = vld [vmem:[%s12768_s5 + $0x120] sm:$0xff]  ;;  %v4779_v50 = vld [vmem:[%s12768_s5 + $0x48] sm:$0xff]  ;;  %v4781_v31 = vld [vmem:[%s12768_s5 + $0x58] sm:$0xff] }
 0x22d   : > { %8260 = vmatpush3.msra.mxu1 %v11557_v21  ;;  %8372 = vmatpush3.msra.mxu0 %v11557_v21  ;;  %v11669_v63 = vmax.f32 %v4709_v47, 0.0  ;;  %v4722_v45 = vadd.f32 %v11477_v57, %v4683_v29  ;;  %v11674_v17 = vmax.f32 %v4724_v27, 0.0  ;;  %v4706_v37 = vadd.f32 %v11477_v57, %v13232_v26  ;;  %v7804_v18 = vld [vmem:[%s12768_s5 + $0x148] sm:$0xff]  ;;  %v4778_v33 = vld [vmem:[%s12768_s5 + $0x40] sm:$0xff]  ;;  %v7806_v40 = vld [vmem:[%s12768_s5 + $0x158] sm:$0xff] }
 0x22e   : > { %8261 = vmatprep.subr.mxu1 %v11568_v22  ;;  %8373 = vmatprep.subr.mxu0 %v11568_v22  ;;  %v11680_v62 = vmax.f32 %v4708_v56, 0.0  ;;  %v11684_v14 = vmax.f32 %v4723_v13, 0.0  ;;  %v11688_v55 = vmax.f32 %v4707_v51, 0.0  ;;  %v7803_v20 = vld [vmem:[%s12768_s5 + $0x140] sm:$0xff]  ;;  %v4780_v47 = vld [vmem:[%s12768_s5 + $0x50] sm:$0xff]  ;;  %v4783_v3 = vld [vmem:[%s12768_s5 + $0x68] sm:$0xff] }
 0x22f   : > { %8262 = vmatpush3.msra.mxu1 %v11573_v36  ;;  %8374 = vmatpush3.msra.mxu0 %v11573_v36  ;;  %v11692_v38 = vmax.f32 %v4722_v45, 0.0  ;;  %v11696_v57 = vmax.f32 %v4706_v37, 0.0  ;;  %v7805_v29 = vld [vmem:[%s12768_s5 + $0x150] sm:$0xff]  ;;  %v7808_v27 = vld [vmem:[%s12768_s5 + $0x168] sm:$0xff]  ;;  %v4782_v35 = vld [vmem:[%s12768_s5 + $0x60] sm:$0xff] }
 0x230   : > { %8263 = vmatprep.subr.mxu1 %v11580_v23  ;;  %8375 = vmatprep.subr.mxu0 %v11580_v23  ;;  %v4785_v56 = vld [vmem:[%s12768_s5 + $0x78] sm:$0xff]  ;;  %v7807_v13 = vld [vmem:[%s12768_s5 + $0x160] sm:$0xff]  ;;  %v4784_v51 = vld [vmem:[%s12768_s5 + $0x70] sm:$0xff] }
 0x231   : > { %8264 = vmatpush3.msra.mxu1 %v11586_v43  ;;  %8376 = vmatpush3.msra.mxu0 %v11586_v43  ;;  %v7810_v44 = vld [vmem:[%s12768_s5 + $0x178] sm:$0xff]  ;;  %v7780_v45 = vld [vmem:[%s12768_s5 + $0x88] sm:$0xff]  ;;  %v7809_v26 = vld [vmem:[%s12768_s5 + $0x170] sm:$0xff] }
 0x232   : > { %8265 = vmatprep.subr.mxu1 %v11597_v58  ;;  %8377 = vmatprep.subr.mxu0 %v11597_v58  ;;  %v7779_v37 = vld [vmem:[%s12768_s5 + $0x80] sm:$0xff] }
 0x233   : > { %8266 = vmatpush3.msra.mxu1 %v11603_v28  ;;  %8378 = vmatpush3.msra.mxu0 %v11603_v28 }
 0x234   : > { %8267 = vmatprep.subr.mxu1 %v11610_v49  ;;  %8379 = vmatprep.subr.mxu0 %v11610_v49 }
 0x235   : > { %8268 = vmatpush3.msra.mxu1 %v11616_v34  ;;  %8380 = vmatpush3.msra.mxu0 %v11616_v34 }
 0x236   : > { %8269 = vmatprep.subr.mxu1 %v11627_v4  ;;  %8381 = vmatprep.subr.mxu0 %v11627_v4 }
 0x237   : > { %8270 = vmatpush3.msra.mxu1 %v11633_v52  ;;  %8382 = vmatpush3.msra.mxu0 %v11633_v52 }
 0x238   : > { %8271 = vmatprep.subr.mxu1 %v11640_v19  ;;  %8383 = vmatprep.subr.mxu0 %v11640_v19 }
 0x239   : > { %8272 = vmatpush3.msra.mxu1 %v11646_v54  ;;  %8384 = vmatpush3.msra.mxu0 %v11646_v54 }
 0x23a   : > { %8273 = vmatprep.subr.mxu1 %v11652_v10  ;;  %8385 = vmatprep.subr.mxu0 %v11652_v10 }
 0x23b   : > { %8274 = vmatpush3.msra.mxu1 %v11658_v46  ;;  %8386 = vmatpush3.msra.mxu0 %v11658_v46 }
 0x23c   : > { %8275 = vmatprep.subr.mxu1 %v11663_v24  ;;  %8387 = vmatprep.subr.mxu0 %v11663_v24 }
 0x23d   : > { %8276 = vmatpush3.msra.mxu1 %v11669_v63  ;;  %8388 = vmatpush3.msra.mxu0 %v11669_v63 }
 0x23e   : > { %8277 = vmatprep.subr.mxu1 %v11674_v17  ;;  %8389 = vmatprep.subr.mxu0 %v11674_v17 }
 0x23f   : > { %8278 = vmatpush3.msra.mxu1 %v11680_v62  ;;  %8390 = vmatpush3.msra.mxu0 %v11680_v62 }
 0x240   : > { %8279 = vmatprep.subr.mxu1 %v11684_v14  ;;  %8391 = vmatprep.subr.mxu0 %v11684_v14 }
 0x241   : > { %8280 = vmatpush3.msra.mxu1 %v11688_v55  ;;  %8392 = vmatpush3.msra.mxu0 %v11688_v55 }
 0x242   : > { %8281 = vmatprep.subr.mxu1 %v11692_v38  ;;  %8393 = vmatprep.subr.mxu0 %v11692_v38 }
 0x243   : > { %8282 = vmatpush3.msra.mxu1 %v11696_v57  ;;  %8394 = vmatpush3.msra.mxu0 %v11696_v57 }
 0x244   : > { %4851 = vmatmul.mubr.f32.vlgmr.msra.gmra.mxu1 %v4770_v32  ;;  %8307 = vmatprep.subr.mxu1 %v11495_v9  ;;  %v7782_v32 = vld [vmem:[%s12768_s5 + $0x98] sm:$0xff] }
 0x245   : > { %8308 = vmatpush3.msra.mxu1 %v11498_v5  ;;  %4855 = vmatprep.mubr.f32.mxu1 %v4773_v61  ;;  %v7781_v61 = vld [vmem:[%s12768_s5 + $0x90] sm:$0xff] }
 0x246   : > { %8309 = vmatprep.subr.mxu1 %v11503_v53  ;;  %5095 = vmatmul.mubr.f32.vlgmr.msra.gmra.mxu0 %v7795_v2  ;;  %v7784_v2 = vld [vmem:[%s12768_s5 + $0xa8] sm:$0xff] }
 0x247   : > { %8310 = vmatpush3.msra.mxu1 %v11516_v7  ;;  %5099 = vmatprep.mubr.f32.mxu0 %v7798_v48  ;;  %v5407_v48 = vld [vmem:[%s12766_s3 + $0x8] sm:$0xff] }
 0x248   : > { %4856 = vmatmul.mubr.f32.gmra.mxu1 %v4772_v15  ;;  %8311 = vmatprep.subr.mxu1 %v11523_v39  ;;  %v7836_v15 = vld [vmem:[%s12766_s3 + $0x28] sm:$0xff] }
 0x249   : > { %8312 = vmatpush3.msra.mxu1 %v11528_v41  ;;  %4860 = vmatprep.mubr.f32.mxu1 %v4775_v16  ;;  %v5406_v16 = vld [vmem:[%s12766_s3] sm:$0xff] }
 0x24a   : > { %8313 = vmatprep.subr.mxu1 %v11539_v1  ;;  %5100 = vmatmul.mubr.f32.gmra.mxu0 %v7797_v8  ;;  %v7835_v8 = vld [vmem:[%s12766_s3 + $0x20] sm:$0xff] }
 0x24b   : > { %8314 = vmatpush3.msra.mxu1 %v11545_v0  ;;  %5104 = vmatprep.mubr.f32.mxu0 %v7800_v12 }
 0x24c   : > { %4861 = vmatmul.mubr.f32.gmra.mxu1 %v4774_v59  ;;  %8315 = vmatprep.subr.mxu1 %v11552_v11 }
 0x24d   : > { %8316 = vmatpush3.msra.mxu1 %v11557_v21  ;;  %4865 = vmatprep.mubr.f32.mxu1 %v4777_v42  ;;  %v12007_v42 = vld [vmem:[%s12766_s3 + $0x58] sm:$0xff] }
 0x24e   : > { %8317 = vmatprep.subr.mxu1 %v11568_v22  ;;  %5105 = vmatmul.mubr.f32.gmra.mxu0 %v7799_v30  ;;  %v12012_v30 = vld [vmem:[%s12766_s3 + $0x78] sm:$0xff] }
 0x24f   : > { %8318 = vmatpush3.msra.mxu1 %v11573_v36  ;;  %5109 = vmatprep.mubr.f32.mxu0 %v7802_v6 }
 0x250   : > { %4866 = vmatmul.mubr.f32.gmra.mxu1 %v4776_v25  ;;  %8319 = vmatprep.subr.mxu1 %v11580_v23 }
 0x251   : > { %8320 = vmatpush3.msra.mxu1 %v11586_v43  ;;  %4870 = vmatprep.mubr.f32.mxu1 %v4779_v50 }
 0x252   : > { %8321 = vmatprep.subr.mxu1 %v11597_v58  ;;  %5110 = vmatmul.mubr.f32.gmra.mxu0 %v7801_v60 }
 0x253   : > { %8322 = vmatpush3.msra.mxu1 %v11603_v28  ;;  %5114 = vmatprep.mubr.f32.mxu0 %v7804_v18 }
 0x254   : > { %4871 = vmatmul.mubr.f32.gmra.mxu1 %v4778_v33  ;;  %8323 = vmatprep.subr.mxu1 %v11610_v49 }
 0x255   : > { %8324 = vmatpush3.msra.mxu1 %v11616_v34  ;;  %4875 = vmatprep.mubr.f32.mxu1 %v4781_v31 }
 0x256   : > { %8325 = vmatprep.subr.mxu1 %v11627_v4  ;;  %5115 = vmatmul.mubr.f32.gmra.mxu0 %v7803_v20 }
 0x257   : > { %8326 = vmatpush3.msra.mxu1 %v11633_v52  ;;  %5119 = vmatprep.mubr.f32.mxu0 %v7806_v40 }
 0x258   : > { %4876 = vmatmul.mubr.f32.gmra.mxu1 %v4780_v47  ;;  %8327 = vmatprep.subr.mxu1 %v11640_v19 }
 0x259   : > { %8328 = vmatpush3.msra.mxu1 %v11646_v54  ;;  %4880 = vmatprep.mubr.f32.mxu1 %v4783_v3 }
 0x25a   : > { %8329 = vmatprep.subr.mxu1 %v11652_v10  ;;  %5120 = vmatmul.mubr.f32.gmra.mxu0 %v7805_v29 }
 0x25b   : > { %8330 = vmatpush3.msra.mxu1 %v11658_v46  ;;  %5124 = vmatprep.mubr.f32.mxu0 %v7808_v27 }
 0x25c   : > { %4881 = vmatmul.mubr.f32.gmra.mxu1 %v4782_v35  ;;  %8331 = vmatprep.subr.mxu1 %v11663_v24 }
 0x25d   : > { %8332 = vmatpush3.msra.mxu1 %v11669_v63  ;;  %4885 = vmatprep.mubr.f32.mxu1 %v4785_v56 }
 0x25e   : > { %8333 = vmatprep.subr.mxu1 %v11674_v17  ;;  %5125 = vmatmul.mubr.f32.gmra.mxu0 %v7807_v13 }
 0x25f   : > { %8334 = vmatpush3.msra.mxu1 %v11680_v62  ;;  %5129 = vmatprep.mubr.f32.mxu0 %v7810_v44 }
 0x260   : > { %4886 = vmatmul.mubr.f32.gmra.mxu1 %v4784_v51  ;;  %8335 = vmatprep.subr.mxu1 %v11684_v14 }
 0x261   : > { %8336 = vmatpush3.msra.mxu1 %v11688_v55  ;;  %4972 = vmatprep.mubr.f32.mxu1 %v7780_v45 }
 0x262   : > { %8337 = vmatprep.subr.mxu1 %v11692_v38  ;;  %5130 = vmatmul.mubr.f32.gmra.mxu0 %v7809_v26 }
 0x263   : > { %8338 = vmatpush3.msra.mxu1 %v11696_v57 }
 0x264   : > { %4973 = vmatmul.mubr.f32.vlgmr.msra.gmra.mxu1 %v7779_v37  ;;  %8419 = vmatprep.subr.mxu1 %v11495_v9  ;;  %v7783_v9 = vld [vmem:[%s12768_s5 + $0xa0] sm:$0xff] }
 0x265   : > { %8420 = vmatpush3.msra.mxu1 %v11498_v5  ;;  %4977 = vmatprep.mubr.f32.mxu1 %v7782_v32  ;;  %v7786_v5 = vld [vmem:[%s12768_s5 + $0xb8] sm:$0xff] }
 0x266   : > { %8421 = vmatprep.subr.mxu1 %v11503_v53  ;;  %v7785_v53 = vld [vmem:[%s12768_s5 + $0xb0] sm:$0xff] }
 0x267   : > { %8422 = vmatpush3.msra.mxu1 %v11516_v7  ;;  %v7788_v7 = vld [vmem:[%s12768_s5 + $0xc8] sm:$0xff] }
 0x268   : > { %4978 = vmatmul.mubr.f32.gmra.mxu1 %v7781_v61  ;;  %8423 = vmatprep.subr.mxu1 %v11523_v39  ;;  %v7787_v39 = vld [vmem:[%s12768_s5 + $0xc0] sm:$0xff] }
 0x269   : > { %8424 = vmatpush3.msra.mxu1 %v11528_v41  ;;  %4982 = vmatprep.mubr.f32.mxu1 %v7784_v2  ;;  %v7790_v41 = vld [vmem:[%s12768_s5 + $0xd8] sm:$0xff] }
 0x26a   : > { %8425 = vmatprep.subr.mxu1 %v11539_v1  ;;  %v7789_v1 = vld [vmem:[%s12768_s5 + $0xd0] sm:$0xff] }
 0x26b   : > { %8426 = vmatpush3.msra.mxu1 %v11545_v0  ;;  %v7792_v0 = vld [vmem:[%s12768_s5 + $0xe8] sm:$0xff] }
 0x26c   : > { %4983 = vmatmul.mubr.f32.gmra.mxu1 %v7783_v9  ;;  %8427 = vmatprep.subr.mxu1 %v11552_v11  ;;  %v7791_v11 = vld [vmem:[%s12768_s5 + $0xe0] sm:$0xff] }
 0x26d   : > { %8428 = vmatpush3.msra.mxu1 %v11557_v21  ;;  %4987 = vmatprep.mubr.f32.mxu1 %v7786_v5  ;;  %v7794_v21 = vld [vmem:[%s12768_s5 + $0xf8] sm:$0xff] }
 0x26e   : > { %8429 = vmatprep.subr.mxu1 %v11568_v22  ;;  %v7793_v22 = vld [vmem:[%s12768_s5 + $0xf0] sm:$0xff] }
 0x26f   : > { %8430 = vmatpush3.msra.mxu1 %v11573_v36  ;;  %v7812_v36 = vld [vmem:[%s12768_s5 + $0x188] sm:$0xff] }
 0x270   : > { %4988 = vmatmul.mubr.f32.gmra.mxu1 %v7785_v53  ;;  %8431 = vmatprep.subr.mxu1 %v11580_v23  ;;  %v7811_v23 = vld [vmem:[%s12768_s5 + $0x180] sm:$0xff] }
 0x271   : > { %8432 = vmatpush3.msra.mxu1 %v11586_v43  ;;  %4992 = vmatprep.mubr.f32.mxu1 %v7788_v7  ;;  %v7814_v43 = vld [vmem:[%s12768_s5 + $0x198] sm:$0xff] }
 0x272   : > { %8433 = vmatprep.subr.mxu1 %v11597_v58  ;;  %v7813_v58 = vld [vmem:[%s12768_s5 + $0x190] sm:$0xff] }
 0x273   : > { %8434 = vmatpush3.msra.mxu1 %v11603_v28  ;;  %v7816_v28 = vld [vmem:[%s12768_s5 + $0x1a8] sm:$0xff] }
 0x274   : > { %4993 = vmatmul.mubr.f32.gmra.mxu1 %v7787_v39  ;;  %8435 = vmatprep.subr.mxu1 %v11610_v49  ;;  %v7815_v49 = vld [vmem:[%s12768_s5 + $0x1a0] sm:$0xff] }
 0x275   : > { %8436 = vmatpush3.msra.mxu1 %v11616_v34  ;;  %4997 = vmatprep.mubr.f32.mxu1 %v7790_v41  ;;  %v7818_v34 = vld [vmem:[%s12768_s5 + $0x1b8] sm:$0xff] }
 0x276   : > { %8437 = vmatprep.subr.mxu1 %v11627_v4  ;;  %v7817_v4 = vld [vmem:[%s12768_s5 + $0x1b0] sm:$0xff] }
 0x277   : > { %8438 = vmatpush3.msra.mxu1 %v11633_v52  ;;  %v7820_v52 = vld [vmem:[%s12768_s5 + $0x1c8] sm:$0xff] }
 0x278   : > { %4998 = vmatmul.mubr.f32.gmra.mxu1 %v7789_v1  ;;  %8439 = vmatprep.subr.mxu1 %v11640_v19  ;;  %v7819_v19 = vld [vmem:[%s12768_s5 + $0x1c0] sm:$0xff] }
 0x279   : > { %8440 = vmatpush3.msra.mxu1 %v11646_v54  ;;  %5002 = vmatprep.mubr.f32.mxu1 %v7792_v0  ;;  %v7822_v54 = vld [vmem:[%s12768_s5 + $0x1d8] sm:$0xff] }
 0x27a   : > { %8441 = vmatprep.subr.mxu1 %v11652_v10  ;;  %v7821_v10 = vld [vmem:[%s12768_s5 + $0x1d0] sm:$0xff] }
 0x27b   : > { %8442 = vmatpush3.msra.mxu1 %v11658_v46  ;;  %v7824_v46 = vld [vmem:[%s12768_s5 + $0x1e8] sm:$0xff] }
 0x27c   : > { %5003 = vmatmul.mubr.f32.gmra.mxu1 %v7791_v11  ;;  %8443 = vmatprep.subr.mxu1 %v11663_v24  ;;  %v7823_v24 = vld [vmem:[%s12768_s5 + $0x1e0] sm:$0xff] }
 0x27d   : > { %8444 = vmatpush3.msra.mxu1 %v11669_v63  ;;  %5007 = vmatprep.mubr.f32.mxu1 %v7794_v21  ;;  %v7826_v63 = vld [vmem:[%s12768_s5 + $0x1f8] sm:$0xff] }
 0x27e   : > { %8445 = vmatprep.subr.mxu1 %v11674_v17  ;;  %v7825_v17 = vld [vmem:[%s12768_s5 + $0x1f0] sm:$0xff] }
 0x27f   : > { %8446 = vmatpush3.msra.mxu1 %v11680_v62  ;;  %v12865_v62 = vmov 0.0  }
 0x280   : > { %5008 = vmatmul.mubr.f32.gmra.mxu1 %v7793_v22  ;;  %8447 = vmatprep.subr.mxu1 %v11684_v14  ;;  %5284 = vst.msk [vmem:[#allocation2 + $0x10] sm:$0xff] %vm5281_vm1, %v12865_v62  ;;  %5282 = vst.msk [vmem:[#allocation2] sm:$0xff] %vm5281_vm1, %v12865_v62  ;;  %v5409_v14 = vld [vmem:[%s12766_s3 + $0x18] sm:$0xff] }
 0x281   : > { %8448 = vmatpush3.msra.mxu1 %v11688_v55  ;;  %5216 = vmatprep.mubr.f32.mxu1 %v7812_v36  ;;  %5283 = vst.msk [vmem:[#allocation2 + $0x8] sm:$0xff] %vm5281_vm1, %v12865_v62  ;;  %5285 = vst.msk [vmem:[#allocation2 + $0x18] sm:$0xff] %vm5281_vm1, %v12865_v62  ;;  %v7838_v55 = vld [vmem:[%s12766_s3 + $0x38] sm:$0xff] }
 0x282   : > { %8449 = vmatprep.subr.mxu1 %v11692_v38  ;;  %5286 = vst.msk [vmem:[#allocation2 + $0x20] sm:$0xff] %vm5281_vm1, %v12865_v62  ;;  %5287 = vst.msk [vmem:[#allocation2 + $0x28] sm:$0xff] %vm5281_vm1, %v12865_v62  ;;  %9079 = vmatprep.subr.mxu0 %v5409_v14  ;;  %v5408_v38 = vld [vmem:[%s12766_s3 + $0x10] sm:$0xff] }
 0x283   : > { %8450 = vmatpush3.msra.mxu1 %v11696_v57  ;;  %5288 = vst.msk [vmem:[#allocation2 + $0x30] sm:$0xff] %vm5281_vm1, %v12865_v62  ;;  %5289 = vst.msk [vmem:[#allocation2 + $0x38] sm:$0xff] %vm5281_vm1, %v12865_v62  ;;  %9080 = vmatpush3.msra.mxu0 %v5409_v14  ;;  %v7837_v57 = vld [vmem:[%s12766_s3 + $0x30] sm:$0xff] }
 0x284   : > { %5217 = vmatmul.mubr.f32.vlgmr.msra.gmra.mxu1 %v7811_v23  ;;  %5290 = vst.msk [vmem:[#allocation2 + $0x40] sm:$0xff] %vm5281_vm1, %v12865_v62  ;;  %5291 = vst.msk [vmem:[#allocation2 + $0x48] sm:$0xff] %vm5281_vm1, %v12865_v62  ;;  %9099 = vmatprep.subr.mxu1 %v7838_v55 }
 0x285   : > { %5221 = vmatprep.mubr.f32.mxu1 %v7814_v43  ;;  %5292 = vst.msk [vmem:[#allocation2 + $0x50] sm:$0xff] %vm5281_vm1, %v12865_v62  ;;  %5293 = vst.msk [vmem:[#allocation2 + $0x58] sm:$0xff] %vm5281_vm1, %v12865_v62  ;;  %9100 = vmatpush3.msra.mxu1 %v7838_v55  ;;  %v13249_v62 = vld [vmem:[#allocation10_spill] sm:$0xff] }
 0x286   : > { %9081 = vmatprep.subr.mxu0 %v5408_v38  ;;  %9101 = vmatprep.subr.mxu1 %v7837_v57 }
 0x287   : > { %9082 = vmatpush3.msra.mxu0 %v5408_v38  ;;  %9102 = vmatpush3.msra.mxu1 %v7837_v57 }
 0x288   : > { %5222 = vmatmul.mubr.f32.gmra.mxu1 %v7813_v58  ;;  %9083 = vmatprep.subr.mxu0 %v5407_v48  ;;  %v5398_v12 = vld [vmem:[#allocation2 + $0x7] sm:$0xff] }
 0x289   : > { %5226 = vmatprep.mubr.f32.mxu1 %v7816_v28  ;;  %9103 = vmatprep.subr.mxu1 %v7836_v15  ;;  %v5579_v59 = vld [vmem:[#allocation2 + $0x8] sm:$0xff] }
 0x28a   : > { %9084 = vmatpush3.msra.mxu0 %v5407_v48  ;;  %9104 = vmatpush3.msra.mxu1 %v7836_v15 }
 0x28b   : > { %9085 = vmatprep.subr.mxu0 %v5406_v16  ;;  %9105 = vmatprep.subr.mxu1 %v7835_v8 }
 0x28c   : > { %5227 = vmatmul.mubr.f32.gmra.mxu1 %v7815_v49  ;;  %9086 = vmatpush3.msra.mxu0 %v5406_v16 }
 0x28d   : > { %5231 = vmatprep.mubr.f32.mxu1 %v7818_v34  ;;  %9087 = vmatprep.mubr.msk.f32.mxu0 %vm5281_vm1, %v5398_v12 }
 0x28e   : > { %9106 = vmatpush3.msra.mxu1 %v7835_v8  ;;  %9119 = vmatprep.subr.mxu0 %v12007_v42 }
 0x28f   : > { %9139 = vmatprep.subr.mxu1 %v12012_v30 }
 0x290   : > { %5232 = vmatmul.mubr.f32.gmra.mxu1 %v7817_v4 }
 0x291   : > { %5236 = vmatprep.mubr.f32.mxu1 %v7820_v52 }
 0x294   : > { %5237 = vmatmul.mubr.f32.gmra.mxu1 %v7819_v19 }
 0x295   : > { %5241 = vmatprep.mubr.f32.mxu1 %v7822_v54 }
 0x298   : > { %5242 = vmatmul.mubr.f32.gmra.mxu1 %v7821_v10 }
 0x299   : > { %5246 = vmatprep.mubr.f32.mxu1 %v7824_v46 }
 0x29c   : > { %5247 = vmatmul.mubr.f32.gmra.mxu1 %v7823_v24 }
 0x29d   : > { %5251 = vmatprep.mubr.f32.mxu1 %v7826_v63 }
 0x2a0   : > { %5252 = vmatmul.mubr.f32.gmra.mxu1 %v7825_v17 }
 0x2a1   : > { %9107 = vmatprep.mubr.msk.f32.mxu1 %vm5281_vm1, %v5579_v59 }
 0x304   : > { %v8283_v6 = vpop.f32.mrf.mxu1 }
 0x306   : > { %v8284_v25 = vpop.f32.mrf.mxu1  ;;  %v8395_v9 = vpop.f32.mrf.mxu0 }
 0x307   : > { %v8285_v50 = vadd.f32 %v8284_v25, %v8283_v6 }
 0x308   : > { %v8286_v60 = vpop.f32.mrf.mxu1  ;;  %v8396_v7 = vpop.f32.mrf.mxu0 }
 0x309   : > { %v8397_v55 = vadd.f32 %v8396_v7, %v8395_v9  ;;  %v7849_v7 = vld [vmem:[%s12766_s3 + $0x50] sm:$0xff] }
 0x30a   : > { %v8287_v18 = vpop.f32.mrf.mxu1  ;;  %v8398_v1 = vpop.f32.mrf.mxu0 }
 0x30b   : > { %v12016_v33 = vadd.f32 %v8287_v18, %v8286_v60 }
 0x30c   : > { %v8289_v31 = vpop.f32.mrf.mxu1  ;;  %v8399_v21 = vpop.f32.mrf.mxu0 }
 0x30d   : > { %v8400_v6 = vadd.f32 %v8399_v21, %v8398_v1 }
 0x30e   : > { %v8290_v20 = vpop.f32.mrf.mxu1  ;;  %v8401_v23 = vpop.f32.mrf.mxu0 }
 0x30f   : > { %v12018_v40 = vadd.f32 %v8290_v20, %v8289_v31 }
 0x310   : > { %v8292_v47 = vpop.f32.mrf.mxu1  ;;  %v8402_v28 = vpop.f32.mrf.mxu0 }
 0x312   : > { %v8293_v3 = vpop.f32.mrf.mxu1  ;;  %v8404_v4 = vpop.f32.mrf.mxu0 }
 0x313   : > { %v12020_v29 = vadd.f32 %v8293_v3, %v8292_v47 }
 0x314   : > { %v8295_v27 = vpop.f32.mrf.mxu1  ;;  %v8405_v54 = vpop.f32.mrf.mxu0 }
 0x316   : > { %v8296_v35 = vpop.f32.mrf.mxu1  ;;  %v8407_v24 = vpop.f32.mrf.mxu0 }
 0x317   : > { %v12022_v56 = vadd.f32 %v8296_v35, %v8295_v27  ;;  %v8403_v35 = vadd.f32 %v8402_v28, %v8401_v23 }
 0x318   : > { %v8298_v13 = vpop.f32.mrf.mxu1  ;;  %v8408_v57 = vpop.f32.mrf.mxu0 }
 0x319   : > { %v8409_v23 = vadd.f32 %v8408_v57, %v8407_v24  ;;  %v12093_v57 = vld [vmem:[%s12766_s3 + $0x98] sm:$0xff] }
 0x31a   : > { %v8299_v44 = vpop.f32.mrf.mxu1  ;;  %v8410_v60 = vpop.f32.mrf.mxu0 }
 0x31b   : > { %v12024_v51 = vadd.f32 %v8299_v44, %v8298_v13 }
 0x31c   : > { %v8301_v45 = vpop.f32.mrf.mxu1  ;;  %v8411_v44 = vpop.f32.mrf.mxu0 }
 0x31e   : > { %v8302_v26 = vpop.f32.mrf.mxu1 }
 0x31f   : > { %v12026_v37 = vadd.f32 %v8302_v26, %v8301_v45 }
 0x320   : > { %v8304_v32 = vpop.f32.mrf.mxu1 }
 0x322   : > { %v8305_v61 = vpop.f32.mrf.mxu1 }
 0x323   : > { %v12028_v2 = vadd.f32 %v8305_v61, %v8304_v32 }
 0x324   : > { %v8339_v5 = vpop.f32.mrf.mxu1 }
 0x326   : > { %v8340_v53 = vpop.f32.mrf.mxu1 }
 0x327   : > { %v8341_v17 = vadd.f32 %v8340_v53, %v8339_v5  ;;  %v8406_v5 = vadd.f32 %v8405_v54, %v8404_v4  ;;  %v12046_v53 = vpop.f32.mrf.mxu0 }
 0x328   : > { %v8342_v39 = vpop.f32.mrf.mxu1 }
 0x329   : > { %v5257_v15 = vmax.f32 %v8285_v50, %v8341_v17  ;;  %v8414_v4 = vpop.f32.mrf.mxu0 }
 0x32a   : > { %v8343_v41 = vpop.f32.mrf.mxu1 }
 0x32b   : > { %v8344_v16 = vadd.f32 %v8343_v41, %v8342_v39  ;;  %v8416_v17 = vpop.f32.mrf.mxu0 }
 0x32c   : > { %v8345_v0 = vpop.f32.mrf.mxu1 }
 0x32d   : > { %v5258_v31 = vmax.f32 %v12016_v33, %v8344_v16 }
 0x32e   : > { %v8346_v11 = vpop.f32.mrf.mxu1 }
 0x32f   : > { %v8347_v20 = vadd.f32 %v8346_v11, %v8345_v0 }
 0x330   : > { %v8348_v22 = vpop.f32.mrf.mxu1 }
 0x331   : > { %v5259_v45 = vmax.f32 %v12018_v40, %v8347_v20  ;;  %v7861_v40 = vld [vmem:[%s12766_s3 + $0x70] sm:$0xff] }
 0x332   : > { %v8349_v36 = vpop.f32.mrf.mxu1 }
 0x333   : > { %v8350_v26 = vadd.f32 %v8349_v36, %v8348_v22 }
 0x334   : > { %v8351_v43 = vpop.f32.mrf.mxu1 }
 0x335   : > { %v5260_v0 = vmax.f32 %v12020_v29, %v8350_v26  ;;  %v7848_v29 = vld [vmem:[%s12766_s3 + $0x48] sm:$0xff] }
 0x336   : > { %v8352_v58 = vpop.f32.mrf.mxu1 }
 0x337   : > { %v8353_v11 = vadd.f32 %v8352_v58, %v8351_v43  ;;  %v7860_v43 = vld [vmem:[%s12766_s3 + $0x68] sm:$0xff] }
 0x338   : > { %v12030_v49 = vpop.f32.mrf.mxu1 }
 0x33a   : > { %v12032_v34 = vpop.f32.mrf.mxu1 }
 0x33b   : > { %v8356_v24 = vadd.f32 %v12032_v34, %v12030_v49  ;;  %v8412_v34 = vadd.f32 %v8411_v44, %v8410_v60 }
 0x33c   : > { %v12034_v52 = vpop.f32.mrf.mxu1 }
 0x33e   : > { %v12036_v19 = vpop.f32.mrf.mxu1 }
 0x340   : > { %v12038_v10 = vpop.f32.mrf.mxu1 }
 0x342   : > { %v12040_v46 = vpop.f32.mrf.mxu1 }
 0x344   : > { %v8451_v63 = vpop.f32.mrf.mxu1 }
 0x346   : > { %v8452_v14 = vpop.f32.mrf.mxu1 }
 0x347   : > { %v8453_v38 = vadd.f32 %v8452_v14, %v8451_v63  ;;  %v7847_v14 = vld [vmem:[%s12766_s3 + $0x40] sm:$0xff] }
 0x348   : > { %v8454_v48 = vpop.f32.mrf.mxu1 }
 0x349   : > { %v5265_v8 = vmax.f32 %v8397_v55, %v8453_v38 }
 0x34a   : > { %v8455_v12 = vpop.f32.mrf.mxu1 }
 0x34b   : > { %v5273_v59 = vmax.f32 %v5257_v15, %v5265_v8  ;;  %v8456_v25 = vadd.f32 %v8455_v12, %v8454_v48  ;;  %v7886_v8 = vld [vmem:[%s12766_s3 + $0xb8] sm:$0xff]  ;;  %v5262_v12 = vmax.f32 %v12024_v51, %v8356_v24  ;;  %v7908_v24 = vld [vmem:[%s12766_s3 + $0xe8] sm:$0xff] }
 0x34c   : > { %v8457_v18 = vpop.f32.mrf.mxu1 }
 0x34d   : > { %5294 = vst.msk [vmem:[#allocation2 + $0x10] sm:$0xff] %vm5281_vm1, %v5273_v59  ;;  %v5266_v47 = vmax.f32 %v8400_v6, %v8456_v25  ;;  %v8359_v59 = vadd.f32 %v12036_v19, %v12034_v52  ;;  %v8417_v25 = vpop.f32.mrf.mxu0 }
 0x34e   : > { %v8458_v3 = vpop.f32.mrf.mxu1 }
 0x34f   : > { %v5274_v27 = vmax.f32 %v5258_v31, %v5266_v47  ;;  %v8459_v13 = vadd.f32 %v8458_v3, %v8457_v18  ;;  %v8415_v31 = vadd.f32 %v8414_v4, %v12046_v53  ;;  %v8418_v47 = vadd.f32 %v8417_v25, %v8416_v17  ;;  %v7907_v17 = vld [vmem:[%s12766_s3 + $0xe0] sm:$0xff] }
 0x350   : > { %v8460_v50 = vpop.f32.mrf.mxu1  ;;  %v5263_v3 = vmax.f32 %v12026_v37, %v8359_v59 }
 0x351   : > { %5295 = vst.msk [vmem:[#allocation2 + $0x18] sm:$0xff] %vm5281_vm1, %v5274_v27  ;;  %v5267_v32 = vmax.f32 %v8403_v35, %v8459_v13  ;;  %v8362_v27 = vadd.f32 %v12040_v46, %v12038_v10 }
 0x352   : > { %v8461_v61 = vpop.f32.mrf.mxu1 }
 0x353   : > { %v5275_v9 = vmax.f32 %v5259_v45, %v5267_v32  ;;  %v8462_v33 = vadd.f32 %v8461_v61, %v8460_v50  ;;  %v5264_v37 = vmax.f32 %v12028_v2, %v8362_v27 }
 0x354   : > { %v8463_v39 = vpop.f32.mrf.mxu1  ;;  %v12051_v41 = vld [vmem:[#allocation2 + $0xf] sm:$0xff] }
 0x355   : > { %v12053_v1 = vld [vmem:[#allocation2 + $0x10] sm:$0xff]  ;;  %5296 = vst.msk [vmem:[#allocation2 + $0x20] sm:$0xff] %vm5281_vm1, %v5275_v9  ;;  %v5268_v21 = vmax.f32 %v8406_v5, %v8462_v33  ;;  %9088 = vmatmul.mubr.msk.f32.vlgmr.msra.gmra.mxu0 %vm5281_vm1, %v12051_v41 }
 0x356   : > { %9108 = vmatmul.mubr.msk.f32.vlgmr.msra.gmra.mxu1 %vm5281_vm1, %v12053_v1  ;;  %v8464_v22 = vpop.f32.mrf.mxu1  ;;  %9120 = vmatpush3.msra.mxu0 %v12007_v42  ;;  %v5729_v5 = vld [vmem:[#allocation2 + $0x9] sm:$0xff] }
 0x357   : > { %9140 = vmatpush3.msra.mxu1 %v12012_v30  ;;  %v5276_v36 = vmax.f32 %v5260_v0, %v5268_v21  ;;  %v8465_v28 = vadd.f32 %v8464_v22, %v8463_v39  ;;  %9121 = vmatprep.subr.mxu0 %v7849_v7  ;;  %v5261_v30 = vmax.f32 %v12022_v56, %v8353_v11  ;;  %v7859_v56 = vld [vmem:[%s12766_s3 + $0x60] sm:$0xff]  ;;  %v7885_v39 = vld [vmem:[%s12766_s3 + $0xb0] sm:$0xff]  ;;  %v7872_v0 = vld [vmem:[%s12766_s3 + $0x88] sm:$0xff] }
 0x358   : > { %9141 = vmatprep.subr.mxu1 %v7861_v40  ;;  %v8466_v58 = vpop.f32.mrf.mxu1  ;;  %v12072_v54 = vld [vmem:[#allocation2 + $0x17] sm:$0xff]  ;;  %9122 = vmatpush3.msra.mxu0 %v7849_v7  ;;  %v7884_v11 = vld [vmem:[%s12766_s3 + $0xa8] sm:$0xff] }
 0x359   : > { %v12074_v42 = vld [vmem:[#allocation2 + $0x18] sm:$0xff]  ;;  %9142 = vmatpush3.msra.mxu1 %v7861_v40  ;;  %5297 = vst.msk [vmem:[#allocation2 + $0x28] sm:$0xff] %vm5281_vm1, %v5276_v36  ;;  %v5269_v63 = vmax.f32 %v8409_v23, %v8465_v28  ;;  %9090 = vmatprep.mubr.msk.f32.mxu0 %vm5281_vm1, %v12072_v54  ;;  %v7873_v7 = vld [vmem:[%s12766_s3 + $0x90] sm:$0xff]  ;;  %v7871_v36 = vld [vmem:[%s12766_s3 + $0x80] sm:$0xff] }
 0x35a   : > { %9110 = vmatprep.mubr.msk.f32.mxu1 %vm5281_vm1, %v12074_v42  ;;  %v8467_v55 = vpop.f32.mrf.mxu1  ;;  %9123 = vmatprep.subr.mxu0 %v7848_v29  ;;  %v5730_v33 = vld [vmem:[#allocation2 + $0x11] sm:$0xff]  ;;  %v7883_v23 = vld [vmem:[%s12766_s3 + $0xa0] sm:$0xff] }
 0x35b   : > { %9143 = vmatprep.subr.mxu1 %v7860_v43  ;;  %v5277_v49 = vmax.f32 %v5261_v30, %v5269_v63  ;;  %v8468_v38 = vadd.f32 %v8467_v55, %v8466_v58  ;;  %9124 = vmatpush3.msra.mxu0 %v7848_v29  ;;  %v7898_v29 = vld [vmem:[%s12766_s3 + $0xd8] sm:$0xff]  ;;  %v7897_v58 = vld [vmem:[%s12766_s3 + $0xd0] sm:$0xff]  ;;  %v7896_v30 = vld [vmem:[%s12766_s3 + $0xc8] sm:$0xff] }
 0x35c   : > { %9144 = vmatpush3.msra.mxu1 %v7860_v43  ;;  %v8469_v48 = vpop.f32.mrf.mxu1  ;;  %v12095_v15 = vld [vmem:[#allocation2 + $0x1f] sm:$0xff]  ;;  %9125 = vmatprep.subr.mxu0 %v7847_v14 }
 0x35d   : > { %v12097_v16 = vld [vmem:[#allocation2 + $0x20] sm:$0xff]  ;;  %9145 = vmatprep.subr.mxu1 %v7859_v56  ;;  %5298 = vst.msk [vmem:[#allocation2 + $0x30] sm:$0xff] %vm5281_vm1, %v5277_v49  ;;  %v5270_v6 = vmax.f32 %v8412_v34, %v8468_v38  ;;  %9091 = vmatmul.mubr.msk.f32.gmra.mxu0 %vm5281_vm1, %v12095_v15  ;;  %v7910_v43 = vld [vmem:[%s12766_s3 + $0xf8] sm:$0xff]  ;;  %v7921_v49 = vld [vmem:[%s12766_s3 + $0x110] sm:$0xff] }
 0x35e   : > { %9111 = vmatmul.mubr.msk.f32.gmra.mxu1 %vm5281_vm1, %v12097_v16  ;;  %v8470_v60 = vpop.f32.mrf.mxu1  ;;  %9126 = vmatpush3.msra.mxu0 %v7847_v14  ;;  %v12157_v53 = vld [vmem:[#allocation2 + $0x19] sm:$0xff]  ;;  %v6542_v34 = vld [vmem:[#allocation2 + $0x50] sm:$0xff] }
 0x35f   : > { %9146 = vmatpush3.msra.mxu1 %v7859_v56  ;;  %v5278_v18 = vmax.f32 %v5262_v12, %v5270_v6  ;;  %v8471_v51 = vadd.f32 %v8470_v60, %v8469_v48  ;;  %9159 = vmatprep.subr.mxu0 %v12093_v57  ;;  %v7895_v63 = vld [vmem:[%s12766_s3 + $0xc0] sm:$0xff]  ;;  %v7922_v55 = vld [vmem:[%s12766_s3 + $0x118] sm:$0xff] }
 0x360   : > { %9179 = vmatprep.subr.mxu1 %v7886_v8  ;;  %v8472_v52 = vpop.f32.mrf.mxu1  ;;  %v12112_v19 = vld [vmem:[#allocation2 + $0x27] sm:$0xff] }
 0x361   : > { %v12114_v20 = vld [vmem:[#allocation2 + $0x28] sm:$0xff]  ;;  %5299 = vst.msk [vmem:[#allocation2 + $0x38] sm:$0xff] %vm5281_vm1, %v5278_v18  ;;  %v5271_v35 = vmax.f32 %v8415_v31, %v8471_v51  ;;  %9093 = vmatprep.mubr.msk.f32.mxu0 %vm5281_vm1, %v12112_v19  ;;  %v6866_v48 = vld [vmem:[%s12769_s6] sm:$0xff] }
 0x362   : > { %9113 = vmatprep.mubr.msk.f32.mxu1 %vm5281_vm1, %v12114_v20  ;;  %v8473_v13 = vpop.f32.mrf.mxu1 }
 0x363   : > { %v5279_v44 = vmax.f32 %v5263_v3, %v5271_v35  ;;  %v8474_v50 = vadd.f32 %v8473_v13, %v8472_v52 }
 0x364   : > { %v12124_v45 = vld [vmem:[#allocation2 + $0x2f] sm:$0xff] }
 0x365   : > { %v12126_v26 = vld [vmem:[#allocation2 + $0x30] sm:$0xff]  ;;  %5300 = vst.msk [vmem:[#allocation2 + $0x40] sm:$0xff] %vm5281_vm1, %v5279_v44  ;;  %v5272_v10 = vmax.f32 %v8418_v47, %v8474_v50  ;;  %9094 = vmatmul.mubr.msk.f32.gmra.mxu0 %vm5281_vm1, %v12124_v45 }
 0x366   : > { %9114 = vmatmul.mubr.msk.f32.gmra.mxu1 %vm5281_vm1, %v12126_v26  ;;  %v12176_v40 = vld [vmem:[#allocation2 + $0x29] sm:$0xff] }
 0x367   : > { %v5280_v46 = vmax.f32 %v5264_v37, %v5272_v10 }
 0x368   : > { %v12134_v32 = vld [vmem:[#allocation2 + $0x37] sm:$0xff] }
 0x369   : > { %v12136_v61 = vld [vmem:[#allocation2 + $0x38] sm:$0xff]  ;;  %5301 = vst.msk [vmem:[#allocation2 + $0x48] sm:$0xff] %vm5281_vm1, %v5280_v46  ;;  %9096 = vmatprep.mubr.msk.f32.mxu0 %vm5281_vm1, %v12134_v32 }
 0x36a   : > { %9116 = vmatprep.mubr.msk.f32.mxu1 %vm5281_vm1, %v12136_v61  ;;  %v12188_v21 = vld [vmem:[#allocation2 + $0x31] sm:$0xff] }
 0x36c   : > { %v12143_v2 = vld [vmem:[#allocation2 + $0x3f] sm:$0xff] }
 0x36d   : > { %v12145_v9 = vld [vmem:[#allocation2 + $0x40] sm:$0xff]  ;;  %9097 = vmatmul.mubr.msk.f32.gmra.mxu0 %vm5281_vm1, %v12143_v2 }
 0x36e   : > { %9117 = vmatmul.mubr.msk.f32.gmra.mxu1 %vm5281_vm1, %v12145_v9  ;;  %9127 = vmatprep.mubr.msk.f32.mxu0 %vm5281_vm1, %v5729_v5  ;;  %v12194_v22 = vld [vmem:[#allocation2 + $0x39] sm:$0xff] }
 0x36f   : > { %9147 = vmatprep.mubr.msk.f32.mxu1 %vm5281_vm1, %v12051_v41  ;;  %v12170_v41 = vld [vmem:[#allocation2 + $0x21] sm:$0xff] }
 0x370   : > { %v12206_v28 = vld [vmem:[#allocation2 + $0x41] sm:$0xff]  ;;  %v6226_v56 = vld [vmem:[#allocation2 + $0x49] sm:$0xff] }
 0x371   : > { %9128 = vmatmul.mubr.msk.f32.vlgmr.msra.gmra.mxu0 %vm5281_vm1, %v5730_v33  ;;  %v12208_v4 = vld [vmem:[#allocation2 + $0x47] sm:$0xff]  ;;  %v6384_v38 = vld [vmem:[#allocation2 + $0x4f] sm:$0xff] }
 0x372   : > { %9148 = vmatmul.mubr.msk.f32.vlgmr.msra.gmra.mxu1 %vm5281_vm1, %v12072_v54  ;;  %9130 = vmatprep.mubr.msk.f32.mxu0 %vm5281_vm1, %v12157_v53  ;;  %v6076_v14 = vld [vmem:[#allocation2 + $0x48] sm:$0xff] }
 0x373   : > { %9150 = vmatprep.mubr.msk.f32.mxu1 %vm5281_vm1, %v12095_v15  ;;  %9160 = vmatpush3.msra.mxu0 %v12093_v57  ;;  %v6692_v57 = vld [vmem:[#allocation2 + $0x51] sm:$0xff] }
 0x374   : > { %9180 = vmatpush3.msra.mxu1 %v7886_v8  ;;  %9161 = vmatprep.subr.mxu0 %v7873_v7 }
 0x375   : > { %9181 = vmatprep.subr.mxu1 %v7885_v39  ;;  %9131 = vmatmul.mubr.msk.f32.gmra.mxu0 %vm5281_vm1, %v12170_v41 }
 0x376   : > { %9151 = vmatmul.mubr.msk.f32.gmra.mxu1 %vm5281_vm1, %v12112_v19  ;;  %9133 = vmatprep.mubr.msk.f32.mxu0 %vm5281_vm1, %v12176_v40 }
 0x377   : > { %9153 = vmatprep.mubr.msk.f32.mxu1 %vm5281_vm1, %v12124_v45  ;;  %9162 = vmatpush3.msra.mxu0 %v7873_v7 }
 0x378   : > { %9182 = vmatpush3.msra.mxu1 %v7885_v39  ;;  %9163 = vmatprep.subr.mxu0 %v7872_v0 }
 0x379   : > { %9183 = vmatprep.subr.mxu1 %v7884_v11  ;;  %9134 = vmatmul.mubr.msk.f32.gmra.mxu0 %vm5281_vm1, %v12188_v21 }
 0x37a   : > { %9154 = vmatmul.mubr.msk.f32.gmra.mxu1 %vm5281_vm1, %v12134_v32  ;;  %9136 = vmatprep.mubr.msk.f32.mxu0 %vm5281_vm1, %v12194_v22 }
 0x37b   : > { %9156 = vmatprep.mubr.msk.f32.mxu1 %vm5281_vm1, %v12143_v2  ;;  %9164 = vmatpush3.msra.mxu0 %v7872_v0 }
 0x37c   : > { %9184 = vmatpush3.msra.mxu1 %v7884_v11  ;;  %9165 = vmatprep.subr.mxu0 %v7871_v36 }
 0x37d   : > { %9185 = vmatprep.subr.mxu1 %v7883_v23  ;;  %9137 = vmatmul.mubr.msk.f32.gmra.mxu0 %vm5281_vm1, %v12206_v28 }
 0x37e   : > { %9157 = vmatmul.mubr.msk.f32.gmra.mxu1 %vm5281_vm1, %v12208_v4  ;;  %9167 = vmatprep.mubr.msk.f32.mxu0 %vm5281_vm1, %v12053_v1  ;;  %v7909_v1 = vld [vmem:[%s12766_s3 + $0xf0] sm:$0xff] }
 0x37f   : > { %9187 = vmatprep.mubr.msk.f32.mxu1 %vm5281_vm1, %v5730_v33  ;;  %9166 = vmatpush3.msra.mxu0 %v7871_v36 }
 0x380   : > { %9186 = vmatpush3.msra.mxu1 %v7883_v23  ;;  %9199 = vmatprep.subr.mxu0 %v7898_v29 }
 0x381   : > { %9219 = vmatprep.subr.mxu1 %v7910_v43  ;;  %9168 = vmatmul.mubr.msk.f32.vlgmr.msra.gmra.mxu0 %vm5281_vm1, %v12074_v42 }
 0x382   : > { %9188 = vmatmul.mubr.msk.f32.vlgmr.msra.gmra.mxu1 %vm5281_vm1, %v12157_v53  ;;  %9170 = vmatprep.mubr.msk.f32.mxu0 %vm5281_vm1, %v12097_v16 }
 0x383   : > { %9190 = vmatprep.mubr.msk.f32.mxu1 %vm5281_vm1, %v12170_v41  ;;  %9200 = vmatpush3.msra.mxu0 %v7898_v29 }
 0x384   : > { %9220 = vmatpush3.msra.mxu1 %v7910_v43  ;;  %9201 = vmatprep.subr.mxu0 %v7897_v58 }
 0x385   : > { %9221 = vmatprep.subr.mxu1 %v7909_v1  ;;  %9171 = vmatmul.mubr.msk.f32.gmra.mxu0 %vm5281_vm1, %v12114_v20 }
 0x386   : > { %9191 = vmatmul.mubr.msk.f32.gmra.mxu1 %vm5281_vm1, %v12176_v40  ;;  %9173 = vmatprep.mubr.msk.f32.mxu0 %vm5281_vm1, %v12126_v26 }
 0x387   : > { %9193 = vmatprep.mubr.msk.f32.mxu1 %vm5281_vm1, %v12188_v21  ;;  %9202 = vmatpush3.msra.mxu0 %v7897_v58  ;;  %v13240_v58 = vld [vmem:[#allocation20_spill] sm:$0xff] }
 0x388   : > { %9222 = vmatpush3.msra.mxu1 %v7909_v1  ;;  %9203 = vmatprep.subr.mxu0 %v7896_v30  ;;  %v5313_v1 = vand.u32 7, %v13240_v58  ;;  %v5348_v58 = vand.u32 7, %v13249_v62 }
 0x389   : > { %9223 = vmatprep.subr.mxu1 %v7908_v24  ;;  %9174 = vmatmul.mubr.msk.f32.gmra.mxu0 %vm5281_vm1, %v12136_v61 }
 0x38a   : > { %9194 = vmatmul.mubr.msk.f32.gmra.mxu1 %vm5281_vm1, %v12194_v22  ;;  %9176 = vmatprep.mubr.msk.f32.mxu0 %vm5281_vm1, %v12145_v9  ;;  %vm12438_vm6 = vcmp.ge.s32.totalorder %v5313_v1, 1  ;;  %vm12473_vm12 = vcmp.ge.s32.totalorder %v5348_v58, 1  ;;  %vm12477_vm7 = vcmp.le.s32.totalorder %v5313_v1, 6 }
 0x38b   : > { %9196 = vmatprep.mubr.msk.f32.mxu1 %vm5281_vm1, %v12206_v28  ;;  %9204 = vmatpush3.msra.mxu0 %v7896_v30 }
 0x38c   : > { %9224 = vmatpush3.msra.mxu1 %v7908_v24  ;;  %9205 = vmatprep.subr.mxu0 %v7895_v63 }
 0x38d   : > { %9225 = vmatprep.subr.mxu1 %v7907_v17  ;;  %9177 = vmatmul.mubr.msk.f32.gmra.mxu0 %vm5281_vm1, %v6076_v14 }
 0x38e   : > { %9197 = vmatmul.mubr.msk.f32.gmra.mxu1 %vm5281_vm1, %v6226_v56  ;;  %9207 = vmatprep.mubr.msk.f32.mxu0 %vm5281_vm1, %v12072_v54  ;;  %v7920_v54 = vld [vmem:[%s12766_s3 + $0x108] sm:$0xff] }
 0x38f   : > { %9227 = vmatprep.mubr.msk.f32.mxu1 %vm5281_vm1, %v12074_v42  ;;  %9206 = vmatpush3.msra.mxu0 %v7895_v63  ;;  %v7919_v42 = vld [vmem:[%s12766_s3 + $0x100] sm:$0xff]  ;;  %v13242_v63 = vld [vmem:[#allocation33_spill] sm:$0xff] }
 0x390   : > { %9226 = vmatpush3.msra.mxu1 %v7907_v17  ;;  %9239 = vmatprep.subr.mxu0 %v7922_v55  ;;  %v5306_v17 = vand.u32 7, %v13242_v63 }
 0x391   : > { %9208 = vmatmul.mubr.msk.f32.vlgmr.msra.gmra.mxu0 %vm5281_vm1, %v12095_v15  ;;  %v7934_v15 = vld [vmem:[%s12769_s6 + $0x10] sm:$0xff] }
 0x392   : > { %9228 = vmatmul.mubr.msk.f32.vlgmr.msra.gmra.mxu1 %vm5281_vm1, %v12097_v16  ;;  %9210 = vmatprep.mubr.msk.f32.mxu0 %vm5281_vm1, %v12112_v19  ;;  %vm12444_vm4 = vcmp.ge.s32.totalorder %v5306_v17, 1  ;;  %vm12481_vm8 = vcmp.le.s32.totalorder %v5306_v17, 6 }
 0x393   : > { %9230 = vmatprep.mubr.msk.f32.mxu1 %vm5281_vm1, %v12114_v20  ;;  %9240 = vmatpush3.msra.mxu0 %v7922_v55  ;;  %v13244_v55 = vld [vmem:[#allocation34_spill] sm:$0xff] }
 0x394   : > { %9241 = vmatprep.subr.mxu0 %v7921_v49 }
 0x395   : > { %9211 = vmatmul.mubr.msk.f32.gmra.mxu0 %vm5281_vm1, %v12124_v45 }
 0x396   : > { %9231 = vmatmul.mubr.msk.f32.gmra.mxu1 %vm5281_vm1, %v12126_v26  ;;  %9213 = vmatprep.mubr.msk.f32.mxu0 %vm5281_vm1, %v12134_v32 }
 0x397   : > { %9233 = vmatprep.mubr.msk.f32.mxu1 %vm5281_vm1, %v12136_v61  ;;  %9242 = vmatpush3.msra.mxu0 %v7921_v49  ;;  %v5320_v49 = vand.u32 7, %v13244_v55 }
 0x398   : > { %9243 = vmatprep.subr.mxu0 %v7920_v54 }
 0x399   : > { %9214 = vmatmul.mubr.msk.f32.gmra.mxu0 %vm5281_vm1, %v12143_v2  ;;  %vm12452_vm14 = vcmp.ge.s32.totalorder %v5320_v49, 1  ;;  %vm12491_vm13 = vcmp.le.s32.totalorder %v5320_v49, 6 }
 0x39a   : > { %9234 = vmatmul.mubr.msk.f32.gmra.mxu1 %vm5281_vm1, %v12145_v9  ;;  %9216 = vmatprep.mubr.msk.f32.mxu0 %vm5281_vm1, %v12208_v4 }
 0x39b   : > { %9236 = vmatprep.mubr.msk.f32.mxu1 %vm5281_vm1, %v6076_v14  ;;  %9244 = vmatpush3.msra.mxu0 %v7920_v54  ;;  %v13243_v14 = vld [vmem:[#allocation23_spill] sm:$0xff] }
 0x39c   : > { %9245 = vmatprep.subr.mxu0 %v7919_v42  ;;  %v13245_v54 = vld [vmem:[#allocation27_spill] sm:$0xff] }
 0x39d   : > { %9217 = vmatmul.mubr.msk.f32.gmra.mxu0 %vm5281_vm1, %v6384_v38 }
 0x39e   : > { %9237 = vmatmul.mubr.msk.f32.gmra.mxu1 %vm5281_vm1, %v6542_v34  ;;  %9247 = vmatprep.mubr.msk.f32.mxu0 %vm5281_vm1, %v12157_v53  ;;  %v13246_v34 = vld [vmem:[#allocation8_spill] sm:$0xff] }
 0x39f   : > { %9246 = vmatpush3.msra.mxu0 %v7919_v42  ;;  %9275 = vmatprep.mubr.msk.f32.mxu1 %vm12867_vm3, %v6866_v48  ;;  %v5341_v42 = vand.u32 7, %v13245_v54  ;;  %v5334_v38 = vand.u32 7, %v13246_v34 }
 0x3a1   : > { %9248 = vmatmul.mubr.msk.f32.vlgmr.msra.gmra.mxu0 %vm5281_vm1, %v12170_v41  ;;  %vm12456_vm5 = vcmp.ge.s32.totalorder %v5341_v42, 1  ;;  %vm12460_vm10 = vcmp.ge.s32.totalorder %v5334_v38, 1  ;;  %vm12495_vm15 = vcmp.le.s32.totalorder %v5341_v42, 6 }
 0x3a2   : > { %9250 = vmatprep.mubr.msk.f32.mxu0 %vm5281_vm1, %v12176_v40 }
 0x3a5   : > { %9251 = vmatmul.mubr.msk.f32.gmra.mxu0 %vm5281_vm1, %v12188_v21 }
 0x3a6   : > { %9253 = vmatprep.mubr.msk.f32.mxu0 %vm5281_vm1, %v12194_v22 }
 0x3a9   : > { %9254 = vmatmul.mubr.msk.f32.gmra.mxu0 %vm5281_vm1, %v12206_v28 }
 0x3aa   : > { %9256 = vmatprep.mubr.msk.f32.mxu0 %vm5281_vm1, %v6226_v56  ;;  %v5327_v56 = vand.u32 7, %v13243_v14 }
 0x3ac   : > { %vm12448_vm2 = vcmp.ge.s32.totalorder %v5327_v56, 1  ;;  %vm12487_vm9 = vcmp.le.s32.totalorder %v5327_v56, 6 }
 0x3ad   : > { %9257 = vmatmul.mubr.msk.f32.gmra.mxu0 %vm5281_vm1, %v6692_v57  ;;  %v13247_v57 = vld [vmem:[#allocation30_spill] sm:$0xff]  ;;  %vm12514_vm1 = vcmp.le.s32.totalorder %v5334_v38, 6 }
 0x3ae   : > { %9294 = vmatprep.mubr.msk.f32.mxu0 %vm12867_vm3, %v7934_v15  ;;  %v5355_v48 = vand.u32 7, %v13247_v57  ;;  %vm12525_vm3 = vcmp.le.s32.totalorder %v5348_v58, 6 }
 0x3b0   : > { %vm12464_vm11 = vcmp.ge.s32.totalorder %v5355_v48, 1  ;;  %vm12499_vm0 = vcmp.le.s32.totalorder %v5355_v48, 6 }
 0x415   : > { %v12330_v16 = vpop.f32.mrf.mxu0 }
 0x416   : > { %v12332_v8 = vpop.f32.mrf.mxu1 }
 0x417   : > { %v12334_v12 = vpop.f32.mrf.mxu0 }
 0x418   : > { %v12336_v59 = vpop.f32.mrf.mxu1 }
 0x41d   : > { %v12338_v6 = vpop.f32.mrf.mxu0 }
 0x41e   : > { %v12340_v25 = vpop.f32.mrf.mxu1 }
 0x41f   : > { %v12342_v60 = vpop.f32.mrf.mxu0 }
 0x420   : > { %v12344_v18 = vpop.f32.mrf.mxu1  ;;  %v5565_v38 = vsel %vm12452_vm14, %v12342_v60, 0.0 }
 0x425   : > { %v12346_v31 = vpop.f32.mrf.mxu0 }
 0x426   : > { %v12348_v51 = vpop.f32.mrf.mxu1  ;;  %v5568_v56 = vsel %vm12456_vm5, %v12346_v31, 0.0 }
 0x427   : > { %v12350_v52 = vpop.f32.mrf.mxu0 }
 0x428   : > { %v12352_v19 = vpop.f32.mrf.mxu1  ;;  %v5567_v49 = vsel %vm12460_vm10, %v12350_v52, 0.0 }
 0x429   : > { %v5725_v58 = vadd.f32 %v12352_v19, %v5567_v49 }
 0x42d   : > { %v12354_v20 = vpop.f32.mrf.mxu0 }
 0x42e   : > { %v12356_v47 = vpop.f32.mrf.mxu1  ;;  %v5570_v42 = vsel %vm12464_vm11, %v12354_v20, 0.0  ;;  %v5563_v20 = vsel %vm12444_vm4, %v12334_v12, 0.0  ;;  %v5726_v12 = vadd.f32 %v12348_v51, %v5568_v56 }
 0x42f   : > { %v12358_v3 = vpop.f32.mrf.mxu0 }
 0x430   : > { %v12360_v27 = vpop.f32.mrf.mxu1 }
 0x431   : > { %v12362_v35 = vpop.f32.mrf.mxu0 }
 0x432   : > { %v12364_v13 = vpop.f32.mrf.mxu1  ;;  %v5896_v31 = vsel %vm12477_vm7, %v12362_v35, 0.0 }
 0x433   : > { %v12366_v44 = vpop.f32.mrf.mxu0 }
 0x434   : > { %v12368_v50 = vpop.f32.mrf.mxu1 }
 0x435   : > { %v12370_v45 = vpop.f32.mrf.mxu0 }
 0x436   : > { %v12372_v26 = vpop.f32.mrf.mxu1  ;;  %v5898_v60 = vsel %vm12487_vm9, %v12370_v45, 0.0  ;;  %v6054_v45 = vsel %vm12438_vm6, %v12364_v13, 0.0 }
 0x437   : > { %v12374_v37 = vpop.f32.mrf.mxu0 }
 0x438   : > { %v12376_v10 = vpop.f32.mrf.mxu1  ;;  %v5897_v51 = vsel %vm12491_vm13, %v12374_v37, 0.0  ;;  %v6053_v37 = vsel %vm12444_vm4, %v12368_v50, 0.0  ;;  %v6056_v50 = vsel %vm12448_vm2, %v12372_v26, 0.0 }
 0x439   : > { %v12378_v46 = vpop.f32.mrf.mxu0 }
 0x43a   : > { %v12380_v32 = vpop.f32.mrf.mxu1 }
 0x43b   : > { %v12382_v61 = vpop.f32.mrf.mxu0 }
 0x43c   : > { %v12384_v2 = vpop.f32.mrf.mxu1 }
 0x43d   : > { %v12386_v9 = vpop.f32.mrf.mxu0 }
 0x43e   : > { %v12388_v5 = vpop.f32.mrf.mxu1  ;;  %v5902_v35 = vsel %vm12499_vm0, %v12386_v9, 0.0  ;;  %v5899_v9 = vsel %vm12514_vm1, %v12382_v61, 0.0  ;;  %v5723_v61 = vadd.f32 %v12344_v18, %v5565_v38  ;;  %v6058_v18 = vsel %vm12456_vm5, %v12380_v32, 0.0 }
 0x43f   : > { %v12390_v33 = vpop.f32.mrf.mxu0  ;;  %v6057_v32 = vsel %vm12460_vm10, %v12384_v2, 0.0 }
 0x440   : > { %v12392_v53 = vpop.f32.mrf.mxu1 }
 0x441   : > { %v12394_v7 = vpop.f32.mrf.mxu0 }
 0x442   : > { %v12396_v39 = vpop.f32.mrf.mxu1 }
 0x443   : > { %v12398_v41 = vpop.f32.mrf.mxu0 }
 0x444   : > { %13233 = vst [vmem:[#allocation39_spill] sm:$0xff] %v12398_v41  ;;  %v12400_v40 = vpop.f32.mrf.mxu1 }
 0x445   : > { %13234 = vst [vmem:[#allocation40_spill] sm:$0xff] %v12400_v40  ;;  %v12402_v0 = vpop.f32.mrf.mxu0 }
 0x446   : > { %13235 = vst [vmem:[#allocation12_spill] sm:$0xff] %v12402_v0  ;;  %v12404_v11 = vpop.f32.mrf.mxu1 }
 0x447   : > { %13236 = vst [vmem:[#allocation72_spill] sm:$0xff] %v12404_v11  ;;  %v12406_v21 = vpop.f32.mrf.mxu0 }
 0x448   : > { %13237 = vst [vmem:[#allocation73_spill] sm:$0xff] %v12406_v21  ;;  %v12408_v22 = vpop.f32.mrf.mxu1 }
 0x449   : > { %13238 = vst [vmem:[#allocation42_spill] sm:$0xff] %v12408_v22  ;;  %v12410_v36 = vpop.f32.mrf.mxu0 }
 0x44a   : > { %v12412_v23 = vpop.f32.mrf.mxu1 }
 0x44b   : > { %v12414_v28 = vpop.f32.mrf.mxu0 }
 0x44c   : > { %v12416_v4 = vpop.f32.mrf.mxu1 }
 0x44d   : > { %13239 = vst [vmem:[#allocation88_spill] sm:$0xff] %v12416_v4  ;;  %v12418_v29 = vpop.f32.mrf.mxu0 }
 0x44e   : > { %v12420_v43 = vpop.f32.mrf.mxu1 }
 0x44f   : > { %v12423_v30 = vpop.f32.mrf.mxu0  ;;  %v6368_v2 = vsel %vm12499_vm0, %v12420_v43, 0.0 }
 0x450   : > { %v12425_v24 = vpop.f32.mrf.mxu1 }
 0x451   : > { %13241 = vst [vmem:[#allocation26_spill] sm:$0xff] %v12425_v24  ;;  %v12433_v15 = vpop.f32.mrf.mxu0 }
 0x452   : > { %13248 = vst [vmem:[#allocation89_spill] sm:$0xff] %v12433_v15  ;;  %v12436_v40 = vpop.f32.mrf.mxu1 }
 0x453   : > { %13250 = vst [vmem:[#allocation74_spill] sm:$0xff] %v12436_v40  ;;  %v12442_v63 = vpop.f32.mrf.mxu0 }
 0x454   : > { %13253 = vst [vmem:[#allocation75_spill] sm:$0xff] %v12442_v63  ;;  %v5564_v63 = vsel %vm12438_vm6, %v12330_v16, 0.0  ;;  %v12485_v11 = vpop.f32.mrf.mxu1 }
 0x455   : > { %v12468_v40 = vpop.f32.mrf.mxu0  ;;  %13273 = vst [vmem:[#allocation29_spill] sm:$0xff] %v12485_v11  ;;  %v5722_v48 = vadd.f32 %v12332_v8, %v5564_v63  ;;  %v5566_v8 = vsel %vm12448_vm2, %v12338_v6, 0.0  ;;  %v5728_v6 = vadd.f32 %v12356_v47, %v5570_v42  ;;  %v5907_v42 = vadd.f32 %v5899_v9, %v5725_v58 }
 0x456   : > { %13266 = vst [vmem:[#allocation90_spill] sm:$0xff] %v12468_v40  ;;  %v12543_v63 = vpop.f32.mrf.mxu1  ;;  %v5724_v56 = vadd.f32 %v12340_v25, %v5566_v8 }
 0x457   : > { %v12503_v17 = vpop.f32.mrf.mxu0  ;;  %13288 = vst [vmem:[#allocation35_spill] sm:$0xff] %v12543_v63  ;;  %v5904_v4 = vadd.f32 %v5896_v31, %v5722_v48  ;;  %v5901_v63 = vsel %vm12525_vm3, %v12390_v33, 0.0  ;;  %v5910_v47 = vadd.f32 %v5902_v35, %v5728_v6  ;;  %v5895_v33 = vsel %vm12481_vm8, %v12366_v44, 0.0 }
 0x458   : > { %13282 = vst [vmem:[#allocation91_spill] sm:$0xff] %v12503_v17  ;;  %v5569_v17 = vsel %vm12473_vm12, %v12358_v3, 0.0  ;;  %v5900_v3 = vsel %vm12495_vm15, %v12378_v46, 0.0  ;;  %v12572_v49 = vpop.f32.mrf.mxu1  ;;  %v5906_v25 = vadd.f32 %v5898_v60, %v5724_v56  ;;  %v5905_v31 = vadd.f32 %v5897_v51, %v5723_v61 }
 0x459   : > { %v12529_v24 = vpop.f32.mrf.mxu0  ;;  %v5727_v46 = vadd.f32 %v12360_v27, %v5569_v17  ;;  %v5908_v19 = vadd.f32 %v5900_v3, %v5726_v12  ;;  %v5721_v17 = vadd.f32 %v12336_v59, %v5563_v20  ;;  %v6060_v44 = vsel %vm12464_vm11, %v12388_v5, 0.0 }
 0x45a   : > { %13287 = vst [vmem:[#allocation76_spill] sm:$0xff] %v12529_v24  ;;  %v6062_v20 = vadd.f32 %v6054_v45, %v5904_v4  ;;  %v6068_v3 = vadd.f32 %v6060_v44, %v5910_v47  ;;  %v6059_v5 = vsel %vm12473_vm12, %v12392_v53, 0.0  ;;  %v9235_v4 = vpop.f32.mrf.mxu1  ;;  %v6065_v38 = vadd.f32 %v6057_v32, %v5907_v42  ;;  %v13303_v52 = vld [vmem:[#allocation74_spill] sm:$0xff] }
 0x45b   : > { %v12551_v24 = vpop.f32.mrf.mxu0  ;;  %v5909_v59 = vadd.f32 %v5901_v63, %v5727_v46  ;;  %v5903_v8 = vadd.f32 %v5895_v33, %v5721_v17  ;;  %v6066_v13 = vadd.f32 %v6058_v18, %v5908_v19  ;;  %v6055_v63 = vsel %vm12452_vm14, %v12376_v10, 0.0  ;;  %v13289_v19 = vld [vmem:[#allocation88_spill] sm:$0xff]  ;;  %v13295_v18 = vld [vmem:[#allocation42_spill] sm:$0xff] }
 0x45c   : > { %v6218_v6 = vadd.f32 %v12418_v29, %v6068_v3  ;;  %v6064_v46 = vadd.f32 %v6056_v50, %v5906_v25  ;;  %v6063_v9 = vadd.f32 %v6055_v63, %v5905_v31  ;;  %v6366_v10 = vsel %vm12495_vm15, %v12412_v23, 0.0  ;;  %v13290_v23 = vld [vmem:[#allocation26_spill] sm:$0xff]  ;;  %v6658_v56 = vpop.f32.mrf.mxu1  ;;  %v13294_v25 = vld [vmem:[#allocation73_spill] sm:$0xff] }
 0x45d   : > { %v9218_v27 = vpop.f32.mrf.mxu0  ;;  %v6067_v12 = vadd.f32 %v6059_v5, %v5909_v59  ;;  %v6216_v58 = vadd.f32 %v12410_v36, %v6066_v13  ;;  %v6212_v53 = vadd.f32 %v12394_v7, %v6062_v20  ;;  %v6362_v36 = vsel %vm12477_vm7, %v12396_v39, 0.0 }
 0x45e   : > { %v6215_v29 = vadd.f32 %v12414_v28, %v6065_v38  ;;  %v6365_v47 = vsel %vm12514_vm1, %v13289_v19, 0.0  ;;  %v6367_v17 = vsel %vm12525_vm3, %v13290_v23, 0.0  ;;  %v6526_v39 = vsel %vm12464_vm11, %v9218_v27, 0.0  ;;  %v13292_v28 = vld [vmem:[#allocation12_spill] sm:$0xff]  ;;  %v9238_v44 = vpop.f32.mrf.mxu1  ;;  %v13296_v38 = vld [vmem:[#allocation90_spill] sm:$0xff] }
 0x45f   : > { %v6510_v48 = vpop.f32.mrf.mxu0  ;;  %v6217_v60 = vadd.f32 %v12423_v30, %v6067_v12  ;;  %v6214_v61 = vadd.f32 %v13292_v28, %v6064_v46  ;;  %v13293_v30 = vld [vmem:[#allocation72_spill] sm:$0xff]  ;;  %v6374_v45 = vadd.f32 %v6366_v10, %v6216_v58  ;;  %v6376_v42 = vadd.f32 %v6368_v2, %v6218_v6  ;;  %v13297_v6 = vld [vmem:[#allocation91_spill] sm:$0xff] }
 0x460   : > { %v6364_v33 = vsel %vm12487_vm9, %v13293_v30, 0.0  ;;  %v6213_v31 = vadd.f32 %v13294_v25, %v6063_v9  ;;  %v6363_v62 = vsel %vm12491_vm13, %v13295_v18, 0.0  ;;  %v6523_v57 = vsel %vm12460_vm10, %v12551_v24, 0.0  ;;  %v13298_v46 = vld [vmem:[#allocation39_spill] sm:$0xff]  ;;  %v13299_v10 = vld [vmem:[#allocation40_spill] sm:$0xff] }
 0x461   : > { %v12586_v35 = vpop.f32.mrf.mxu0  ;;  %v13291_v43 = vld [vmem:[#allocation76_spill] sm:$0xff]  ;;  %v6525_v27 = vsel %vm12473_vm12, %v6510_v48, 0.0  ;;  %v6373_v20 = vadd.f32 %v6365_v47, %v6215_v29  ;;  %v6375_v13 = vadd.f32 %v6367_v17, %v6217_v60  ;;  %v6534_v50 = vadd.f32 %v6526_v39, %v6376_v42  ;;  %v13301_v47 = vld [vmem:[#allocation75_spill] sm:$0xff] }
 0x462   : > { %v6524_v7 = vsel %vm12456_vm5, %v13291_v43, 0.0  ;;  %v6061_v32 = vadd.f32 %v6053_v37, %v5903_v8  ;;  %v6370_v5 = vadd.f32 %v6362_v36, %v6212_v53  ;;  %v6522_v12 = vsel %vm12448_vm2, %v13296_v38, 0.0  ;;  %v6668_v8 = vpop.f32.mrf.mxu1  ;;  %v13300_v53 = vld [vmem:[#allocation89_spill] sm:$0xff] }
 0x463   : > { %v12602_v26 = vpop.f32.mrf.mxu0  ;;  %v6532_v3 = vadd.f32 %v6524_v7, %v6374_v45  ;;  %v6372_v58 = vadd.f32 %v6364_v33, %v6214_v61  ;;  %v6521_v24 = vsel %vm12452_vm14, %v13297_v6, 0.0  ;;  %v6531_v34 = vadd.f32 %v6523_v57, %v6373_v20  ;;  %v7931_v33 = vld [vmem:[%s12767_s4] ss:$0 sm:$0xff]  ;;  %v13302_v45 = vld [vmem:[#allocation35_spill] sm:$0xff] }
 0x464   : > { %v6533_v15 = vadd.f32 %v6525_v27, %v6375_v13  ;;  %v6211_v9 = vadd.f32 %v13298_v46, %v6061_v32  ;;  %v6361_v2 = vsel %vm12481_vm8, %v13299_v10, 0.0  ;;  %v6371_v37 = vadd.f32 %v6363_v62, %v6213_v31  ;;  %v7942_v46 = vld [vmem:[%s12769_s6 + $0x30] sm:$0xff]  ;;  %v7943_v10 = vld [vmem:[%s12769_s6 + $0x38] sm:$0xff] }
 0x465   : > { %v9252_v51 = vpop.f32.mrf.mxu0  ;;  %v6520_v36 = vsel %vm12438_vm6, %v13300_v53, 0.0  ;;  %v6530_v54 = vadd.f32 %v6522_v12, %v6372_v58  ;;  %v6682_v29 = vadd.f32 %v9235_v4, %v6532_v3  ;;  %v6684_v60 = vadd.f32 %v9238_v44, %v6534_v50 }
 0x466   : > { %v6519_v23 = vsel %vm12444_vm4, %v13301_v47, 0.0  ;;  %v6529_v17 = vadd.f32 %v6521_v24, %v6371_v37  ;;  %v6681_v7 = vadd.f32 %v6658_v56, %v6531_v34  ;;  %v6683_v39 = vadd.f32 %v6668_v8, %v6533_v15  ;;  %v6867_v34 = vld [vmem:[%s12769_s6 + $0x8] sm:$0xff]  ;;  %v7935_v15 = vld [vmem:[%s12769_s6 + $0x18] sm:$0xff]  ;;  %v7209_v37 = vld [vmem:[#allocation3] sm:$0x1] }
 0x467   : > { %v6798_v59 = vpop.f32.mrf.mxu0  ;;  %v6369_v30 = vadd.f32 %v6361_v2, %v6211_v9  ;;  %v6528_v4 = vadd.f32 %v6520_v36, %v6370_v5  ;;  %v6830_v14 = vsel %vm12487_vm9, %v9252_v51, 0.0  ;;  %v6680_v1 = vadd.f32 %v13302_v45, %v6530_v54  ;;  %v7939_v9 = vld [vmem:[%s12769_s6 + $0x28] sm:$0xff] }
 0x468   : > { %v6679_v18 = vadd.f32 %v12572_v49, %v6529_v17  ;;  %v6829_v62 = vsel %vm12491_vm13, %v6798_v59, 0.0  ;;  %v6828_v40 = vsel %vm12477_vm7, %v12586_v35, 0.0  ;;  %v6827_v16 = vsel %vm12481_vm8, %v12602_v26, 0.0  ;;  %v13304_v49 = vld [vmem:[#allocation29_spill] sm:$0xff] }
 0x469   : > { %v9255_v63 = vpop.f32.mrf.mxu0  ;;  %v6527_v31 = vadd.f32 %v6519_v23, %v6369_v30  ;;  %v6838_v57 = vadd.f32 %v6830_v14, %v6680_v1  ;;  %v6678_v51 = vadd.f32 %v13303_v52, %v6528_v4  ;;  %v13311_v2 = vmov 0.0  }
 0x46a   : > { %v6832_v55 = vsel %vm12495_vm15, %v9255_v63, 0.0  ;;  %v6837_v13 = vadd.f32 %v6829_v62, %v6679_v18  ;;  %vm9460_vm10 = vmmov 0   ;;  %v9461_v8 = vmov 0   ;;  %v7311_v18 = vld [vmem:[%s12772_s9 + $0x8] sm:$0xff]  ;;  %v7310_v62 = vld [vmem:[%s12772_s9] sm:$0xff] }
 0x46b   : > { %v6808_v48 = vpop.f32.mrf.mxu0  ;;  %v6840_v28 = vadd.f32 %v6832_v55, %v6682_v29  ;;  %v6677_v59 = vadd.f32 %v13304_v49, %v6527_v31  ;;  %v6836_v63 = vadd.f32 %v6828_v40, %v6678_v51  ;;  %v6853_v32 = vadd.f32 %v7931_v33, %v6838_v57  ;;  %9392 = vset.pattern.permute.xlu0 %v9461_v8  ;;  %v7386_v40 = vld [vmem:[%s12773_s10] sm:$0x3] }
 0x46c   : > { %v6831_v43 = vsel %vm12514_vm1, %v6808_v48, 0.0  ;;  %v6852_v35 = vadd.f32 %v7931_v33, %v6837_v13  ;;  %v7938_v48 = vld [vmem:[%s12769_s6 + $0x20] sm:$0xff]  ;;  %7212 = vperm.xlu0 %9392, %v7209_v37   ;;  %vm7298_vm8 = vcmask 122880   ;;  %vm7312_vm9 = vcmask 130048  }
 0x46d   : > { %v9258_v19 = vpop.f32.mrf.mxu0  ;;  %v6839_v42 = vadd.f32 %v6831_v43, %v6681_v7  ;;  %v6855_v27 = vadd.f32 %v7931_v33, %v6840_v28  ;;  %v6835_v22 = vadd.f32 %v6827_v16, %v6677_v59  ;;  %v6851_v21 = vadd.f32 %v7931_v33, %v6836_v63  ;;  %v7208_v28 = vld [vmem:[%s12770_s7] sm:$0x1] }
 0x46e   : > { %v6834_v0 = vsel %vm12499_vm0, %v9258_v19, 0.0  ;;  %v6861_v26 = vmax.f32 %v6853_v32, 0.0  ;;  %v6860_v58 = vmax.f32 %v6852_v35, 0.0  ;;  %vm7392_vm13 = vcmask 25600  }
 0x46f   : > { %v6842_v41 = vadd.f32 %v6834_v0, %v6684_v60  ;;  %v6818_v61 = vpop.f32.mrf.mxu0  ;;  %v6854_v3 = vadd.f32 %v7931_v33, %v6839_v42  ;;  %v6863_v5 = vmax.f32 %v6855_v27, 0.0  ;;  %v6850_v12 = vadd.f32 %v7931_v33, %v6835_v22 }
 0x470   : > { %v6833_v11 = vsel %vm12525_vm3, %v6818_v61, 0.0  ;;  %v6859_v6 = vmax.f32 %v6851_v21, 0.0  ;;  %vm13305_vm3 = vcmask 523264  }
 0x471   : > { %v6857_v56 = vadd.f32 %v7931_v33, %v6842_v41  ;;  %v6841_v25 = vadd.f32 %v6833_v11, %v6683_v39  ;;  %v6862_v38 = vmax.f32 %v6854_v3, 0.0  ;;  %v6858_v24 = vmax.f32 %v6850_v12, 0.0  ;;  %vm13306_vm6 = vmmov %vm13305_vm3  ;;  %v13315_v41 = vld [vmem:[#allocation33_spill] sm:$0xff] }
 0x472   : > { %vm13307_vm4 = vmmov %vm13305_vm3  ;;  %v7217_v61 = vsub.s32 0, %v13315_v41 }
 0x473   : > { %v6865_v44 = vmax.f32 %v6857_v56, 0.0  ;;  %v6856_v20 = vadd.f32 %v7931_v33, %v6841_v25  ;;  %vm13308_vm2 = vmmov %vm13305_vm3 }
 0x474   : > { %vm13309_vm14 = vmmov %vm13308_vm2 }
 0x475   : > { %v6864_v50 = vmax.f32 %v6856_v20, 0.0  ;;  %9259 = vmatprep.subr.mxu1 %v6865_v44  ;;  %9278 = vmatprep.subr.mxu0 %v6865_v44  ;;  %vm13310_vm5 = vmmov %vm13308_vm2 }
 0x476   : > { %9260 = vmatpush3.msra.mxu1 %v6865_v44  ;;  %9279 = vmatpush3.msra.mxu0 %v6865_v44  ;;  %vm13312_vm11 = vmmov %vm13308_vm2 }
 0x477   : > { %9261 = vmatprep.subr.mxu1 %v6864_v50  ;;  %9280 = vmatprep.subr.mxu0 %v6864_v50  ;;  %vm13313_vm12 = vmmov %vm13308_vm2 }
 0x478   : > { %9262 = vmatpush3.msra.mxu1 %v6864_v50  ;;  %9281 = vmatpush3.msra.mxu0 %v6864_v50  ;;  %vm13314_vm7 = vmmov %vm13308_vm2 }
 0x479   : > { %9263 = vmatprep.subr.mxu1 %v6863_v5  ;;  %9282 = vmatprep.subr.mxu0 %v6863_v5 }
 0x47a   : > { %9264 = vmatpush3.msra.mxu1 %v6863_v5  ;;  %9283 = vmatpush3.msra.mxu0 %v6863_v5 }
 0x47b   : > { %9265 = vmatprep.subr.mxu1 %v6862_v38  ;;  %9284 = vmatprep.subr.mxu0 %v6862_v38 }
 0x47c   : > { %9266 = vmatpush3.msra.mxu1 %v6862_v38  ;;  %9285 = vmatpush3.msra.mxu0 %v6862_v38 }
 0x47d   : > { %9267 = vmatprep.subr.mxu1 %v6861_v26  ;;  %9286 = vmatprep.subr.mxu0 %v6861_v26 }
 0x47e   : > { %9268 = vmatpush3.msra.mxu1 %v6861_v26  ;;  %9287 = vmatpush3.msra.mxu0 %v6861_v26 }
 0x47f   : > { %9269 = vmatprep.subr.mxu1 %v6860_v58  ;;  %9288 = vmatprep.subr.mxu0 %v6860_v58 }
 0x480   : > { %9270 = vmatpush3.msra.mxu1 %v6860_v58  ;;  %9289 = vmatpush3.msra.mxu0 %v6860_v58 }
 0x481   : > { %9271 = vmatprep.subr.mxu1 %v6859_v6  ;;  %9290 = vmatprep.subr.mxu0 %v6859_v6 }
 0x482   : > { %9272 = vmatpush3.msra.mxu1 %v6859_v6  ;;  %9291 = vmatpush3.msra.mxu0 %v6859_v6 }
 0x483   : > { %9273 = vmatprep.subr.mxu1 %v6858_v24  ;;  %9292 = vmatprep.subr.mxu0 %v6858_v24 }
 0x484   : > { %9274 = vmatpush3.msra.mxu1 %v6858_v24  ;;  %9293 = vmatpush3.msra.mxu0 %v6858_v24 }
 0x485   : > { %9297 = vmatprep.subr.mxu1 %v6865_v44  ;;  %9316 = vmatprep.subr.mxu0 %v6865_v44 }
 0x486   : > { %9276 = vmatmul.mubr.msk.f32.vlgmr.msra.gmra.mxu1 %vm13305_vm3, %v6867_v34  ;;  %9295 = vmatmul.mubr.msk.f32.vlgmr.msra.gmra.mxu0 %vm13306_vm6, %v7935_v15 }
 0x487   : > { %9298 = vmatpush3.msra.mxu1 %v6865_v44  ;;  %9317 = vmatpush3.msra.mxu0 %v6865_v44 }
 0x488   : > { %9299 = vmatprep.subr.mxu1 %v6864_v50  ;;  %9318 = vmatprep.subr.mxu0 %v6864_v50 }
 0x489   : > { %9300 = vmatpush3.msra.mxu1 %v6864_v50  ;;  %9319 = vmatpush3.msra.mxu0 %v6864_v50 }
 0x48a   : > { %9301 = vmatprep.subr.mxu1 %v6863_v5  ;;  %9320 = vmatprep.subr.mxu0 %v6863_v5 }
 0x48b   : > { %9302 = vmatpush3.msra.mxu1 %v6863_v5  ;;  %9321 = vmatpush3.msra.mxu0 %v6863_v5 }
 0x48c   : > { %9303 = vmatprep.subr.mxu1 %v6862_v38  ;;  %9322 = vmatprep.subr.mxu0 %v6862_v38 }
 0x48d   : > { %9304 = vmatpush3.msra.mxu1 %v6862_v38  ;;  %9323 = vmatpush3.msra.mxu0 %v6862_v38 }
 0x48e   : > { %9305 = vmatprep.subr.mxu1 %v6861_v26  ;;  %9324 = vmatprep.subr.mxu0 %v6861_v26 }
 0x48f   : > { %9306 = vmatpush3.msra.mxu1 %v6861_v26  ;;  %9325 = vmatpush3.msra.mxu0 %v6861_v26 }
 0x490   : > { %9307 = vmatprep.subr.mxu1 %v6860_v58  ;;  %9326 = vmatprep.subr.mxu0 %v6860_v58 }
 0x491   : > { %9308 = vmatpush3.msra.mxu1 %v6860_v58  ;;  %9327 = vmatpush3.msra.mxu0 %v6860_v58 }
 0x492   : > { %9309 = vmatprep.subr.mxu1 %v6859_v6  ;;  %9328 = vmatprep.subr.mxu0 %v6859_v6 }
 0x493   : > { %9310 = vmatpush3.msra.mxu1 %v6859_v6  ;;  %9329 = vmatpush3.msra.mxu0 %v6859_v6 }
 0x494   : > { %9311 = vmatprep.subr.mxu1 %v6858_v24  ;;  %9330 = vmatprep.subr.mxu0 %v6858_v24 }
 0x495   : > { %9312 = vmatpush3.msra.mxu1 %v6858_v24  ;;  %9313 = vmatprep.mubr.msk.f32.mxu1 %vm13307_vm4, %v7938_v48 }
 0x496   : > { %9331 = vmatpush3.msra.mxu0 %v6858_v24  ;;  %9332 = vmatprep.mubr.msk.f32.mxu0 %vm13308_vm2, %v7942_v46 }
 0x497   : > { %9314 = vmatmul.mubr.msk.f32.vlgmr.msra.gmra.mxu1 %vm13309_vm14, %v7939_v9  ;;  %9333 = vmatmul.mubr.msk.f32.vlgmr.msra.gmra.mxu0 %vm13310_vm5, %v7943_v10 }
 0x498   : > { %9335 = vmatprep.subr.mxu1 %v13311_v2  ;;  %9339 = vmatprep.mubr.msk.f32.mxu1 %vm9460_vm10, %v13311_v2 }
 0x4e7   : > { %v7213_v30 = vpop.permute.xlu0 %7212 }
 0x4e8   : > { %v7218_v4 = vrot.slane %v7213_v30, %v7217_v61 }
 0x546   : > { %v9277_v55 = vpop.f32.mrf.mxu1  ;;  %v9296_v53 = vpop.f32.mrf.mxu0 }
 0x547   : > { %v7203_v19 = vmax.f32 %v9277_v55, %v9296_v53 }
 0x548   : > { %v6941_v36 = vpop.f32.mrf.mxu1  ;;  %v7025_v54 = vpop.f32.mrf.mxu0 }
 0x549   : > { %v7202_v7 = vmax.f32 %v6941_v36, %v7025_v54 }
 0x557   : > { %v9315_v29 = vpop.f32.mrf.mxu1  ;;  %v9334_v60 = vpop.f32.mrf.mxu0 }
 0x558   : > { %v7205_v47 = vmax.f32 %v9315_v29, %v9334_v60 }
 0x559   : > { %v7109_v23 = vpop.f32.mrf.mxu1  ;;  %v7193_v17 = vpop.f32.mrf.mxu0 }
 0x55a   : > { %v7207_v43 = vmax.f32 %v7203_v19, %v7205_v47  ;;  %v7204_v0 = vmax.f32 %v7109_v23, %v7193_v17 }
 0x55c   : > { %9336 = vmatpush3.xpose.msk.msra.mxu1 %vm13312_vm11, %v7207_v43  ;;  %v7206_v39 = vmax.f32 %v7202_v7, %v7204_v0 }
 0x55d   : > { %9337 = vmatprep.subr.mxu1 %v13311_v2 }
 0x560   : > { %9338 = vmatpush3.xpose.msk.msra.mxu1 %vm13313_vm12, %v7206_v39 }
 0x561   : > { %9342 = vmatprep.subr.mxu1 %v13311_v2 }
 0x563   : > { %9340 = vmatmul.mubr.msk.f32.vlgmr.msra.gmra.mxu1 %vm13314_vm7, %v7208_v28 }
 0x564   : > { %9346 = vmatprep.mubr.msk.f32.mxu1 %vm9460_vm10, %v13311_v2  ;;  %9343 = vmatpush3.msra.mxu1 %v7311_v18 }
 0x565   : > { %9344 = vmatprep.subr.mxu1 %v13311_v2 }
 0x566   : > { %9345 = vmatpush3.msra.mxu1 %v7310_v62 }
 0x623   : > { %v7294_v33 = vpop.f32.mrf.mxu1 }
 0x624   : > { %v7295_v14 = vadd.f32 %v7294_v33, %v7218_v4 }
 0x625   : > { %v9341_v11 = vpop.f32.mrf.mxu1 }
 0x626   : > { %v7299_v45 = vsel %vm7298_vm8, %v7295_v14, -inf }
 0x627   : > { %7300 = vmax.xlane.f32.xlu0 %v7299_v45 }
 0x6b0   : > { %v7301_v1 = vpop.xlane.xlu0 %7300 }
 0x6b1   : > { %v7302_v42 = vsub.f32 %v7295_v14, %v7301_v1 }
 0x6b3   : > { %v7303_v56 = vmul.f32 1.442695, %v7302_v42 }
 0x6b5   : > { %9393 = vpow2.f32 %v7303_v56 }
 0x6c2   : > { %v9394_v25 = vpop.eup %9393 }
 0x6c3   : > { %v7305_v31 = vsel %vm7298_vm8, %v9394_v25, 0.0 }
 0x6c4   : > { %7306 = vadd.xlane.f32.xlu1 %v7305_v31 }
 0x74d   : > { %v7307_v57 = vpop.xlane.xlu1 %7306 }
 0x74e   : > { %9395 = vrcp.f32 %v7307_v57 }
 0x75b   : > { %v9396_v27 = vpop.eup %9395 }
 0x75c   : > { %v7309_v44 = vmul.f32 %v9396_v27, %v9394_v25 }
 0x75e   : > { %9347 = vmatmul.mubr.msk.f32.vlgmr.msra.gmra.mxu1 %vm7312_vm9, %v7309_v44 }
 0x81e   : > { %v7382_v20 = vpop.f32.mrf.mxu1 }
 0x81f   : > { %v7390_v52 = vrot.slane %v7382_v20, %v7217_v61 }
 0x820   : > { %v9348_v51 = vpop.f32.mrf.mxu1 }
 0x821   : > { %v7391_v13 = vmul.f32 %v7390_v52, %v7386_v40 }
 0x823   : > { %7393 = vst.msk [vmem:[%s381_s12] sm:$0x3] %vm7392_vm13, %v7391_v13 }
 0x824   : > { %9410 = shalt.err (!%p9407_p3)
}
 0x825   : > { %s9411_s26 = scalar_lea.hbm %s7406_s16, 32  ;;  %s9415_s12 = scalar_lea.hbm %s12774_s11, 64 }
 0x826   : > { %p9412_p4 = scmp.ne.s32.totalorder %s7406_s16, %s9411_s26  ;;  %p9416_p9 = scmp.lt.s32.totalorder %s7406_s16, %s12774_s11 }
 0x827   : > { %p9417_p10 = scmp.lt.s32.totalorder %s9415_s12, %s9411_s26 }
 0x828   : > { %p9413_p7 = pnand %p9412_p4, %p9564_p5 }
 0x829   : > { %p9418_p11 = por %p9417_p10, %p9416_p9 }
 0x82a   : > { %p9414_p8 = pneg %p9413_p7 }
 0x82c   : > { %p9419_p12 = pnand %p9418_p11, %p9414_p8 }
 0x82e   : > { %9422 = shalt.err (!%p9419_p12)
}
 0x82f   : > { %9350 = dma.vmem_to_hbm [thread:$0]  (%p9564_p5), %s7409_s13, 32, %s7406_s16, %s7395_s17  }
 0x830 PF: > { %p9356_p13 = scmp.ge.s32.totalorder %s9457_s22, 2  ;;  %s7420_s0 = sand.u32 1, %s9445_s19  }
 0x831   : > { %s7421_s25 = scalar_lea.sflag [#allocation5], %s7420_s0 }
 0x832   : > { %p9353_p0 = pnand %p9356_p13, %p9568_p6 }
 0x834   : > { %p9354_p1 = pneg %p9353_p0 }
 0x836   : > { %9440 = dma.done.wait (%p9354_p1), %s7421_s25, 32  }
 0x837   : > { %9442 = vsyncadd (%p9354_p1), %s7421_s25, 4294967264  ;;  %p23_p2 = scmp.ge.s32.totalorder %s9551_s24, 4   ;;  %s13316_s19 = smov %s9449_s20 }
 0x838   : > { %s13317_s20 = smov %s9453_s21  ;;  %s13318_s21 = smov %s9562_s27 }
 0x839   : > { %s13319_s22 = smov %s9551_s24  ;;  %25 = sbr.rel (!%p23_p2) target bundleno = 6 (0x6), region = 121 }
 0x83e   :  { %7426 = vsyncpa [#allocation5], 1 }
 0x83f   :  { %7428 = vsyncpa [#allocation5 + $0x1], 1 }

</bundles_post_ra>
